<compile_context>
chip_gen: v7x
topology: tpu7x:2x2x1
jax: 0.10.0
libtpu: 0.0.40
codegen_flags: <defaults>
</compile_context>

<pallas_src>
import functools

import numpy as np
import jax
import jax.numpy as jnp
from jax import lax
from jax.experimental import pallas as pl
from jax.experimental.pallas import tpu as pltpu


def _round_up(x, m):
    return (x + m - 1) // m * m


# ---------------------------------------------------------------------------
# Parameter construction (deterministic, synthetic — PyTorch default init).
# ---------------------------------------------------------------------------
def init_params(key):
    def uniform(k, shape, fan_in):
        bound = 1.0 / np.sqrt(float(fan_in))
        return jax.random.uniform(k, shape, jnp.float32, -bound, bound)

    ks = jax.random.split(key, 10)
    return {
        "conv1_w": uniform(ks[0], (6, 3, 5, 5), 3 * 25),
        "conv1_b": uniform(ks[1], (6,), 3 * 25),
        "conv2_w": uniform(ks[2], (16, 6, 5, 5), 6 * 25),
        "conv2_b": uniform(ks[3], (16,), 6 * 25),
        "fc1_w": uniform(ks[4], (512, 1024), 1024),   # PyTorch (out, in)
        "fc1_b": uniform(ks[5], (512,), 1024),
        "fc2_w": uniform(ks[6], (256, 512), 512),
        "fc2_b": uniform(ks[7], (256,), 512),
        "fc3_w": uniform(ks[8], (100, 256), 256),
        "fc3_b": uniform(ks[9], (100,), 256),
    }


# ---------------------------------------------------------------------------
# One-time (init) host-side weight re-layout for the fused kernel.
#
# Each stride-2 5x5 conv becomes  sum_{ki} rows_slice @ B[ki]  against banded
# weight matrices:
#   B1[ki] (128,128): rows = c*36 + w_in (padded conv1 input col, channel-major),
#                     cols = o*20 + 2 + ow  == conv2's padded-W, channel-major
#                     layout (pad cols are zero, so conv2's W-padding is free).
#   B2[ki] (128,128): rows = c*20 + w_in, cols = o2*8 + ow2 (16*8 = 128 lanes).
# fc1 is permuted once to (4, 256, 512) so its contraction runs directly on the
# kernel's (oh2-pair, o2*8+ow2) activation packing with K=256 per dot.
# fc2/fc3 stored pre-transposed; fc3 output padded 100 -> 128 lanes with -1e30
# pad biases (kept out of max / logsumexp; ONLY safe while the logits stay f32).
# ---------------------------------------------------------------------------
def prepare_params(p):
    w1 = np.asarray(p["conv1_w"], np.float32)
    b1 = np.asarray(p["conv1_b"], np.float32)
    w2 = np.asarray(p["conv2_w"], np.float32)
    b2 = np.asarray(p["conv2_b"], np.float32)
    f1 = np.asarray(p["fc1_w"], np.float32)      # (512, 1024)
    f2 = np.asarray(p["fc2_w"], np.float32)      # (256, 512)
    f3 = np.asarray(p["fc3_w"], np.float32)      # (100, 256)

    # conv1 banded matrices
    B1 = np.zeros((5, 128, 128), np.float32)
    ki, c, o, ow, kj = np.meshgrid(np.arange(5), np.arange(3), np.arange(6),
                                   np.arange(16), np.arange(5), indexing="ij")
    B1[ki, c * 36 + 2 * ow + kj, o * 20 + 2 + ow] = w1[o, c, ki, kj]
    b1cols = np.zeros((1, 128), np.float32)
    for oc in range(6):
        b1cols[0, oc * 20 + 2: oc * 20 + 18] = b1[oc]

    # conv2 banded matrices
    B2 = np.zeros((5, 128, 128), np.float32)
    ki, c, o, ow, kj = np.meshgrid(np.arange(5), np.arange(6), np.arange(16),
                                   np.arange(8), np.arange(5), indexing="ij")
    B2[ki, c * 20 + 2 * ow + kj, o * 8 + ow] = w2[o, c, ki, kj]
    b2cols = np.repeat(b2, 8)[None, :].astype(np.float32)        # (1, 128)

    # fc1: permute K once to (oh2, o2*8+ow2, out) then pack row pairs to K=256.
    f1r = f1.reshape(512, 16, 8, 8).transpose(2, 1, 3, 0).reshape(4, 256, 512)
    # fc2 / fc3: pre-transposed; fc3 padded to 128 output lanes.
    f2t = f2.T                                                    # (512, 256)
    f3t = np.zeros((256, 128), np.float32)
    f3t[:, :100] = f3.T
    b3p = np.full((1, 128), -1e30, np.float32)
    b3p[0, :100] = np.asarray(p["fc3_b"], np.float32)

    bf = jnp.bfloat16
    return {
        "B1": jnp.asarray(B1, bf), "b1": jnp.asarray(b1cols),
        "B2": jnp.asarray(B2, bf), "b2": jnp.asarray(b2cols),
        "f1w": jnp.asarray(f1r, bf), "f1b": jnp.asarray(p["fc1_b"]).reshape(1, 512),
        "f2w": jnp.asarray(f2t, bf), "f2b": jnp.asarray(p["fc2_b"]).reshape(1, 256),
        "f3w": jnp.asarray(f3t, bf), "f3b": jnp.asarray(b3p),
    }


# ---------------------------------------------------------------------------
# The fused kernel: one grid step processes a batch tile of `bt` samples.
# ---------------------------------------------------------------------------
def _lenet_kernel(xprep_ref, b1w_ref, b1b_ref, b2w_ref, b2b_ref,
                  f1w_ref, f1b_ref, f2w_ref, f2b_ref, f3w_ref, f3b_ref,
                  out_ref, conv2in_ref, fcin_ref, *, bt):
    f32 = jnp.float32
    bf16 = jnp.bfloat16
    m = 8 * bt                                   # matmul M axis = rows x batch

    # Zero ONLY the two true row-padding blocks per phase of the conv2-input
    # scratch; the W-pad lanes inside blocks 1..8 come out as exact relu(0+0)=0
    # from the banded conv1 matmul (B1 / bias are zero there).
    zrow = jnp.zeros((bt, 128), bf16)
    conv2in_ref[0, 0, :, :] = zrow
    conv2in_ref[1, 0, :, :] = zrow
    conv2in_ref[0, 9, :, :] = zrow
    conv2in_ref[1, 9, :, :] = zrow

    # ---- conv1 + ReLU: 2 output-row phases x 5 taps, batch folded into M ----
    # Output written directly in conv2's padded, phase-split, channel-major
    # lane layout: conv2in[phase rh, 1+a, sample, :] = conv1 row oh = 2a+rh.
    for rh in range(2):
        acc = jnp.zeros((m, 128), f32)
        for ki in range(5):
            t = 2 * rh + ki                      # padded input row = 4*a + t
            lhs = xprep_ref[t % 4, (t // 4):(t // 4) + 8, :, :]   # (8, bt, 128) bf16
            acc += jnp.dot(lhs.reshape(m, 128), b1w_ref[ki],
                           preferred_element_type=f32)
        h1 = jnp.maximum(acc + b1b_ref[...], 0.0)
        conv2in_ref[rh, 1:9, :, :] = h1.reshape(8, bt, 128).astype(bf16)

    # ---- conv2 + ReLU ---------------------------------------------------------
    acc = jnp.zeros((m, 128), f32)
    for ki in range(5):
        lhs = conv2in_ref[ki % 2, (ki // 2):(ki // 2) + 8, :, :]  # (8, bt, 128) bf16
        acc += jnp.dot(lhs.reshape(m, 128), b2w_ref[ki],
                       preferred_element_type=f32)
    h2 = jnp.maximum(acc + b2b_ref[...], 0.0).reshape(8, bt, 128)

    # Pack fc1 input to K=256 lanes (conv rows 2b and 2b+1 side by side): fills
    # the 256-deep MXU on v6e/v7x; harmless on v5e.  Lane offsets are 128-aligned.
    for b in range(4):
        fcin_ref[b, :, 0:128] = h2[2 * b].astype(bf16)
        fcin_ref[b, :, 128:256] = h2[2 * b + 1].astype(bf16)

    # ---- fc1 + ReLU (K = 1024 as 4 x 256) --------------------------------------
    y = jnp.zeros((bt, 512), f32)
    for b in range(4):
        y += jnp.dot(fcin_ref[b, :, :], f1w_ref[b],
                     preferred_element_type=f32)
    y = jnp.maximum(y + f1b_ref[...], 0.0)

    # ---- fc2 + ReLU ------------------------------------------------------------
    y = jnp.dot(y.astype(bf16), f2w_ref[...], preferred_element_type=f32)
    y = jnp.maximum(y + f2b_ref[...], 0.0)

    # ---- fc3 + log_softmax -----------------------------------------------------
    # NOTE: lanes 100..127 carry -1e30 pad biases.  This is only safe while z is
    # float32; lowering this path to bf16 would overflow to -inf and NaN the lse.
    z = jnp.dot(y.astype(bf16), f3w_ref[...], preferred_element_type=f32)
    z = z + f3b_ref[...]
    mx = jnp.max(z, axis=-1, keepdims=True)
    s = z - mx
    lse = jnp.log(jnp.sum(jnp.exp(s), axis=-1, keepdims=True))
    out_ref[...] = s - lse


def lenet_forward(prepped, x, *, batch_tile=128):
    x = x.reshape(-1, 3, 32, 32).astype(jnp.float32)
    n = x.shape[0]

    # Batch tile: multiple of 16 (bf16 sublane packing), no bigger than needed.
    bt = min(_round_up(batch_tile, 16), _round_up(n, 16))
    n_pad = _round_up(n, bt)
    nt = n_pad // bt
    if n_pad != n:
        x = jnp.pad(x, ((0, n_pad - n), (0, 0), (0, 0), (0, 0)))

    # Host-side input re-layout (zero data blowup; bf16 xprep is ~9 KB/sample,
    # smaller than the raw f32 input): pad spatially, split padded rows into 4
    # stride phases, put (block, sample) ahead of the lane axis so every
    # in-kernel LHS slice is a whole-tile batch-contiguous slab, pad 108->128.
    xp = jnp.pad(x, ((0, 0), (0, 0), (2, 2), (2, 2)))             # (n_pad,3,36,36)
    xprep = (xp.reshape(nt, bt, 3, 9, 4, 36)
               .transpose(0, 4, 3, 1, 2, 5)                       # (nt,4,9,bt,3,36)
               .reshape(nt, 4, 9, bt, 108))
    xprep = jnp.pad(xprep, ((0, 0),) * 4 + ((0, 20),)).astype(jnp.bfloat16)

    args = (xprep, prepped["B1"], prepped["b1"], prepped["B2"], prepped["b2"],
            prepped["f1w"], prepped["f1b"], prepped["f2w"], prepped["f2b"],
            prepped["f3w"], prepped["f3b"])

    # Weight specs: constant index_map -> loaded once, resident across the grid.
    def const_spec(shape):
        rank = len(shape)
        return pl.BlockSpec(tuple(shape), lambda g, _r=rank: (0,) * _r)

    in_specs = [pl.BlockSpec((None, 4, 9, bt, 128), lambda g: (g, 0, 0, 0, 0))]
    in_specs += [const_spec(a.shape) for a in args[1:]]
    out_specs = pl.BlockSpec((bt, 128), lambda g: (g, 0))

    # Advisory cost: actual banded-matmul MACs issued per sample.
    macs_per_sample = (10 * 8 * 128 * 128 + 5 * 8 * 128 * 128 +
                       4 * 256 * 512 + 512 * 256 + 256 * 128)
    bytes_accessed = int(sum(int(a.size) * a.dtype.itemsize for a in args)
                         + n_pad * 128 * 4)

    out = pl.pallas_call(
        functools.partial(_lenet_kernel, bt=bt),
        out_shape=jax.ShapeDtypeStruct((n_pad, 128), jnp.float32),
        grid=(nt,),
        in_specs=in_specs,
        out_specs=out_specs,
        scratch_shapes=[
            # conv1 out == conv2 in: (phase, padded row block, sample, lane), bf16
            pltpu.VMEM((2, 10, bt, 128), jnp.bfloat16),
            # fc1 input packed to K=256: (row pair, sample, lane), bf16
            pltpu.VMEM((4, bt, 256), jnp.bfloat16),
        ],
        compiler_params=pltpu.CompilerParams(
            dimension_semantics=("parallel",),        # batch tiles independent
            vmem_limit_bytes=32 * 1024 * 1024),       # safe on v5e/v6e/v7x
        cost_estimate=pl.CostEstimate(
            flops=2 * n_pad * macs_per_sample,
            transcendentals=n_pad * 129,
            bytes_accessed=bytes_accessed),
    )(*args)
    return out[:n, :100]                              # drop batch/class padding


# ---------------------------------------------------------------------------
# Pure-JAX references for validation.
# ---------------------------------------------------------------------------
def lenet_reference_f32(p, x):
    x = x.reshape(-1, 3, 32, 32).astype(jnp.float32)

    def conv(h, w, b):
        y = lax.conv_general_dilated(h, w, (2, 2), ((2, 2), (2, 2)),
                                     dimension_numbers=("NCHW", "OIHW", "NCHW"))
        return jax.nn.relu(y + b[None, :, None, None])

    h = conv(x, p["conv1_w"], p["conv1_b"])
    h = conv(h, p["conv2_w"], p["conv2_b"])
    h = h.reshape(h.shape[0], 1024)
    h = jax.nn.relu(h @ p["fc1_w"].T + p["fc1_b"])
    h = jax.nn.relu(h @ p["fc2_w"].T + p["fc2_b"])
    h = h @ p["fc3_w"].T + p["fc3_b"]
    return jax.nn.log_softmax(h, axis=-1)


def lenet_reference_bf16(p, x):
    """Mirrors the kernel's numerics: bf16 matmul operands, f32 accumulation."""
    bf = jnp.bfloat16
    x = x.reshape(-1, 3, 32, 32).astype(jnp.float32)

    def conv(h, w, b):
        y = lax.conv_general_dilated(h.astype(bf), w.astype(bf), (2, 2),
                                     ((2, 2), (2, 2)),
                                     dimension_numbers=("NCHW", "OIHW", "NCHW"),
                                     preferred_element_type=jnp.float32)
        return jax.nn.relu(y + b[None, :, None, None])

    def dense(h, w, b):
        return jnp.dot(h.astype(bf), w.T.astype(bf),
                       preferred_element_type=jnp.float32) + b

    h = conv(x, p["conv1_w"], p["conv1_b"])
    h = conv(h, p["conv2_w"], p["conv2_b"])
    h = h.reshape(h.shape[0], 1024)
    h = jax.nn.relu(dense(h, p["fc1_w"], p["fc1_b"]))
    h = jax.nn.relu(dense(h, p["fc2_w"], p["fc2_b"]))
    h = dense(h, p["fc3_w"], p["fc3_b"])
    return jax.nn.log_softmax(h, axis=-1)


if __name__ == "__main__":
    key = jax.random.PRNGKey(0)
    pkey, xkey, xkey2 = jax.random.split(key, 3)
    raw = init_params(pkey)
    prepped = prepare_params(raw)

    # CIFAR-sized input implied by the module: batch=2, 3x32x32.
    x = jax.random.normal(xkey, (2, 3, 32, 32), dtype=jnp.float32)
    out = jax.block_until_ready(jax.jit(lenet_forward)(prepped, x))
    assert out.shape == (2, 100)
    ref_bf16 = jax.block_until_ready(lenet_reference_bf16(raw, x))
    ref_f32 = jax.block_until_ready(lenet_reference_f32(raw, x))
    assert jnp.allclose(out, ref_bf16, atol=1e-2, rtol=1e-3), \
        "mismatch vs bf16-matmul reference"
    assert jnp.allclose(out, ref_f32, atol=2e-1, rtol=0.0), \
        "mismatch vs f32 reference"

    # Exercise the multi-tile grid + batch-padding path with a small tile.
    x2 = jax.random.normal(xkey2, (40, 3, 32, 32), dtype=jnp.float32)
    fwd_tiled = jax.jit(functools.partial(lenet_forward, batch_tile=16))
    out2 = jax.block_until_ready(fwd_tiled(prepped, x2))
    assert out2.shape == (40, 100)
    ref2 = jax.block_until_ready(lenet_reference_bf16(raw, x2))
    assert jnp.allclose(out2, ref2, atol=1e-2, rtol=1e-3), \
        "mismatch vs bf16-matmul reference (tiled batch)"

    print("KERNEL_OK")
</pallas_src>

<mosaic_0001>
module attributes {stable_mosaic.version = 11 : i64} {
  func.func @_lenet_kernel(%arg0: i32, %arg1: memref<1x4x9x16x128xbf16, #tpu.memory_space<vmem>>, %arg2: memref<5x128x128xbf16, #tpu.memory_space<vmem>>, %arg3: memref<1x128xf32, #tpu.memory_space<vmem>>, %arg4: memref<5x128x128xbf16, #tpu.memory_space<vmem>>, %arg5: memref<1x128xf32, #tpu.memory_space<vmem>>, %arg6: memref<4x256x512xbf16, #tpu.memory_space<vmem>>, %arg7: memref<1x512xf32, #tpu.memory_space<vmem>>, %arg8: memref<512x256xbf16, #tpu.memory_space<vmem>>, %arg9: memref<1x256xf32, #tpu.memory_space<vmem>>, %arg10: memref<256x128xbf16, #tpu.memory_space<vmem>>, %arg11: memref<1x128xf32, #tpu.memory_space<vmem>>, %arg12: memref<16x128xf32, #tpu.memory_space<vmem>>, %arg13: memref<2x10x16x128xbf16, #tpu.memory_space<vmem>>, %arg14: memref<4x16x256xbf16, #tpu.memory_space<vmem>>) attributes {dimension_semantics = [#tpu.dimension_semantics<parallel>], iteration_bounds = array<i64: 1>, scalar_prefetch = 0 : i64, scratch_operands = 2 : i64, tpu.core_type = #tpu.core_type<tc>, window_params = [{transform_indices = @transform_0, window_bounds = array<i64: 1, 4, 9, 16, 128>}, {pipeline_mode = #tpu.pipeline_mode<synchronous>, transform_indices = @transform_1, window_bounds = array<i64: 5, 128, 128>}, {pipeline_mode = #tpu.pipeline_mode<synchronous>, transform_indices = @transform_2, window_bounds = array<i64: 1, 128>}, {pipeline_mode = #tpu.pipeline_mode<synchronous>, transform_indices = @transform_3, window_bounds = array<i64: 5, 128, 128>}, {pipeline_mode = #tpu.pipeline_mode<synchronous>, transform_indices = @transform_4, window_bounds = array<i64: 1, 128>}, {pipeline_mode = #tpu.pipeline_mode<synchronous>, transform_indices = @transform_5, window_bounds = array<i64: 4, 256, 512>}, {pipeline_mode = #tpu.pipeline_mode<synchronous>, transform_indices = @transform_6, window_bounds = array<i64: 1, 512>}, {pipeline_mode = #tpu.pipeline_mode<synchronous>, transform_indices = @transform_7, window_bounds = array<i64: 512, 256>}, {pipeline_mode = #tpu.pipeline_mode<synchronous>, transform_indices = @transform_8, window_bounds = array<i64: 1, 256>}, {pipeline_mode = #tpu.pipeline_mode<synchronous>, transform_indices = @transform_9, window_bounds = array<i64: 256, 128>}, {pipeline_mode = #tpu.pipeline_mode<synchronous>, transform_indices = @transform_10, window_bounds = array<i64: 1, 128>}, {transform_indices = @transform_11, window_bounds = array<i64: 16, 128>}]} {
    %cst = arith.constant 0.000000e+00 : bf16
    %0 = vector.broadcast %cst : bf16 to vector<16x128xbf16>
    %c0 = arith.constant 0 : index
    %c0_0 = arith.constant 0 : index
    %c0_1 = arith.constant 0 : index
    %c0_2 = arith.constant 0 : index
    %1 = vector.load %arg13[%c0, %c0_0, %c0_1, %c0_2] : memref<2x10x16x128xbf16, #tpu.memory_space<vmem>>, vector<1x1x16x128xbf16>
    %2 = vector.shape_cast %1 : vector<1x1x16x128xbf16> to vector<16x128xbf16>
    %3 = vector.shape_cast %0 : vector<16x128xbf16> to vector<1x1x16x128xbf16>
    tpu.vector_store %arg13[%c0, %c0_0, %c0_1, %c0_2], %3 {strides = array<i32>} : memref<2x10x16x128xbf16, #tpu.memory_space<vmem>>, vector<1x1x16x128xbf16>,
    %c1 = arith.constant 1 : index
    %c0_3 = arith.constant 0 : index
    %c0_4 = arith.constant 0 : index
    %c0_5 = arith.constant 0 : index
    %4 = vector.load %arg13[%c1, %c0_3, %c0_4, %c0_5] : memref<2x10x16x128xbf16, #tpu.memory_space<vmem>>, vector<1x1x16x128xbf16>
    %5 = vector.shape_cast %4 : vector<1x1x16x128xbf16> to vector<16x128xbf16>
    %6 = vector.shape_cast %0 : vector<16x128xbf16> to vector<1x1x16x128xbf16>
    tpu.vector_store %arg13[%c1, %c0_3, %c0_4, %c0_5], %6 {strides = array<i32>} : memref<2x10x16x128xbf16, #tpu.memory_space<vmem>>, vector<1x1x16x128xbf16>,
    %c0_6 = arith.constant 0 : index
    %c9 = arith.constant 9 : index
    %c0_7 = arith.constant 0 : index
    %c0_8 = arith.constant 0 : index
    %7 = vector.load %arg13[%c0_6, %c9, %c0_7, %c0_8] : memref<2x10x16x128xbf16, #tpu.memory_space<vmem>>, vector<1x1x16x128xbf16>
    %8 = vector.shape_cast %7 : vector<1x1x16x128xbf16> to vector<16x128xbf16>
    %9 = vector.shape_cast %0 : vector<16x128xbf16> to vector<1x1x16x128xbf16>
    tpu.vector_store %arg13[%c0_6, %c9, %c0_7, %c0_8], %9 {strides = array<i32>} : memref<2x10x16x128xbf16, #tpu.memory_space<vmem>>, vector<1x1x16x128xbf16>,
    %c1_9 = arith.constant 1 : index
    %c9_10 = arith.constant 9 : index
    %c0_11 = arith.constant 0 : index
    %c0_12 = arith.constant 0 : index
    %10 = vector.load %arg13[%c1_9, %c9_10, %c0_11, %c0_12] : memref<2x10x16x128xbf16, #tpu.memory_space<vmem>>, vector<1x1x16x128xbf16>
    %11 = vector.shape_cast %10 : vector<1x1x16x128xbf16> to vector<16x128xbf16>
    %12 = vector.shape_cast %0 : vector<16x128xbf16> to vector<1x1x16x128xbf16>
    tpu.vector_store %arg13[%c1_9, %c9_10, %c0_11, %c0_12], %12 {strides = array<i32>} : memref<2x10x16x128xbf16, #tpu.memory_space<vmem>>, vector<1x1x16x128xbf16>,
    %cst_13 = arith.constant 0.000000e+00 : f32
    %13 = vector.broadcast %cst_13 : f32 to vector<128x128xf32>
    %c0_14 = arith.constant 0 : index
    %c0_15 = arith.constant 0 : index
    %c0_16 = arith.constant 0 : index
    %c0_17 = arith.constant 0 : index
    %c0_18 = arith.constant 0 : index
    %14 = vector.load %arg1[%c0_14, %c0_15, %c0_16, %c0_17, %c0_18] : memref<1x4x9x16x128xbf16, #tpu.memory_space<vmem>>, vector<1x1x8x16x128xbf16>
    %15 = vector.shape_cast %14 : vector<1x1x8x16x128xbf16> to vector<8x16x128xbf16>
    %16 = vector.shape_cast %15 : vector<8x16x128xbf16> to vector<128x128xbf16>
    %c0_19 = arith.constant 0 : index
    %c0_20 = arith.constant 0 : index
    %c0_21 = arith.constant 0 : index
    %17 = vector.load %arg2[%c0_19, %c0_20, %c0_21] : memref<5x128x128xbf16, #tpu.memory_space<vmem>>, vector<1x128x128xbf16>
    %18 = vector.shape_cast %17 : vector<1x128x128xbf16> to vector<128x128xbf16>
    %cst_22 = arith.constant dense<0.000000e+00> : vector<128x128xf32>
    %19 = tpu.matmul %16, %18, %cst_22 {dimension_numbers = #tpu.dot_dimension_numbers<[1], [0], [0], [1], [0, 0, 1, 1], [], []>} : vector<128x128xbf16>, vector<128x128xbf16>, vector<128x128xf32> -> vector<128x128xf32>
    %20 = arith.addf %13, %19 : vector<128x128xf32>
    %c0_23 = arith.constant 0 : index
    %c1_24 = arith.constant 1 : index
    %c0_25 = arith.constant 0 : index
    %c0_26 = arith.constant 0 : index
    %c0_27 = arith.constant 0 : index
    %21 = vector.load %arg1[%c0_23, %c1_24, %c0_25, %c0_26, %c0_27] : memref<1x4x9x16x128xbf16, #tpu.memory_space<vmem>>, vector<1x1x8x16x128xbf16>
    %22 = vector.shape_cast %21 : vector<1x1x8x16x128xbf16> to vector<8x16x128xbf16>
    %23 = vector.shape_cast %22 : vector<8x16x128xbf16> to vector<128x128xbf16>
    %c1_28 = arith.constant 1 : index
    %c0_29 = arith.constant 0 : index
    %c0_30 = arith.constant 0 : index
    %24 = vector.load %arg2[%c1_28, %c0_29, %c0_30] : memref<5x128x128xbf16, #tpu.memory_space<vmem>>, vector<1x128x128xbf16>
    %25 = vector.shape_cast %24 : vector<1x128x128xbf16> to vector<128x128xbf16>
    %cst_31 = arith.constant dense<0.000000e+00> : vector<128x128xf32>
    %26 = tpu.matmul %23, %25, %cst_31 {dimension_numbers = #tpu.dot_dimension_numbers<[1], [0], [0], [1], [0, 0, 1, 1], [], []>} : vector<128x128xbf16>, vector<128x128xbf16>, vector<128x128xf32> -> vector<128x128xf32>
    %27 = arith.addf %20, %26 : vector<128x128xf32>
    %c0_32 = arith.constant 0 : index
    %c2 = arith.constant 2 : index
    %c0_33 = arith.constant 0 : index
    %c0_34 = arith.constant 0 : index
    %c0_35 = arith.constant 0 : index
    %28 = vector.load %arg1[%c0_32, %c2, %c0_33, %c0_34, %c0_35] : memref<1x4x9x16x128xbf16, #tpu.memory_space<vmem>>, vector<1x1x8x16x128xbf16>
    %29 = vector.shape_cast %28 : vector<1x1x8x16x128xbf16> to vector<8x16x128xbf16>
    %30 = vector.shape_cast %29 : vector<8x16x128xbf16> to vector<128x128xbf16>
    %c2_36 = arith.constant 2 : index
    %c0_37 = arith.constant 0 : index
    %c0_38 = arith.constant 0 : index
    %31 = vector.load %arg2[%c2_36, %c0_37, %c0_38] : memref<5x128x128xbf16, #tpu.memory_space<vmem>>, vector<1x128x128xbf16>
    %32 = vector.shape_cast %31 : vector<1x128x128xbf16> to vector<128x128xbf16>
    %cst_39 = arith.constant dense<0.000000e+00> : vector<128x128xf32>
    %33 = tpu.matmul %30, %32, %cst_39 {dimension_numbers = #tpu.dot_dimension_numbers<[1], [0], [0], [1], [0, 0, 1, 1], [], []>} : vector<128x128xbf16>, vector<128x128xbf16>, vector<128x128xf32> -> vector<128x128xf32>
    %34 = arith.addf %27, %33 : vector<128x128xf32>
    %c0_40 = arith.constant 0 : index
    %c3 = arith.constant 3 : index
    %c0_41 = arith.constant 0 : index
    %c0_42 = arith.constant 0 : index
    %c0_43 = arith.constant 0 : index
    %35 = vector.load %arg1[%c0_40, %c3, %c0_41, %c0_42, %c0_43] : memref<1x4x9x16x128xbf16, #tpu.memory_space<vmem>>, vector<1x1x8x16x128xbf16>
    %36 = vector.shape_cast %35 : vector<1x1x8x16x128xbf16> to vector<8x16x128xbf16>
    %37 = vector.shape_cast %36 : vector<8x16x128xbf16> to vector<128x128xbf16>
    %c3_44 = arith.constant 3 : index
    %c0_45 = arith.constant 0 : index
    %c0_46 = arith.constant 0 : index
    %38 = vector.load %arg2[%c3_44, %c0_45, %c0_46] : memref<5x128x128xbf16, #tpu.memory_space<vmem>>, vector<1x128x128xbf16>
    %39 = vector.shape_cast %38 : vector<1x128x128xbf16> to vector<128x128xbf16>
    %cst_47 = arith.constant dense<0.000000e+00> : vector<128x128xf32>
    %40 = tpu.matmul %37, %39, %cst_47 {dimension_numbers = #tpu.dot_dimension_numbers<[1], [0], [0], [1], [0, 0, 1, 1], [], []>} : vector<128x128xbf16>, vector<128x128xbf16>, vector<128x128xf32> -> vector<128x128xf32>
    %41 = arith.addf %34, %40 : vector<128x128xf32>
    %c0_48 = arith.constant 0 : index
    %c0_49 = arith.constant 0 : index
    %c1_50 = arith.constant 1 : index
    %c0_51 = arith.constant 0 : index
    %c0_52 = arith.constant 0 : index
    %42 = vector.load %arg1[%c0_48, %c0_49, %c1_50, %c0_51, %c0_52] : memref<1x4x9x16x128xbf16, #tpu.memory_space<vmem>>, vector<1x1x8x16x128xbf16>
    %43 = vector.shape_cast %42 : vector<1x1x8x16x128xbf16> to vector<8x16x128xbf16>
    %44 = vector.shape_cast %43 : vector<8x16x128xbf16> to vector<128x128xbf16>
    %c4 = arith.constant 4 : index
    %c0_53 = arith.constant 0 : index
    %c0_54 = arith.constant 0 : index
    %45 = vector.load %arg2[%c4, %c0_53, %c0_54] : memref<5x128x128xbf16, #tpu.memory_space<vmem>>, vector<1x128x128xbf16>
    %46 = vector.shape_cast %45 : vector<1x128x128xbf16> to vector<128x128xbf16>
    %cst_55 = arith.constant dense<0.000000e+00> : vector<128x128xf32>
    %47 = tpu.matmul %44, %46, %cst_55 {dimension_numbers = #tpu.dot_dimension_numbers<[1], [0], [0], [1], [0, 0, 1, 1], [], []>} : vector<128x128xbf16>, vector<128x128xbf16>, vector<128x128xf32> -> vector<128x128xf32>
    %48 = arith.addf %41, %47 : vector<128x128xf32>
    %c0_56 = arith.constant 0 : index
    %c0_57 = arith.constant 0 : index
    %49 = vector.load %arg3[%c0_56, %c0_57] : memref<1x128xf32, #tpu.memory_space<vmem>>, vector<1x128xf32>
    %50 = vector.broadcast %49 : vector<1x128xf32> to vector<128x128xf32>
    %51 = arith.addf %48, %50 : vector<128x128xf32>
    %cst_58 = arith.constant 0.000000e+00 : f32
    %52 = vector.broadcast %cst_58 : f32 to vector<128x128xf32>
    %53 = arith.maximumf %51, %52 : vector<128x128xf32>
    %54 = vector.shape_cast %53 : vector<128x128xf32> to vector<8x16x128xf32>
    %55 = arith.truncf %54 : vector<8x16x128xf32> to vector<8x16x128xbf16>
    %c0_59 = arith.constant 0 : index
    %c1_60 = arith.constant 1 : index
    %c0_61 = arith.constant 0 : index
    %c0_62 = arith.constant 0 : index
    %56 = vector.load %arg13[%c0_59, %c1_60, %c0_61, %c0_62] : memref<2x10x16x128xbf16, #tpu.memory_space<vmem>>, vector<1x8x16x128xbf16>
    %57 = vector.shape_cast %56 : vector<1x8x16x128xbf16> to vector<8x16x128xbf16>
    %58 = vector.shape_cast %55 : vector<8x16x128xbf16> to vector<1x8x16x128xbf16>
    tpu.vector_store %arg13[%c0_59, %c1_60, %c0_61, %c0_62], %58 {strides = array<i32>} : memref<2x10x16x128xbf16, #tpu.memory_space<vmem>>, vector<1x8x16x128xbf16>,
    %cst_63 = arith.constant 0.000000e+00 : f32
    %59 = vector.broadcast %cst_63 : f32 to vector<128x128xf32>
    %c0_64 = arith.constant 0 : index
    %c2_65 = arith.constant 2 : index
    %c0_66 = arith.constant 0 : index
    %c0_67 = arith.constant 0 : index
    %c0_68 = arith.constant 0 : index
    %60 = vector.load %arg1[%c0_64, %c2_65, %c0_66, %c0_67, %c0_68] : memref<1x4x9x16x128xbf16, #tpu.memory_space<vmem>>, vector<1x1x8x16x128xbf16>
    %61 = vector.shape_cast %60 : vector<1x1x8x16x128xbf16> to vector<8x16x128xbf16>
    %62 = vector.shape_cast %61 : vector<8x16x128xbf16> to vector<128x128xbf16>
    %c0_69 = arith.constant 0 : index
    %c0_70 = arith.constant 0 : index
    %c0_71 = arith.constant 0 : index
    %63 = vector.load %arg2[%c0_69, %c0_70, %c0_71] : memref<5x128x128xbf16, #tpu.memory_space<vmem>>, vector<1x128x128xbf16>
    %64 = vector.shape_cast %63 : vector<1x128x128xbf16> to vector<128x128xbf16>
    %cst_72 = arith.constant dense<0.000000e+00> : vector<128x128xf32>
    %65 = tpu.matmul %62, %64, %cst_72 {dimension_numbers = #tpu.dot_dimension_numbers<[1], [0], [0], [1], [0, 0, 1, 1], [], []>} : vector<128x128xbf16>, vector<128x128xbf16>, vector<128x128xf32> -> vector<128x128xf32>
    %66 = arith.addf %59, %65 : vector<128x128xf32>
    %c0_73 = arith.constant 0 : index
    %c3_74 = arith.constant 3 : index
    %c0_75 = arith.constant 0 : index
    %c0_76 = arith.constant 0 : index
    %c0_77 = arith.constant 0 : index
    %67 = vector.load %arg1[%c0_73, %c3_74, %c0_75, %c0_76, %c0_77] : memref<1x4x9x16x128xbf16, #tpu.memory_space<vmem>>, vector<1x1x8x16x128xbf16>
    %68 = vector.shape_cast %67 : vector<1x1x8x16x128xbf16> to vector<8x16x128xbf16>
    %69 = vector.shape_cast %68 : vector<8x16x128xbf16> to vector<128x128xbf16>
    %c1_78 = arith.constant 1 : index
    %c0_79 = arith.constant 0 : index
    %c0_80 = arith.constant 0 : index
    %70 = vector.load %arg2[%c1_78, %c0_79, %c0_80] : memref<5x128x128xbf16, #tpu.memory_space<vmem>>, vector<1x128x128xbf16>
    %71 = vector.shape_cast %70 : vector<1x128x128xbf16> to vector<128x128xbf16>
    %cst_81 = arith.constant dense<0.000000e+00> : vector<128x128xf32>
    %72 = tpu.matmul %69, %71, %cst_81 {dimension_numbers = #tpu.dot_dimension_numbers<[1], [0], [0], [1], [0, 0, 1, 1], [], []>} : vector<128x128xbf16>, vector<128x128xbf16>, vector<128x128xf32> -> vector<128x128xf32>
    %73 = arith.addf %66, %72 : vector<128x128xf32>
    %c0_82 = arith.constant 0 : index
    %c0_83 = arith.constant 0 : index
    %c1_84 = arith.constant 1 : index
    %c0_85 = arith.constant 0 : index
    %c0_86 = arith.constant 0 : index
    %74 = vector.load %arg1[%c0_82, %c0_83, %c1_84, %c0_85, %c0_86] : memref<1x4x9x16x128xbf16, #tpu.memory_space<vmem>>, vector<1x1x8x16x128xbf16>
    %75 = vector.shape_cast %74 : vector<1x1x8x16x128xbf16> to vector<8x16x128xbf16>
    %76 = vector.shape_cast %75 : vector<8x16x128xbf16> to vector<128x128xbf16>
    %c2_87 = arith.constant 2 : index
    %c0_88 = arith.constant 0 : index
    %c0_89 = arith.constant 0 : index
    %77 = vector.load %arg2[%c2_87, %c0_88, %c0_89] : memref<5x128x128xbf16, #tpu.memory_space<vmem>>, vector<1x128x128xbf16>
    %78 = vector.shape_cast %77 : vector<1x128x128xbf16> to vector<128x128xbf16>
    %cst_90 = arith.constant dense<0.000000e+00> : vector<128x128xf32>
    %79 = tpu.matmul %76, %78, %cst_90 {dimension_numbers = #tpu.dot_dimension_numbers<[1], [0], [0], [1], [0, 0, 1, 1], [], []>} : vector<128x128xbf16>, vector<128x128xbf16>, vector<128x128xf32> -> vector<128x128xf32>
    %80 = arith.addf %73, %79 : vector<128x128xf32>
    %c0_91 = arith.constant 0 : index
    %c1_92 = arith.constant 1 : index
    %c1_93 = arith.constant 1 : index
    %c0_94 = arith.constant 0 : index
    %c0_95 = arith.constant 0 : index
    %81 = vector.load %arg1[%c0_91, %c1_92, %c1_93, %c0_94, %c0_95] : memref<1x4x9x16x128xbf16, #tpu.memory_space<vmem>>, vector<1x1x8x16x128xbf16>
    %82 = vector.shape_cast %81 : vector<1x1x8x16x128xbf16> to vector<8x16x128xbf16>
    %83 = vector.shape_cast %82 : vector<8x16x128xbf16> to vector<128x128xbf16>
    %c3_96 = arith.constant 3 : index
    %c0_97 = arith.constant 0 : index
    %c0_98 = arith.constant 0 : index
    %84 = vector.load %arg2[%c3_96, %c0_97, %c0_98] : memref<5x128x128xbf16, #tpu.memory_space<vmem>>, vector<1x128x128xbf16>
    %85 = vector.shape_cast %84 : vector<1x128x128xbf16> to vector<128x128xbf16>
    %cst_99 = arith.constant dense<0.000000e+00> : vector<128x128xf32>
    %86 = tpu.matmul %83, %85, %cst_99 {dimension_numbers = #tpu.dot_dimension_numbers<[1], [0], [0], [1], [0, 0, 1, 1], [], []>} : vector<128x128xbf16>, vector<128x128xbf16>, vector<128x128xf32> -> vector<128x128xf32>
    %87 = arith.addf %80, %86 : vector<128x128xf32>
    %c0_100 = arith.constant 0 : index
    %c2_101 = arith.constant 2 : index
    %c1_102 = arith.constant 1 : index
    %c0_103 = arith.constant 0 : index
    %c0_104 = arith.constant 0 : index
    %88 = vector.load %arg1[%c0_100, %c2_101, %c1_102, %c0_103, %c0_104] : memref<1x4x9x16x128xbf16, #tpu.memory_space<vmem>>, vector<1x1x8x16x128xbf16>
    %89 = vector.shape_cast %88 : vector<1x1x8x16x128xbf16> to vector<8x16x128xbf16>
    %90 = vector.shape_cast %89 : vector<8x16x128xbf16> to vector<128x128xbf16>
    %c4_105 = arith.constant 4 : index
    %c0_106 = arith.constant 0 : index
    %c0_107 = arith.constant 0 : index
    %91 = vector.load %arg2[%c4_105, %c0_106, %c0_107] : memref<5x128x128xbf16, #tpu.memory_space<vmem>>, vector<1x128x128xbf16>
    %92 = vector.shape_cast %91 : vector<1x128x128xbf16> to vector<128x128xbf16>
    %cst_108 = arith.constant dense<0.000000e+00> : vector<128x128xf32>
    %93 = tpu.matmul %90, %92, %cst_108 {dimension_numbers = #tpu.dot_dimension_numbers<[1], [0], [0], [1], [0, 0, 1, 1], [], []>} : vector<128x128xbf16>, vector<128x128xbf16>, vector<128x128xf32> -> vector<128x128xf32>
    %94 = arith.addf %87, %93 : vector<128x128xf32>
    %c0_109 = arith.constant 0 : index
    %c0_110 = arith.constant 0 : index
    %95 = vector.load %arg3[%c0_109, %c0_110] : memref<1x128xf32, #tpu.memory_space<vmem>>, vector<1x128xf32>
    %96 = vector.broadcast %95 : vector<1x128xf32> to vector<128x128xf32>
    %97 = arith.addf %94, %96 : vector<128x128xf32>
    %cst_111 = arith.constant 0.000000e+00 : f32
    %98 = vector.broadcast %cst_111 : f32 to vector<128x128xf32>
    %99 = arith.maximumf %97, %98 : vector<128x128xf32>
    %100 = vector.shape_cast %99 : vector<128x128xf32> to vector<8x16x128xf32>
    %101 = arith.truncf %100 : vector<8x16x128xf32> to vector<8x16x128xbf16>
    %c1_112 = arith.constant 1 : index
    %c1_113 = arith.constant 1 : index
    %c0_114 = arith.constant 0 : index
    %c0_115 = arith.constant 0 : index
    %102 = vector.load %arg13[%c1_112, %c1_113, %c0_114, %c0_115] : memref<2x10x16x128xbf16, #tpu.memory_space<vmem>>, vector<1x8x16x128xbf16>
    %103 = vector.shape_cast %102 : vector<1x8x16x128xbf16> to vector<8x16x128xbf16>
    %104 = vector.shape_cast %101 : vector<8x16x128xbf16> to vector<1x8x16x128xbf16>
    tpu.vector_store %arg13[%c1_112, %c1_113, %c0_114, %c0_115], %104 {strides = array<i32>} : memref<2x10x16x128xbf16, #tpu.memory_space<vmem>>, vector<1x8x16x128xbf16>,
    %cst_116 = arith.constant 0.000000e+00 : f32
    %105 = vector.broadcast %cst_116 : f32 to vector<128x128xf32>
    %c0_117 = arith.constant 0 : index
    %c0_118 = arith.constant 0 : index
    %c0_119 = arith.constant 0 : index
    %c0_120 = arith.constant 0 : index
    %106 = vector.load %arg13[%c0_117, %c0_118, %c0_119, %c0_120] : memref<2x10x16x128xbf16, #tpu.memory_space<vmem>>, vector<1x8x16x128xbf16>
    %107 = vector.shape_cast %106 : vector<1x8x16x128xbf16> to vector<8x16x128xbf16>
    %108 = vector.shape_cast %107 : vector<8x16x128xbf16> to vector<128x128xbf16>
    %c0_121 = arith.constant 0 : index
    %c0_122 = arith.constant 0 : index
    %c0_123 = arith.constant 0 : index
    %109 = vector.load %arg4[%c0_121, %c0_122, %c0_123] : memref<5x128x128xbf16, #tpu.memory_space<vmem>>, vector<1x128x128xbf16>
    %110 = vector.shape_cast %109 : vector<1x128x128xbf16> to vector<128x128xbf16>
    %cst_124 = arith.constant dense<0.000000e+00> : vector<128x128xf32>
    %111 = tpu.matmul %108, %110, %cst_124 {dimension_numbers = #tpu.dot_dimension_numbers<[1], [0], [0], [1], [0, 0, 1, 1], [], []>} : vector<128x128xbf16>, vector<128x128xbf16>, vector<128x128xf32> -> vector<128x128xf32>
    %112 = arith.addf %105, %111 : vector<128x128xf32>
    %c1_125 = arith.constant 1 : index
    %c0_126 = arith.constant 0 : index
    %c0_127 = arith.constant 0 : index
    %c0_128 = arith.constant 0 : index
    %113 = vector.load %arg13[%c1_125, %c0_126, %c0_127, %c0_128] : memref<2x10x16x128xbf16, #tpu.memory_space<vmem>>, vector<1x8x16x128xbf16>
    %114 = vector.shape_cast %113 : vector<1x8x16x128xbf16> to vector<8x16x128xbf16>
    %115 = vector.shape_cast %114 : vector<8x16x128xbf16> to vector<128x128xbf16>
    %c1_129 = arith.constant 1 : index
    %c0_130 = arith.constant 0 : index
    %c0_131 = arith.constant 0 : index
    %116 = vector.load %arg4[%c1_129, %c0_130, %c0_131] : memref<5x128x128xbf16, #tpu.memory_space<vmem>>, vector<1x128x128xbf16>
    %117 = vector.shape_cast %116 : vector<1x128x128xbf16> to vector<128x128xbf16>
    %cst_132 = arith.constant dense<0.000000e+00> : vector<128x128xf32>
    %118 = tpu.matmul %115, %117, %cst_132 {dimension_numbers = #tpu.dot_dimension_numbers<[1], [0], [0], [1], [0, 0, 1, 1], [], []>} : vector<128x128xbf16>, vector<128x128xbf16>, vector<128x128xf32> -> vector<128x128xf32>
    %119 = arith.addf %112, %118 : vector<128x128xf32>
    %c0_133 = arith.constant 0 : index
    %c1_134 = arith.constant 1 : index
    %c0_135 = arith.constant 0 : index
    %c0_136 = arith.constant 0 : index
    %120 = vector.load %arg13[%c0_133, %c1_134, %c0_135, %c0_136] : memref<2x10x16x128xbf16, #tpu.memory_space<vmem>>, vector<1x8x16x128xbf16>
    %121 = vector.shape_cast %120 : vector<1x8x16x128xbf16> to vector<8x16x128xbf16>
    %122 = vector.shape_cast %121 : vector<8x16x128xbf16> to vector<128x128xbf16>
    %c2_137 = arith.constant 2 : index
    %c0_138 = arith.constant 0 : index
    %c0_139 = arith.constant 0 : index
    %123 = vector.load %arg4[%c2_137, %c0_138, %c0_139] : memref<5x128x128xbf16, #tpu.memory_space<vmem>>, vector<1x128x128xbf16>
    %124 = vector.shape_cast %123 : vector<1x128x128xbf16> to vector<128x128xbf16>
    %cst_140 = arith.constant dense<0.000000e+00> : vector<128x128xf32>
    %125 = tpu.matmul %122, %124, %cst_140 {dimension_numbers = #tpu.dot_dimension_numbers<[1], [0], [0], [1], [0, 0, 1, 1], [], []>} : vector<128x128xbf16>, vector<128x128xbf16>, vector<128x128xf32> -> vector<128x128xf32>
    %126 = arith.addf %119, %125 : vector<128x128xf32>
    %c1_141 = arith.constant 1 : index
    %c1_142 = arith.constant 1 : index
    %c0_143 = arith.constant 0 : index
    %c0_144 = arith.constant 0 : index
    %127 = vector.load %arg13[%c1_141, %c1_142, %c0_143, %c0_144] : memref<2x10x16x128xbf16, #tpu.memory_space<vmem>>, vector<1x8x16x128xbf16>
    %128 = vector.shape_cast %127 : vector<1x8x16x128xbf16> to vector<8x16x128xbf16>
    %129 = vector.shape_cast %128 : vector<8x16x128xbf16> to vector<128x128xbf16>
    %c3_145 = arith.constant 3 : index
    %c0_146 = arith.constant 0 : index
    %c0_147 = arith.constant 0 : index
    %130 = vector.load %arg4[%c3_145, %c0_146, %c0_147] : memref<5x128x128xbf16, #tpu.memory_space<vmem>>, vector<1x128x128xbf16>
    %131 = vector.shape_cast %130 : vector<1x128x128xbf16> to vector<128x128xbf16>
    %cst_148 = arith.constant dense<0.000000e+00> : vector<128x128xf32>
    %132 = tpu.matmul %129, %131, %cst_148 {dimension_numbers = #tpu.dot_dimension_numbers<[1], [0], [0], [1], [0, 0, 1, 1], [], []>} : vector<128x128xbf16>, vector<128x128xbf16>, vector<128x128xf32> -> vector<128x128xf32>
    %133 = arith.addf %126, %132 : vector<128x128xf32>
    %c0_149 = arith.constant 0 : index
    %c2_150 = arith.constant 2 : index
    %c0_151 = arith.constant 0 : index
    %c0_152 = arith.constant 0 : index
    %134 = vector.load %arg13[%c0_149, %c2_150, %c0_151, %c0_152] : memref<2x10x16x128xbf16, #tpu.memory_space<vmem>>, vector<1x8x16x128xbf16>
    %135 = vector.shape_cast %134 : vector<1x8x16x128xbf16> to vector<8x16x128xbf16>
    %136 = vector.shape_cast %135 : vector<8x16x128xbf16> to vector<128x128xbf16>
    %c4_153 = arith.constant 4 : index
    %c0_154 = arith.constant 0 : index
    %c0_155 = arith.constant 0 : index
    %137 = vector.load %arg4[%c4_153, %c0_154, %c0_155] : memref<5x128x128xbf16, #tpu.memory_space<vmem>>, vector<1x128x128xbf16>
    %138 = vector.shape_cast %137 : vector<1x128x128xbf16> to vector<128x128xbf16>
    %cst_156 = arith.constant dense<0.000000e+00> : vector<128x128xf32>
    %139 = tpu.matmul %136, %138, %cst_156 {dimension_numbers = #tpu.dot_dimension_numbers<[1], [0], [0], [1], [0, 0, 1, 1], [], []>} : vector<128x128xbf16>, vector<128x128xbf16>, vector<128x128xf32> -> vector<128x128xf32>
    %140 = arith.addf %133, %139 : vector<128x128xf32>
    %c0_157 = arith.constant 0 : index
    %c0_158 = arith.constant 0 : index
    %141 = vector.load %arg5[%c0_157, %c0_158] : memref<1x128xf32, #tpu.memory_space<vmem>>, vector<1x128xf32>
    %142 = vector.broadcast %141 : vector<1x128xf32> to vector<128x128xf32>
    %143 = arith.addf %140, %142 : vector<128x128xf32>
    %cst_159 = arith.constant 0.000000e+00 : f32
    %144 = vector.broadcast %cst_159 : f32 to vector<128x128xf32>
    %145 = arith.maximumf %143, %144 : vector<128x128xf32>
    %146 = vector.shape_cast %145 : vector<128x128xf32> to vector<8x16x128xf32>
    %147 = vector.extract_strided_slice %146 {offsets = [0, 0, 0], sizes = [1, 16, 128], strides = [1, 1, 1]} : vector<8x16x128xf32> to vector<1x16x128xf32>
    %148 = vector.shape_cast %147 : vector<1x16x128xf32> to vector<16x128xf32>
    %149 = arith.truncf %148 : vector<16x128xf32> to vector<16x128xbf16>
    %c0_160 = arith.constant 0 : index
    %c0_161 = arith.constant 0 : index
    %c0_162 = arith.constant 0 : index
    %150 = vector.load %arg14[%c0_160, %c0_161, %c0_162] : memref<4x16x256xbf16, #tpu.memory_space<vmem>>, vector<1x16x128xbf16>
    %151 = vector.shape_cast %150 : vector<1x16x128xbf16> to vector<16x128xbf16>
    %152 = vector.shape_cast %149 : vector<16x128xbf16> to vector<1x16x128xbf16>
    tpu.vector_store %arg14[%c0_160, %c0_161, %c0_162], %152 {strides = array<i32>} : memref<4x16x256xbf16, #tpu.memory_space<vmem>>, vector<1x16x128xbf16>,
    %153 = vector.extract_strided_slice %146 {offsets = [1, 0, 0], sizes = [1, 16, 128], strides = [1, 1, 1]} : vector<8x16x128xf32> to vector<1x16x128xf32>
    %154 = vector.shape_cast %153 : vector<1x16x128xf32> to vector<16x128xf32>
    %155 = arith.truncf %154 : vector<16x128xf32> to vector<16x128xbf16>
    %c0_163 = arith.constant 0 : index
    %c0_164 = arith.constant 0 : index
    %c128 = arith.constant 128 : index
    %156 = vector.load %arg14[%c0_163, %c0_164, %c128] : memref<4x16x256xbf16, #tpu.memory_space<vmem>>, vector<1x16x128xbf16>
    %157 = vector.shape_cast %156 : vector<1x16x128xbf16> to vector<16x128xbf16>
    %158 = vector.shape_cast %155 : vector<16x128xbf16> to vector<1x16x128xbf16>
    tpu.vector_store %arg14[%c0_163, %c0_164, %c128], %158 {strides = array<i32>} : memref<4x16x256xbf16, #tpu.memory_space<vmem>>, vector<1x16x128xbf16>,
    %159 = vector.extract_strided_slice %146 {offsets = [2, 0, 0], sizes = [1, 16, 128], strides = [1, 1, 1]} : vector<8x16x128xf32> to vector<1x16x128xf32>
    %160 = vector.shape_cast %159 : vector<1x16x128xf32> to vector<16x128xf32>
    %161 = arith.truncf %160 : vector<16x128xf32> to vector<16x128xbf16>
    %c1_165 = arith.constant 1 : index
    %c0_166 = arith.constant 0 : index
    %c0_167 = arith.constant 0 : index
    %162 = vector.load %arg14[%c1_165, %c0_166, %c0_167] : memref<4x16x256xbf16, #tpu.memory_space<vmem>>, vector<1x16x128xbf16>
    %163 = vector.shape_cast %162 : vector<1x16x128xbf16> to vector<16x128xbf16>
    %164 = vector.shape_cast %161 : vector<16x128xbf16> to vector<1x16x128xbf16>
    tpu.vector_store %arg14[%c1_165, %c0_166, %c0_167], %164 {strides = array<i32>} : memref<4x16x256xbf16, #tpu.memory_space<vmem>>, vector<1x16x128xbf16>,
    %165 = vector.extract_strided_slice %146 {offsets = [3, 0, 0], sizes = [1, 16, 128], strides = [1, 1, 1]} : vector<8x16x128xf32> to vector<1x16x128xf32>
    %166 = vector.shape_cast %165 : vector<1x16x128xf32> to vector<16x128xf32>
    %167 = arith.truncf %166 : vector<16x128xf32> to vector<16x128xbf16>
    %c1_168 = arith.constant 1 : index
    %c0_169 = arith.constant 0 : index
    %c128_170 = arith.constant 128 : index
    %168 = vector.load %arg14[%c1_168, %c0_169, %c128_170] : memref<4x16x256xbf16, #tpu.memory_space<vmem>>, vector<1x16x128xbf16>
    %169 = vector.shape_cast %168 : vector<1x16x128xbf16> to vector<16x128xbf16>
    %170 = vector.shape_cast %167 : vector<16x128xbf16> to vector<1x16x128xbf16>
    tpu.vector_store %arg14[%c1_168, %c0_169, %c128_170], %170 {strides = array<i32>} : memref<4x16x256xbf16, #tpu.memory_space<vmem>>, vector<1x16x128xbf16>,
    %171 = vector.extract_strided_slice %146 {offsets = [4, 0, 0], sizes = [1, 16, 128], strides = [1, 1, 1]} : vector<8x16x128xf32> to vector<1x16x128xf32>
    %172 = vector.shape_cast %171 : vector<1x16x128xf32> to vector<16x128xf32>
    %173 = arith.truncf %172 : vector<16x128xf32> to vector<16x128xbf16>
    %c2_171 = arith.constant 2 : index
    %c0_172 = arith.constant 0 : index
    %c0_173 = arith.constant 0 : index
    %174 = vector.load %arg14[%c2_171, %c0_172, %c0_173] : memref<4x16x256xbf16, #tpu.memory_space<vmem>>, vector<1x16x128xbf16>
    %175 = vector.shape_cast %174 : vector<1x16x128xbf16> to vector<16x128xbf16>
    %176 = vector.shape_cast %173 : vector<16x128xbf16> to vector<1x16x128xbf16>
    tpu.vector_store %arg14[%c2_171, %c0_172, %c0_173], %176 {strides = array<i32>} : memref<4x16x256xbf16, #tpu.memory_space<vmem>>, vector<1x16x128xbf16>,
    %177 = vector.extract_strided_slice %146 {offsets = [5, 0, 0], sizes = [1, 16, 128], strides = [1, 1, 1]} : vector<8x16x128xf32> to vector<1x16x128xf32>
    %178 = vector.shape_cast %177 : vector<1x16x128xf32> to vector<16x128xf32>
    %179 = arith.truncf %178 : vector<16x128xf32> to vector<16x128xbf16>
    %c2_174 = arith.constant 2 : index
    %c0_175 = arith.constant 0 : index
    %c128_176 = arith.constant 128 : index
    %180 = vector.load %arg14[%c2_174, %c0_175, %c128_176] : memref<4x16x256xbf16, #tpu.memory_space<vmem>>, vector<1x16x128xbf16>
    %181 = vector.shape_cast %180 : vector<1x16x128xbf16> to vector<16x128xbf16>
    %182 = vector.shape_cast %179 : vector<16x128xbf16> to vector<1x16x128xbf16>
    tpu.vector_store %arg14[%c2_174, %c0_175, %c128_176], %182 {strides = array<i32>} : memref<4x16x256xbf16, #tpu.memory_space<vmem>>, vector<1x16x128xbf16>,
    %183 = vector.extract_strided_slice %146 {offsets = [6, 0, 0], sizes = [1, 16, 128], strides = [1, 1, 1]} : vector<8x16x128xf32> to vector<1x16x128xf32>
    %184 = vector.shape_cast %183 : vector<1x16x128xf32> to vector<16x128xf32>
    %185 = arith.truncf %184 : vector<16x128xf32> to vector<16x128xbf16>
    %c3_177 = arith.constant 3 : index
    %c0_178 = arith.constant 0 : index
    %c0_179 = arith.constant 0 : index
    %186 = vector.load %arg14[%c3_177, %c0_178, %c0_179] : memref<4x16x256xbf16, #tpu.memory_space<vmem>>, vector<1x16x128xbf16>
    %187 = vector.shape_cast %186 : vector<1x16x128xbf16> to vector<16x128xbf16>
    %188 = vector.shape_cast %185 : vector<16x128xbf16> to vector<1x16x128xbf16>
    tpu.vector_store %arg14[%c3_177, %c0_178, %c0_179], %188 {strides = array<i32>} : memref<4x16x256xbf16, #tpu.memory_space<vmem>>, vector<1x16x128xbf16>,
    %189 = vector.extract_strided_slice %146 {offsets = [7, 0, 0], sizes = [1, 16, 128], strides = [1, 1, 1]} : vector<8x16x128xf32> to vector<1x16x128xf32>
    %190 = vector.shape_cast %189 : vector<1x16x128xf32> to vector<16x128xf32>
    %191 = arith.truncf %190 : vector<16x128xf32> to vector<16x128xbf16>
    %c3_180 = arith.constant 3 : index
    %c0_181 = arith.constant 0 : index
    %c128_182 = arith.constant 128 : index
    %192 = vector.load %arg14[%c3_180, %c0_181, %c128_182] : memref<4x16x256xbf16, #tpu.memory_space<vmem>>, vector<1x16x128xbf16>
    %193 = vector.shape_cast %192 : vector<1x16x128xbf16> to vector<16x128xbf16>
    %194 = vector.shape_cast %191 : vector<16x128xbf16> to vector<1x16x128xbf16>
    tpu.vector_store %arg14[%c3_180, %c0_181, %c128_182], %194 {strides = array<i32>} : memref<4x16x256xbf16, #tpu.memory_space<vmem>>, vector<1x16x128xbf16>,
    %cst_183 = arith.constant 0.000000e+00 : f32
    %195 = vector.broadcast %cst_183 : f32 to vector<16x512xf32>
    %c0_184 = arith.constant 0 : index
    %c0_185 = arith.constant 0 : index
    %c0_186 = arith.constant 0 : index
    %196 = vector.load %arg14[%c0_184, %c0_185, %c0_186] : memref<4x16x256xbf16, #tpu.memory_space<vmem>>, vector<1x16x256xbf16>
    %197 = vector.shape_cast %196 : vector<1x16x256xbf16> to vector<16x256xbf16>
    %c0_187 = arith.constant 0 : index
    %c0_188 = arith.constant 0 : index
    %c0_189 = arith.constant 0 : index
    %198 = vector.load %arg6[%c0_187, %c0_188, %c0_189] : memref<4x256x512xbf16, #tpu.memory_space<vmem>>, vector<1x256x512xbf16>
    %199 = vector.shape_cast %198 : vector<1x256x512xbf16> to vector<256x512xbf16>
    %cst_190 = arith.constant dense<0.000000e+00> : vector<16x512xf32>
    %200 = tpu.matmul %197, %199, %cst_190 {dimension_numbers = #tpu.dot_dimension_numbers<[1], [0], [0], [1], [0, 0, 1, 1], [], []>} : vector<16x256xbf16>, vector<256x512xbf16>, vector<16x512xf32> -> vector<16x512xf32>
    %201 = arith.addf %195, %200 : vector<16x512xf32>
    %c1_191 = arith.constant 1 : index
    %c0_192 = arith.constant 0 : index
    %c0_193 = arith.constant 0 : index
    %202 = vector.load %arg14[%c1_191, %c0_192, %c0_193] : memref<4x16x256xbf16, #tpu.memory_space<vmem>>, vector<1x16x256xbf16>
    %203 = vector.shape_cast %202 : vector<1x16x256xbf16> to vector<16x256xbf16>
    %c1_194 = arith.constant 1 : index
    %c0_195 = arith.constant 0 : index
    %c0_196 = arith.constant 0 : index
    %204 = vector.load %arg6[%c1_194, %c0_195, %c0_196] : memref<4x256x512xbf16, #tpu.memory_space<vmem>>, vector<1x256x512xbf16>
    %205 = vector.shape_cast %204 : vector<1x256x512xbf16> to vector<256x512xbf16>
    %cst_197 = arith.constant dense<0.000000e+00> : vector<16x512xf32>
    %206 = tpu.matmul %203, %205, %cst_197 {dimension_numbers = #tpu.dot_dimension_numbers<[1], [0], [0], [1], [0, 0, 1, 1], [], []>} : vector<16x256xbf16>, vector<256x512xbf16>, vector<16x512xf32> -> vector<16x512xf32>
    %207 = arith.addf %201, %206 : vector<16x512xf32>
    %c2_198 = arith.constant 2 : index
    %c0_199 = arith.constant 0 : index
    %c0_200 = arith.constant 0 : index
    %208 = vector.load %arg14[%c2_198, %c0_199, %c0_200] : memref<4x16x256xbf16, #tpu.memory_space<vmem>>, vector<1x16x256xbf16>
    %209 = vector.shape_cast %208 : vector<1x16x256xbf16> to vector<16x256xbf16>
    %c2_201 = arith.constant 2 : index
    %c0_202 = arith.constant 0 : index
    %c0_203 = arith.constant 0 : index
    %210 = vector.load %arg6[%c2_201, %c0_202, %c0_203] : memref<4x256x512xbf16, #tpu.memory_space<vmem>>, vector<1x256x512xbf16>
    %211 = vector.shape_cast %210 : vector<1x256x512xbf16> to vector<256x512xbf16>
    %cst_204 = arith.constant dense<0.000000e+00> : vector<16x512xf32>
    %212 = tpu.matmul %209, %211, %cst_204 {dimension_numbers = #tpu.dot_dimension_numbers<[1], [0], [0], [1], [0, 0, 1, 1], [], []>} : vector<16x256xbf16>, vector<256x512xbf16>, vector<16x512xf32> -> vector<16x512xf32>
    %213 = arith.addf %207, %212 : vector<16x512xf32>
    %c3_205 = arith.constant 3 : index
    %c0_206 = arith.constant 0 : index
    %c0_207 = arith.constant 0 : index
    %214 = vector.load %arg14[%c3_205, %c0_206, %c0_207] : memref<4x16x256xbf16, #tpu.memory_space<vmem>>, vector<1x16x256xbf16>
    %215 = vector.shape_cast %214 : vector<1x16x256xbf16> to vector<16x256xbf16>
    %c3_208 = arith.constant 3 : index
    %c0_209 = arith.constant 0 : index
    %c0_210 = arith.constant 0 : index
    %216 = vector.load %arg6[%c3_208, %c0_209, %c0_210] : memref<4x256x512xbf16, #tpu.memory_space<vmem>>, vector<1x256x512xbf16>
    %217 = vector.shape_cast %216 : vector<1x256x512xbf16> to vector<256x512xbf16>
    %cst_211 = arith.constant dense<0.000000e+00> : vector<16x512xf32>
    %218 = tpu.matmul %215, %217, %cst_211 {dimension_numbers = #tpu.dot_dimension_numbers<[1], [0], [0], [1], [0, 0, 1, 1], [], []>} : vector<16x256xbf16>, vector<256x512xbf16>, vector<16x512xf32> -> vector<16x512xf32>
    %219 = arith.addf %213, %218 : vector<16x512xf32>
    %c0_212 = arith.constant 0 : index
    %c0_213 = arith.constant 0 : index
    %220 = vector.load %arg7[%c0_212, %c0_213] : memref<1x512xf32, #tpu.memory_space<vmem>>, vector<1x512xf32>
    %221 = vector.broadcast %220 : vector<1x512xf32> to vector<16x512xf32>
    %222 = arith.addf %219, %221 : vector<16x512xf32>
    %cst_214 = arith.constant 0.000000e+00 : f32
    %223 = vector.broadcast %cst_214 : f32 to vector<16x512xf32>
    %224 = arith.maximumf %222, %223 : vector<16x512xf32>
    %225 = arith.truncf %224 : vector<16x512xf32> to vector<16x512xbf16>
    %c0_215 = arith.constant 0 : index
    %c0_216 = arith.constant 0 : index
    %226 = vector.load %arg8[%c0_215, %c0_216] : memref<512x256xbf16, #tpu.memory_space<vmem>>, vector<512x256xbf16>
    %cst_217 = arith.constant dense<0.000000e+00> : vector<16x256xf32>
    %227 = tpu.matmul %225, %226, %cst_217 {dimension_numbers = #tpu.dot_dimension_numbers<[1], [0], [0], [1], [0, 0, 1, 1], [], []>} : vector<16x512xbf16>, vector<512x256xbf16>, vector<16x256xf32> -> vector<16x256xf32>
    %c0_218 = arith.constant 0 : index
    %c0_219 = arith.constant 0 : index
    %228 = vector.load %arg9[%c0_218, %c0_219] : memref<1x256xf32, #tpu.memory_space<vmem>>, vector<1x256xf32>
    %229 = vector.broadcast %228 : vector<1x256xf32> to vector<16x256xf32>
    %230 = arith.addf %227, %229 : vector<16x256xf32>
    %cst_220 = arith.constant 0.000000e+00 : f32
    %231 = vector.broadcast %cst_220 : f32 to vector<16x256xf32>
    %232 = arith.maximumf %230, %231 : vector<16x256xf32>
    %233 = arith.truncf %232 : vector<16x256xf32> to vector<16x256xbf16>
    %c0_221 = arith.constant 0 : index
    %c0_222 = arith.constant 0 : index
    %234 = vector.load %arg10[%c0_221, %c0_222] : memref<256x128xbf16, #tpu.memory_space<vmem>>, vector<256x128xbf16>
    %cst_223 = arith.constant dense<0.000000e+00> : vector<16x128xf32>
    %235 = tpu.matmul %233, %234, %cst_223 {dimension_numbers = #tpu.dot_dimension_numbers<[1], [0], [0], [1], [0, 0, 1, 1], [], []>} : vector<16x256xbf16>, vector<256x128xbf16>, vector<16x128xf32> -> vector<16x128xf32>
    %c0_224 = arith.constant 0 : index
    %c0_225 = arith.constant 0 : index
    %236 = vector.load %arg11[%c0_224, %c0_225] : memref<1x128xf32, #tpu.memory_space<vmem>>, vector<1x128xf32>
    %237 = vector.broadcast %236 : vector<1x128xf32> to vector<16x128xf32>
    %238 = arith.addf %235, %237 : vector<16x128xf32>
    %cst_226 = arith.constant dense<0xFF800000> : vector<16xf32>
    %239 = vector.multi_reduction <maximumf>, %238, %cst_226 [1] : vector<16x128xf32> to vector<16xf32>
    %240 = vector.shape_cast %239 : vector<16xf32> to vector<16x1xf32>
    %241 = vector.broadcast %240 : vector<16x1xf32> to vector<16x128xf32>
    %242 = arith.subf %238, %241 : vector<16x128xf32>
    %243 = math.exp %242 : vector<16x128xf32>
    %cst_227 = arith.constant dense<0.000000e+00> : vector<16xf32>
    %244 = vector.multi_reduction <add>, %243, %cst_227 [1] : vector<16x128xf32> to vector<16xf32>
    %245 = vector.shape_cast %244 : vector<16xf32> to vector<16x1xf32>
    %246 = math.log %245 : vector<16x1xf32>
    %247 = vector.broadcast %246 : vector<16x1xf32> to vector<16x128xf32>
    %248 = arith.subf %242, %247 : vector<16x128xf32>
    %c0_228 = arith.constant 0 : index
    %c0_229 = arith.constant 0 : index
    %249 = vector.load %arg12[%c0_228, %c0_229] : memref<16x128xf32, #tpu.memory_space<vmem>>, vector<16x128xf32>
    tpu.vector_store %arg12[%c0_228, %c0_229], %248 {strides = array<i32>} : memref<16x128xf32, #tpu.memory_space<vmem>>, vector<16x128xf32>,
    return
  }
  func.func @transform_0(%arg0: i32) -> (i32, i32, i32, i32, i32) {
    %c0_i32 = arith.constant 0 : i32
    %c0_i32_0 = arith.constant 0 : i32
    %c0_i32_1 = arith.constant 0 : i32
    %c0_i32_2 = arith.constant 0 : i32
    %c0_i32_3 = arith.constant 0 : i32
    return %arg0, %c0_i32, %c0_i32_0, %c0_i32_1, %c0_i32_2 : i32, i32, i32, i32, i32
  }
  func.func @transform_1(%arg0: i32) -> (i32, i32, i32) {
    %c0_i32 = arith.constant 0 : i32
    %c0_i32_0 = arith.constant 0 : i32
    %c0_i32_1 = arith.constant 0 : i32
    %c0_i32_2 = arith.constant 0 : i32
    return %c0_i32, %c0_i32_0, %c0_i32_1 : i32, i32, i32
  }
  func.func @transform_2(%arg0: i32) -> (i32, i32) {
    %c0_i32 = arith.constant 0 : i32
    %c0_i32_0 = arith.constant 0 : i32
    %c0_i32_1 = arith.constant 0 : i32
    return %c0_i32, %c0_i32_0 : i32, i32
  }
  func.func @transform_3(%arg0: i32) -> (i32, i32, i32) {
    %c0_i32 = arith.constant 0 : i32
    %c0_i32_0 = arith.constant 0 : i32
    %c0_i32_1 = arith.constant 0 : i32
    %c0_i32_2 = arith.constant 0 : i32
    return %c0_i32, %c0_i32_0, %c0_i32_1 : i32, i32, i32
  }
  func.func @transform_4(%arg0: i32) -> (i32, i32) {
    %c0_i32 = arith.constant 0 : i32
    %c0_i32_0 = arith.constant 0 : i32
    %c0_i32_1 = arith.constant 0 : i32
    return %c0_i32, %c0_i32_0 : i32, i32
  }
  func.func @transform_5(%arg0: i32) -> (i32, i32, i32) {
    %c0_i32 = arith.constant 0 : i32
    %c0_i32_0 = arith.constant 0 : i32
    %c0_i32_1 = arith.constant 0 : i32
    %c0_i32_2 = arith.constant 0 : i32
    return %c0_i32, %c0_i32_0, %c0_i32_1 : i32, i32, i32
  }
  func.func @transform_6(%arg0: i32) -> (i32, i32) {
    %c0_i32 = arith.constant 0 : i32
    %c0_i32_0 = arith.constant 0 : i32
    %c0_i32_1 = arith.constant 0 : i32
    return %c0_i32, %c0_i32_0 : i32, i32
  }
  func.func @transform_7(%arg0: i32) -> (i32, i32) {
    %c0_i32 = arith.constant 0 : i32
    %c0_i32_0 = arith.constant 0 : i32
    %c0_i32_1 = arith.constant 0 : i32
    return %c0_i32, %c0_i32_0 : i32, i32
  }
  func.func @transform_8(%arg0: i32) -> (i32, i32) {
    %c0_i32 = arith.constant 0 : i32
    %c0_i32_0 = arith.constant 0 : i32
    %c0_i32_1 = arith.constant 0 : i32
    return %c0_i32, %c0_i32_0 : i32, i32
  }
  func.func @transform_9(%arg0: i32) -> (i32, i32) {
    %c0_i32 = arith.constant 0 : i32
    %c0_i32_0 = arith.constant 0 : i32
    %c0_i32_1 = arith.constant 0 : i32
    return %c0_i32, %c0_i32_0 : i32, i32
  }
  func.func @transform_10(%arg0: i32) -> (i32, i32) {
    %c0_i32 = arith.constant 0 : i32
    %c0_i32_0 = arith.constant 0 : i32
    %c0_i32_1 = arith.constant 0 : i32
    return %c0_i32, %c0_i32_0 : i32, i32
  }
  func.func @transform_11(%arg0: i32) -> (i32, i32) {
    %c0_i32 = arith.constant 0 : i32
    %c0_i32_0 = arith.constant 0 : i32
    return %arg0, %c0_i32 : i32, i32
  }
}

</mosaic_0001>

<bundles_post_ra>
// kernel: lenet_forward.1
= control target key start
LH: loop header
LB: loop body
LE: loop exit
PB: predicated region body
PF: predicated region fallthrough
CT: control target
= control target key end

     0   :  { %s10774_s1 = inlined_call_operand.vmem [shape: bf16[5,128,128], index: 1, kind: input, shape index: {}]   ;;  %s10775_s0 = inlined_call_operand.vmem [shape: bf16[1,4,9,16,128], index: 0, kind: input, shape index: {}]   ;;  %s10776_s3 = inlined_call_operand.vmem [shape: bf16[5,128,128], index: 3, kind: input, shape index: {}]   ;;  %s10777_s2 = inlined_call_operand.vmem [shape: f32[1,128], index: 2, kind: input, shape index: {}]   ;;  %s10778_s5 = inlined_call_operand.vmem [shape: bf16[4,256,512], index: 5, kind: input, shape index: {}]   ;;  %s10779_s4 = inlined_call_operand.vmem [shape: f32[1,128], index: 4, kind: input, shape index: {}]   ;;  %s10780_s7 = inlined_call_operand.vmem [shape: bf16[512,256], index: 7, kind: input, shape index: {}]   ;;  %s10781_s6 = inlined_call_operand.vmem [shape: f32[1,512], index: 6, kind: input, shape index: {}]   ;;  %s10782_s9 = inlined_call_operand.vmem [shape: bf16[256,128], index: 9, kind: input, shape index: {}]   ;;  %s10783_s8 = inlined_call_operand.vmem [shape: f32[1,256], index: 8, kind: input, shape index: {}]   ;;  %s10784_s10 = inlined_call_operand.vmem [shape: f32[1,128], index: 10, kind: input, shape index: {}]   ;;  %s10785_s11 = inlined_call_operand.vmem [shape: f32[16,128], index: 11, kind: output, shape index: {}]  }
   0x1   :  { %v8144_v0 = vld [vmem:[%s10774_s1 + $0x40] sm:$0xff]   ;;  %v8146_v2 = vld [vmem:[%s10774_s1 + $0x48] sm:$0xff]   ;;  %v8148_v4 = vld [vmem:[%s10774_s1 + $0x50] sm:$0xff]  }
   0x2   :  { %v8145_v1 = vld [vmem:[%s10774_s1] sm:$0xff]   ;;  %7439 = vmatprep.subr.bf16.mxu0 %v8144_v0  ;;  %v8147_v3 = vld [vmem:[%s10774_s1 + $0x8] sm:$0xff]   ;;  %v8149_v5 = vld [vmem:[%s10774_s1 + $0x10] sm:$0xff]  }
   0x3   :  { %7631 = vmatprep.subr.bf16.mxu1 %v8145_v1  ;;  %7440 = vmatpush3.bf16.msra.mxu0 %v8144_v0  ;;  %v8150_v6 = vld [vmem:[%s10774_s1 + $0x58] sm:$0xff]   ;;  %v8152_v8 = vld [vmem:[%s10774_s1 + $0x60] sm:$0xff]   ;;  %v8154_v10 = vld [vmem:[%s10774_s1 + $0x68] sm:$0xff]  }
   0x4   :  { %7632 = vmatpush3.bf16.msra.mxu1 %v8145_v1  ;;  %7441 = vmatprep.subr.bf16.mxu0 %v8146_v2  ;;  %v8151_v7 = vld [vmem:[%s10774_s1 + $0x18] sm:$0xff]   ;;  %v8153_v9 = vld [vmem:[%s10774_s1 + $0x20] sm:$0xff]   ;;  %v8155_v11 = vld [vmem:[%s10774_s1 + $0x28] sm:$0xff]  }
   0x5   :  { %7633 = vmatprep.subr.bf16.mxu1 %v8147_v3  ;;  %v8160_v12 = vld [vmem:[%s10775_s0 + $0x48] sm:$0xff]   ;;  %v8161_v13 = vld [vmem:[%s10775_s0 + $0x90] sm:$0xff]   ;;  %v8158_v16 = vld [vmem:[%s10774_s1 + $0x78] sm:$0xff]  }
   0x6   :  { %7455 = vmatprep.mubr.bf16.mxu0 %v8160_v12  ;;  %7647 = vmatprep.mubr.bf16.mxu1 %v8161_v13  ;;  %v8156_v14 = vld [vmem:[%s10774_s1 + $0x70] sm:$0xff]   ;;  %v8159_v17 = vld [vmem:[%s10774_s1 + $0x38] sm:$0xff]   ;;  %v8163_v19 = vld [vmem:[%s10774_s1] sm:$0xff]  }
   0x7   :  { %7442 = vmatpush3.bf16.msra.mxu0 %v8146_v2  ;;  %v8157_v15 = vld [vmem:[%s10774_s1 + $0x30] sm:$0xff]   ;;  %v8165_v20 = vld [vmem:[%s10774_s1 + $0x80] sm:$0xff]   ;;  %v8164_v21 = vld [vmem:[%s10775_s0 + $0x98] sm:$0xff]  }
   0x8   :  { %7634 = vmatpush3.bf16.msra.mxu1 %v8147_v3  ;;  %7443 = vmatprep.subr.bf16.mxu0 %v8148_v4  ;;  %v8162_v18 = vld [vmem:[%s10775_s0 + $0x50] sm:$0xff]   ;;  %v8166_v22 = vld [vmem:[%s10774_s1 + $0x8] sm:$0xff]   ;;  %v8168_v24 = vld [vmem:[%s10775_s0 + $0x58] sm:$0xff]  }
   0x9   :  { %7635 = vmatprep.subr.bf16.mxu1 %v8149_v5  ;;  %v8167_v23 = vld [vmem:[%s10774_s1 + $0x88] sm:$0xff]   ;;  %v8169_v25 = vld [vmem:[%s10775_s0 + $0xa0] sm:$0xff]   ;;  %v8171_v27 = vld [vmem:[%s10774_s1 + $0x10] sm:$0xff]  }
   0xa   :  { %v8170_v26 = vld [vmem:[%s10775_s0 + $0x60] sm:$0xff]   ;;  %v8173_v28 = vld [vmem:[%s10774_s1 + $0x90] sm:$0xff]   ;;  %v8172_v29 = vld [vmem:[%s10775_s0 + $0xa8] sm:$0xff]  }
   0xb   :  { %7444 = vmatpush3.bf16.msra.mxu0 %v8148_v4  ;;  %v8174_v30 = vld [vmem:[%s10774_s1 + $0x18] sm:$0xff]   ;;  %v8176_v32 = vld [vmem:[%s10775_s0 + $0x68] sm:$0xff]   ;;  %v8177_v33 = vld [vmem:[%s10775_s0 + $0xb0] sm:$0xff]  }
   0xc   :  { %7636 = vmatpush3.bf16.msra.mxu1 %v8149_v5  ;;  %7445 = vmatprep.subr.bf16.mxu0 %v8150_v6  ;;  %v8175_v31 = vld [vmem:[%s10774_s1 + $0x98] sm:$0xff]   ;;  %v8178_v34 = vld [vmem:[%s10775_s0 + $0x70] sm:$0xff]   ;;  %v8179_v35 = vld [vmem:[%s10774_s1 + $0x20] sm:$0xff]  }
   0xd   :  { %7637 = vmatprep.subr.bf16.mxu1 %v8151_v7  ;;  %v8181_v36 = vld [vmem:[%s10774_s1 + $0xa0] sm:$0xff]   ;;  %v8180_v37 = vld [vmem:[%s10775_s0 + $0xb8] sm:$0xff]   ;;  %v8182_v38 = vld [vmem:[%s10774_s1 + $0x28] sm:$0xff]  }
   0xe   :  { %v8183_v39 = vld [vmem:[%s10774_s1 + $0xa8] sm:$0xff]   ;;  %v8184_v40 = vld [vmem:[%s10775_s0 + $0x78] sm:$0xff]   ;;  %v8185_v41 = vld [vmem:[%s10775_s0 + $0xc0] sm:$0xff]  }
   0xf   :  { %7446 = vmatpush3.bf16.msra.mxu0 %v8150_v6  ;;  %v8186_v42 = vld [vmem:[%s10775_s0 + $0x80] sm:$0xff]   ;;  %v8187_v43 = vld [vmem:[%s10774_s1 + $0x30] sm:$0xff]   ;;  %v8188_v45 = vld [vmem:[%s10775_s0 + $0xc8] sm:$0xff]  }
  0x10   :  { %7638 = vmatpush3.bf16.msra.mxu1 %v8151_v7  ;;  %7447 = vmatprep.subr.bf16.mxu0 %v8152_v8  ;;  %v8189_v44 = vld [vmem:[%s10774_s1 + $0xb0] sm:$0xff]   ;;  %v8190_v46 = vld [vmem:[%s10774_s1 + $0x38] sm:$0xff]   ;;  %v8192_v48 = vld [vmem:[%s10775_s0] sm:$0xff]  }
  0x11   :  { %7639 = vmatprep.subr.bf16.mxu1 %v8153_v9  ;;  %v8191_v47 = vld [vmem:[%s10774_s1 + $0xb8] sm:$0xff]   ;;  %v8193_v49 = vld [vmem:[%s10775_s0 + $0x8] sm:$0xff]   ;;  %v8195_v51 = vld [vmem:[%s10774_s1 + $0x80] sm:$0xff]  }
  0x12   :  { %v8194_v50 = vld [vmem:[%s10775_s0 + $0x8] sm:$0xff]   ;;  %v8197_v52 = vld [vmem:[%s10774_s1 + $0xc0] sm:$0xff]   ;;  %v8196_v53 = vld [vmem:[%s10775_s0 + $0x10] sm:$0xff]  }
  0x13   :  { %7448 = vmatpush3.bf16.msra.mxu0 %v8152_v8  ;;  %v8198_v54 = vld [vmem:[%s10774_s1 + $0x88] sm:$0xff]   ;;  %v8200_v56 = vld [vmem:[%s10775_s0 + $0x10] sm:$0xff]   ;;  %v8201_v57 = vld [vmem:[%s10775_s0 + $0x18] sm:$0xff]  }
  0x14   :  { %7640 = vmatpush3.bf16.msra.mxu1 %v8153_v9  ;;  %7449 = vmatprep.subr.bf16.mxu0 %v8154_v10  ;;  %v8199_v55 = vld [vmem:[%s10774_s1 + $0xc8] sm:$0xff]   ;;  %v8202_v58 = vld [vmem:[%s10775_s0 + $0x18] sm:$0xff]   ;;  %v8203_v59 = vld [vmem:[%s10774_s1 + $0x90] sm:$0xff]  }
  0x15   :  { %7641 = vmatprep.subr.bf16.mxu1 %v8155_v11  ;;  %v8205_v60 = vld [vmem:[%s10774_s1 + $0xd0] sm:$0xff]   ;;  %v8204_v61 = vld [vmem:[%s10775_s0 + $0x20] sm:$0xff]   ;;  %v8206_v62 = vld [vmem:[%s10774_s1 + $0x98] sm:$0xff]  }
  0x16   :  { %v8207_v63 = vld [vmem:[%s10774_s1 + $0xd8] sm:$0xff]   ;;  %v8208_v0 = vld [vmem:[%s10775_s0 + $0x20] sm:$0xff]   ;;  %v8209_v1 = vld [vmem:[%s10775_s0 + $0x28] sm:$0xff]  }
  0x17   :  { %7450 = vmatpush3.bf16.msra.mxu0 %v8154_v10  ;;  %v8210_v2 = vld [vmem:[%s10775_s0 + $0x28] sm:$0xff]   ;;  %v8211_v3 = vld [vmem:[%s10774_s1 + $0xa0] sm:$0xff]   ;;  %v8212_v5 = vld [vmem:[%s10775_s0 + $0x30] sm:$0xff]  }
  0x18   :  { %7642 = vmatpush3.bf16.msra.mxu1 %v8155_v11  ;;  %7451 = vmatprep.subr.bf16.mxu0 %v8156_v14  ;;  %v8213_v4 = vld [vmem:[%s10774_s1 + $0xe0] sm:$0xff]   ;;  %v8214_v6 = vld [vmem:[%s10774_s1 + $0xa8] sm:$0xff]   ;;  %v8216_v8 = vld [vmem:[%s10775_s0 + $0x30] sm:$0xff]  }
  0x19   :  { %7643 = vmatprep.subr.bf16.mxu1 %v8157_v15  ;;  %v8215_v7 = vld [vmem:[%s10774_s1 + $0xe8] sm:$0xff]   ;;  %v8217_v9 = vld [vmem:[%s10775_s0 + $0x38] sm:$0xff]   ;;  %v8219_v11 = vld [vmem:[%s10774_s1 + $0xb0] sm:$0xff]  }
  0x1a   :  { %v8218_v10 = vld [vmem:[%s10775_s0 + $0x38] sm:$0xff]   ;;  %v8221_v12 = vld [vmem:[%s10774_s1 + $0xf0] sm:$0xff]   ;;  %v8220_v13 = vld [vmem:[%s10775_s0 + $0x40] sm:$0xff]  }
  0x1b   :  { %7452 = vmatpush3.bf16.msra.mxu0 %v8156_v14  ;;  %v8222_v14 = vld [vmem:[%s10774_s1 + $0xb8] sm:$0xff]  }
  0x1c   :  { %7644 = vmatpush3.bf16.msra.mxu1 %v8157_v15  ;;  %7453 = vmatprep.subr.bf16.mxu0 %v8158_v16  ;;  %v8223_v15 = vld [vmem:[%s10774_s1 + $0xf8] sm:$0xff]  }
  0x1d   :  { %7645 = vmatprep.subr.bf16.mxu1 %v8159_v17 }
  0x1f   :  { %7454 = vmatpush3.bf16.msra.mxu0 %v8158_v16  ;;  %v8224_v16 = vld [vmem:[%s10775_s0 + $0x90] sm:$0xff]  }
  0x20   :  { %7646 = vmatpush3.bf16.msra.mxu1 %v8159_v17  ;;  %7471 = vmatprep.subr.bf16.mxu0 %v8163_v19  ;;  %v8225_v17 = vld [vmem:[%s10775_s0 + $0x50] sm:$0xff]  }
  0x21   :  { %7663 = vmatprep.subr.bf16.mxu1 %v8165_v20 }
  0x22   :  { %7456 = vmatmul.mubr.bf16.vlgmr.msra.gmra.mrb[0].mxu0 %v8162_v18  ;;  %v8226_v18 = vld [vmem:[%s10775_s0 + $0x98] sm:$0xff]  }
  0x23   :  { %7648 = vmatmul.mubr.bf16.vlgmr.msra.gmra.mrb[0].mxu1 %v8164_v21  ;;  %7472 = vmatpush3.bf16.msra.mxu0 %v8163_v19  ;;  %v8227_v19 = vld [vmem:[%s10774_s1 + $0xc0] sm:$0xff]   ;;  %v8228_v21 = vld [vmem:[%s10775_s0 + $0x58] sm:$0xff]  }
  0x24   :  { %7664 = vmatpush3.bf16.msra.mxu1 %v8165_v20  ;;  %7473 = vmatprep.subr.bf16.mxu0 %v8166_v22  ;;  %v8229_v20 = vld [vmem:[%s10774_s1 + $0x100] sm:$0xff]  }
  0x25   :  { %7665 = vmatprep.subr.bf16.mxu1 %v8167_v23  ;;  %7459 = vmatprep.mubr.bf16.mxu0 %v8168_v24  ;;  %v8232_v24 = vld [vmem:[%s10775_s0 + $0xa0] sm:$0xff]  }
  0x26   :  { %7651 = vmatprep.mubr.bf16.mxu1 %v8169_v25  ;;  %v8233_v25 = vld [vmem:[%s10775_s0 + $0x60] sm:$0xff]  }
  0x27   :  { %7474 = vmatpush3.bf16.msra.mxu0 %v8166_v22  ;;  %v8230_v22 = vld [vmem:[%s10774_s1 + $0xc8] sm:$0xff]  }
  0x28   :  { %7666 = vmatpush3.bf16.msra.mxu1 %v8167_v23  ;;  %7475 = vmatprep.subr.bf16.mxu0 %v8171_v27  ;;  %v8231_v23 = vld [vmem:[%s10774_s1 + $0x108] sm:$0xff]  }
  0x29   :  { %7667 = vmatprep.subr.bf16.mxu1 %v8173_v28 }
  0x2a   :  { %7460 = vmatmul.mubr.bf16.gmra.mrb[4].mxu0 %v8170_v26  ;;  %v8234_v26 = vld [vmem:[%s10775_s0 + $0xa8] sm:$0xff]  }
  0x2b   :  { %7652 = vmatmul.mubr.bf16.gmra.mrb[4].mxu1 %v8172_v29  ;;  %7476 = vmatpush3.bf16.msra.mxu0 %v8171_v27  ;;  %v8235_v27 = vld [vmem:[%s10774_s1 + $0xd0] sm:$0xff]   ;;  %v8236_v29 = vld [vmem:[%s10775_s0 + $0x68] sm:$0xff]  }
  0x2c   :  { %7668 = vmatpush3.bf16.msra.mxu1 %v8173_v28  ;;  %7477 = vmatprep.subr.bf16.mxu0 %v8174_v30  ;;  %v8237_v28 = vld [vmem:[%s10774_s1 + $0x110] sm:$0xff]  }
  0x2d   :  { %7669 = vmatprep.subr.bf16.mxu1 %v8175_v31  ;;  %7463 = vmatprep.mubr.bf16.mxu0 %v8176_v32  ;;  %v8240_v32 = vld [vmem:[%s10775_s0 + $0xb0] sm:$0xff]  }
  0x2e   :  { %7655 = vmatprep.mubr.bf16.mxu1 %v8177_v33  ;;  %v8241_v33 = vld [vmem:[%s10775_s0 + $0x70] sm:$0xff]  }
  0x2f   :  { %7478 = vmatpush3.bf16.msra.mxu0 %v8174_v30  ;;  %v8238_v30 = vld [vmem:[%s10774_s1 + $0xd8] sm:$0xff]  }
  0x30   :  { %7670 = vmatpush3.bf16.msra.mxu1 %v8175_v31  ;;  %7479 = vmatprep.subr.bf16.mxu0 %v8179_v35  ;;  %v8239_v31 = vld [vmem:[%s10774_s1 + $0x118] sm:$0xff]  }
  0x31   :  { %7671 = vmatprep.subr.bf16.mxu1 %v8181_v36 }
  0x32   :  { %7464 = vmatmul.mubr.bf16.gmra.mrb[8].mxu0 %v8178_v34  ;;  %v8242_v34 = vld [vmem:[%s10775_s0 + $0xb8] sm:$0xff]  }
  0x33   :  { %7656 = vmatmul.mubr.bf16.gmra.mrb[8].mxu1 %v8180_v37  ;;  %7480 = vmatpush3.bf16.msra.mxu0 %v8179_v35  ;;  %v8243_v35 = vld [vmem:[%s10774_s1 + $0xe0] sm:$0xff]   ;;  %v8244_v37 = vld [vmem:[%s10775_s0 + $0x78] sm:$0xff]  }
  0x34   :  { %7672 = vmatpush3.bf16.msra.mxu1 %v8181_v36  ;;  %7481 = vmatprep.subr.bf16.mxu0 %v8182_v38  ;;  %v8245_v36 = vld [vmem:[%s10774_s1 + $0x120] sm:$0xff]  }
  0x35   :  { %7673 = vmatprep.subr.bf16.mxu1 %v8183_v39  ;;  %7467 = vmatprep.mubr.bf16.mxu0 %v8184_v40  ;;  %v8248_v40 = vld [vmem:[%s10775_s0 + $0xc0] sm:$0xff]  }
  0x36   :  { %7659 = vmatprep.mubr.bf16.mxu1 %v8185_v41  ;;  %v8249_v41 = vld [vmem:[%s10775_s0 + $0x80] sm:$0xff]  }
  0x37   :  { %7482 = vmatpush3.bf16.msra.mxu0 %v8182_v38  ;;  %v8246_v38 = vld [vmem:[%s10774_s1 + $0xe8] sm:$0xff]  }
  0x38   :  { %7674 = vmatpush3.bf16.msra.mxu1 %v8183_v39  ;;  %7483 = vmatprep.subr.bf16.mxu0 %v8187_v43  ;;  %v8247_v39 = vld [vmem:[%s10774_s1 + $0x128] sm:$0xff]  }
  0x39   :  { %7675 = vmatprep.subr.bf16.mxu1 %v8189_v44 }
  0x3a   :  { %7468 = vmatmul.mubr.bf16.gmra.mrb[12].mxu0 %v8186_v42  ;;  %v8250_v42 = vld [vmem:[%s10775_s0 + $0xc8] sm:$0xff]  }
  0x3b   :  { %7660 = vmatmul.mubr.bf16.gmra.mrb[12].mxu1 %v8188_v45  ;;  %7484 = vmatpush3.bf16.msra.mxu0 %v8187_v43  ;;  %v8251_v43 = vld [vmem:[%s10774_s1 + $0xf0] sm:$0xff]   ;;  %v8252_v45 = vld [vmem:[%s10775_s0 + $0x88] sm:$0xff]  }
  0x3c   :  { %7676 = vmatpush3.bf16.msra.mxu1 %v8189_v44  ;;  %7485 = vmatprep.subr.bf16.mxu0 %v8190_v46  ;;  %v8253_v44 = vld [vmem:[%s10774_s1 + $0x130] sm:$0xff]  }
  0x3d   :  { %7677 = vmatprep.subr.bf16.mxu1 %v8191_v47  ;;  %7487 = vmatprep.mubr.bf16.mxu0 %v8192_v48  ;;  %v8256_v48 = vld [vmem:[%s10775_s0 + $0xd8] sm:$0xff]  }
  0x3e   :  { %7679 = vmatprep.mubr.bf16.mxu1 %v8193_v49  ;;  %v8257_v49 = vld [vmem:[%s10775_s0 + $0x98] sm:$0xff]  }
  0x3f   :  { %7486 = vmatpush3.bf16.msra.mxu0 %v8190_v46  ;;  %v8254_v46 = vld [vmem:[%s10774_s1 + $0xf8] sm:$0xff]  }
  0x40   :  { %7678 = vmatpush3.bf16.msra.mxu1 %v8191_v47  ;;  %7503 = vmatprep.subr.bf16.mxu0 %v8195_v51  ;;  %v8255_v47 = vld [vmem:[%s10774_s1 + $0x138] sm:$0xff]  }
  0x41   :  { %7695 = vmatprep.subr.bf16.mxu1 %v8197_v52 }
  0x42   :  { %7488 = vmatmul.mubr.bf16.vlgmr.msra.gmra.mrb[0].mxu0 %v8194_v50  ;;  %v8259_v50 = vld [vmem:[%s10774_s1 + $0x100] sm:$0xff]  }
  0x43   :  { %7680 = vmatmul.mubr.bf16.vlgmr.msra.gmra.mrb[0].mxu1 %v8196_v53  ;;  %7504 = vmatpush3.bf16.msra.mxu0 %v8195_v51  ;;  %v8258_v51 = vld [vmem:[%s10775_s0 + $0xe0] sm:$0xff]   ;;  %v8261_v53 = vld [vmem:[%s10774_s1 + $0x108] sm:$0xff]  }
  0x44   :  { %7696 = vmatpush3.bf16.msra.mxu1 %v8197_v52  ;;  %7505 = vmatprep.subr.bf16.mxu0 %v8198_v54  ;;  %v8260_v52 = vld [vmem:[%s10775_s0 + $0xa0] sm:$0xff]  }
  0x45   :  { %7697 = vmatprep.subr.bf16.mxu1 %v8199_v55  ;;  %7491 = vmatprep.mubr.bf16.mxu0 %v8200_v56  ;;  %v8265_v56 = vld [vmem:[%s10774_s1 + $0x110] sm:$0xff]  }
  0x46   :  { %7683 = vmatprep.mubr.bf16.mxu1 %v8201_v57  ;;  %v8264_v57 = vld [vmem:[%s10775_s0 + $0xf0] sm:$0xff]  }
  0x47   :  { %7506 = vmatpush3.bf16.msra.mxu0 %v8198_v54  ;;  %v8262_v54 = vld [vmem:[%s10775_s0 + $0xe8] sm:$0xff]  }
  0x48   :  { %7698 = vmatpush3.bf16.msra.mxu1 %v8199_v55  ;;  %7507 = vmatprep.subr.bf16.mxu0 %v8203_v59  ;;  %v8263_v55 = vld [vmem:[%s10775_s0 + $0xa8] sm:$0xff]  }
  0x49   :  { %7699 = vmatprep.subr.bf16.mxu1 %v8205_v60 }
  0x4a   :  { %7492 = vmatmul.mubr.bf16.gmra.mrb[4].mxu0 %v8202_v58  ;;  %v8266_v58 = vld [vmem:[%s10775_s0 + $0xb0] sm:$0xff]  }
  0x4b   :  { %7684 = vmatmul.mubr.bf16.gmra.mrb[4].mxu1 %v8204_v61  ;;  %7508 = vmatpush3.bf16.msra.mxu0 %v8203_v59  ;;  %v8267_v59 = vld [vmem:[%s10774_s1 + $0x118] sm:$0xff]  }
  0x4c   :  { %7700 = vmatpush3.bf16.msra.mxu1 %v8205_v60  ;;  %7509 = vmatprep.subr.bf16.mxu0 %v8206_v62  ;;  %v8268_v60 = vld [vmem:[%s10775_s0 + $0xf8] sm:$0xff]  }
  0x4d   :  { %7701 = vmatprep.subr.bf16.mxu1 %v8207_v63  ;;  %7495 = vmatprep.mubr.bf16.mxu0 %v8208_v0  ;;  %v8269_v61 = vld [vmem:[%s10775_s0 + $0xb8] sm:$0xff]   ;;  %v8272_v0 = vld [vmem:[%s10775_s0 + $0xc0] sm:$0xff]  }
  0x4e   :  { %7687 = vmatprep.mubr.bf16.mxu1 %v8209_v1  ;;  %v8273_v1 = vld [vmem:[%s10774_s1 + $0x128] sm:$0xff]  }
  0x4f   :  { %7510 = vmatpush3.bf16.msra.mxu0 %v8206_v62  ;;  %v8271_v62 = vld [vmem:[%s10774_s1 + $0x120] sm:$0xff]  }
  0x50   :  { %7702 = vmatpush3.bf16.msra.mxu1 %v8207_v63  ;;  %7511 = vmatprep.subr.bf16.mxu0 %v8211_v3  ;;  %v8270_v63 = vld [vmem:[%s10775_s0 + $0x100] sm:$0xff]  }
  0x51   :  { %7703 = vmatprep.subr.bf16.mxu1 %v8213_v4 }
  0x52   :  { %7496 = vmatmul.mubr.bf16.gmra.mrb[8].mxu0 %v8210_v2  ;;  %v8274_v2 = vld [vmem:[%s10775_s0 + $0x108] sm:$0xff]  }
  0x53   :  { %7688 = vmatmul.mubr.bf16.gmra.mrb[8].mxu1 %v8212_v5  ;;  %7512 = vmatpush3.bf16.msra.mxu0 %v8211_v3  ;;  %v8275_v3 = vld [vmem:[%s10775_s0 + $0xc8] sm:$0xff]   ;;  %v8276_v5 = vld [vmem:[%s10775_s0 + $0x110] sm:$0xff]  }
  0x54   :  { %7704 = vmatpush3.bf16.msra.mxu1 %v8213_v4  ;;  %7513 = vmatprep.subr.bf16.mxu0 %v8214_v6  ;;  %v8277_v4 = vld [vmem:[%s10774_s1 + $0x130] sm:$0xff]  }
  0x55   :  { %7705 = vmatprep.subr.bf16.mxu1 %v8215_v7  ;;  %7499 = vmatprep.mubr.bf16.mxu0 %v8216_v8  ;;  %v8280_v8 = vld [vmem:[%s10775_s0 + $0x8] sm:$0xff]  }
  0x56   :  { %7691 = vmatprep.mubr.bf16.mxu1 %v8217_v9  ;;  %v8282_v9 = vld [vmem:[%s10774_s1 + $0x40] sm:$0xff]  }
  0x57   :  { %7514 = vmatpush3.bf16.msra.mxu0 %v8214_v6  ;;  %v8278_v6 = vld [vmem:[%s10775_s0 + $0xd0] sm:$0xff]  }
  0x58   :  { %7706 = vmatpush3.bf16.msra.mxu1 %v8215_v7  ;;  %7515 = vmatprep.subr.bf16.mxu0 %v8219_v11  ;;  %v8279_v7 = vld [vmem:[%s10774_s1 + $0x138] sm:$0xff]  }
  0x59   :  { %7707 = vmatprep.subr.bf16.mxu1 %v8221_v12 }
  0x5a   :  { %7500 = vmatmul.mubr.bf16.gmra.mrb[12].mxu0 %v8218_v10  ;;  %v8281_v10 = vld [vmem:[%s10775_s0 + $0x10] sm:$0xff]  }
  0x5b   :  { %7692 = vmatmul.mubr.bf16.gmra.mrb[12].mxu1 %v8220_v13  ;;  %7516 = vmatpush3.bf16.msra.mxu0 %v8219_v11  ;;  %v8284_v11 = vld [vmem:[%s10775_s0 + $0x18] sm:$0xff]   ;;  %v8286_v13 = vld [vmem:[%s10774_s1 + $0x50] sm:$0xff]  }
  0x5c   :  { %7708 = vmatpush3.bf16.msra.mxu1 %v8221_v12  ;;  %7517 = vmatprep.subr.bf16.mxu0 %v8222_v14  ;;  %v8283_v12 = vld [vmem:[%s10774_s1 + $0x48] sm:$0xff]  }
  0x5d   :  { %7709 = vmatprep.subr.bf16.mxu1 %v8223_v15  ;;  %7519 = vmatprep.mubr.bf16.mxu0 %v8224_v16  ;;  %v8287_v16 = vld [vmem:[%s10774_s1 + $0x58] sm:$0xff]  }
  0x5e   :  { %7711 = vmatprep.mubr.bf16.mxu1 %v8225_v17  ;;  %v8290_v17 = vld [vmem:[%s10774_s1 + $0x60] sm:$0xff]  }
  0x5f   :  { %7518 = vmatpush3.bf16.msra.mxu0 %v8222_v14  ;;  %v8285_v14 = vld [vmem:[%s10775_s0 + $0x20] sm:$0xff]  }
  0x60   :  { %7710 = vmatpush3.bf16.msra.mxu1 %v8223_v15  ;;  %7535 = vmatprep.subr.bf16.mxu0 %v8227_v19  ;;  %v8288_v15 = vld [vmem:[%s10775_s0 + $0x28] sm:$0xff]  }
  0x61   :  { %7727 = vmatprep.subr.bf16.mxu1 %v8229_v20 }
  0x62   :  { %7520 = vmatmul.mubr.bf16.vlgmr.msra.gmra.mrb[0].mxu0 %v8226_v18  ;;  %v8289_v18 = vld [vmem:[%s10775_s0 + $0x30] sm:$0xff]  }
  0x63   :  { %7712 = vmatmul.mubr.bf16.vlgmr.msra.gmra.mrb[0].mxu1 %v8228_v21  ;;  %7536 = vmatpush3.bf16.msra.mxu0 %v8227_v19  ;;  %v8292_v19 = vld [vmem:[%s10775_s0 + $0x38] sm:$0xff]   ;;  %v8294_v21 = vld [vmem:[%s10774_s1 + $0x70] sm:$0xff]  }
  0x64   :  { %7728 = vmatpush3.bf16.msra.mxu1 %v8229_v20  ;;  %7537 = vmatprep.subr.bf16.mxu0 %v8230_v22  ;;  %v8291_v20 = vld [vmem:[%s10774_s1 + $0x68] sm:$0xff]  }
  0x65   :  { %7729 = vmatprep.subr.bf16.mxu1 %v8231_v23  ;;  %7523 = vmatprep.mubr.bf16.mxu0 %v8232_v24  ;;  %v8295_v24 = vld [vmem:[%s10774_s1 + $0x78] sm:$0xff]  }
  0x66   :  { %7715 = vmatprep.mubr.bf16.mxu1 %v8233_v25  ;;  %v8297_v25 = vld [vmem:[%s10775_s0 + $0xe0] sm:$0xff]  }
  0x67   :  { %7538 = vmatpush3.bf16.msra.mxu0 %v8230_v22  ;;  %v8293_v22 = vld [vmem:[%s10775_s0 + $0x40] sm:$0xff]  }
  0x68   :  { %7730 = vmatpush3.bf16.msra.mxu1 %v8231_v23  ;;  %7539 = vmatprep.subr.bf16.mxu0 %v8235_v27  ;;  %v8296_v23 = vld [vmem:[%s10775_s0 + $0xd8] sm:$0xff]  }
  0x69   :  { %7731 = vmatprep.subr.bf16.mxu1 %v8237_v28 }
  0x6a   :  { %7524 = vmatmul.mubr.bf16.gmra.mrb[4].mxu0 %v8234_v26  ;;  %v8298_v26 = vld [vmem:[%s10775_s0 + $0xe8] sm:$0xff]  }
  0x6b   :  { %7716 = vmatmul.mubr.bf16.gmra.mrb[4].mxu1 %v8236_v29  ;;  %7540 = vmatpush3.bf16.msra.mxu0 %v8235_v27  ;;  %v8299_v27 = vld [vmem:[%s10775_s0 + $0xf0] sm:$0xff]   ;;  %v8301_v29 = vld [vmem:[%s10775_s0 + $0x100] sm:$0xff]  }
  0x6c   :  { %7732 = vmatpush3.bf16.msra.mxu1 %v8237_v28  ;;  %7541 = vmatprep.subr.bf16.mxu0 %v8238_v30  ;;  %v8300_v28 = vld [vmem:[%s10775_s0 + $0xf8] sm:$0xff]  }
  0x6d   :  { %7733 = vmatprep.subr.bf16.mxu1 %v8239_v31  ;;  %7527 = vmatprep.mubr.bf16.mxu0 %v8240_v32  ;;  %v8304_v32 = vld [vmem:[%s10776_s3 + $0x40] sm:$0xff]  }
  0x6e   :  { %7719 = vmatprep.mubr.bf16.mxu1 %v8241_v33  ;;  %v8305_v33 = vld [vmem:[%s10776_s3 + $0x48] sm:$0xff]  }
  0x6f   :  { %7542 = vmatpush3.bf16.msra.mxu0 %v8238_v30  ;;  %v8302_v30 = vld [vmem:[%s10775_s0 + $0x108] sm:$0xff]  }
  0x70   :  { %7734 = vmatpush3.bf16.msra.mxu1 %v8239_v31  ;;  %7543 = vmatprep.subr.bf16.mxu0 %v8243_v35  ;;  %v8303_v31 = vld [vmem:[%s10775_s0 + $0x110] sm:$0xff]  }
  0x71   :  { %7735 = vmatprep.subr.bf16.mxu1 %v8245_v36 }
  0x72   :  { %7528 = vmatmul.mubr.bf16.gmra.mrb[8].mxu0 %v8242_v34  ;;  %v8306_v34 = vld [vmem:[%s10776_s3 + $0x50] sm:$0xff]  }
  0x73   :  { %7720 = vmatmul.mubr.bf16.gmra.mrb[8].mxu1 %v8244_v37  ;;  %7544 = vmatpush3.bf16.msra.mxu0 %v8243_v35  ;;  %v8307_v35 = vld [vmem:[%s10776_s3 + $0x58] sm:$0xff]   ;;  %v8309_v37 = vld [vmem:[%s10776_s3 + $0x68] sm:$0xff]  }
  0x74   :  { %7736 = vmatpush3.bf16.msra.mxu1 %v8245_v36  ;;  %7545 = vmatprep.subr.bf16.mxu0 %v8246_v38  ;;  %v8308_v36 = vld [vmem:[%s10776_s3 + $0x60] sm:$0xff]  }
  0x75   :  { %7737 = vmatprep.subr.bf16.mxu1 %v8247_v39  ;;  %7531 = vmatprep.mubr.bf16.mxu0 %v8248_v40  ;;  %v9416_v40 = vld [vmem:[%s10776_s3] sm:$0xff]  }
  0x76   :  { %7723 = vmatprep.mubr.bf16.mxu1 %v8249_v41  ;;  %v8848_v41 = vmov 0  }
  0x77   :  { %7546 = vmatpush3.bf16.msra.mxu0 %v8246_v38  ;;  %v8310_v38 = vld [vmem:[%s10776_s3 + $0x70] sm:$0xff]  }
  0x78   :  { %7738 = vmatpush3.bf16.msra.mxu1 %v8247_v39  ;;  %7547 = vmatprep.subr.bf16.mxu0 %v8251_v43  ;;  %v8311_v39 = vld [vmem:[%s10776_s3 + $0x78] sm:$0xff]  }
  0x79   :  { %7739 = vmatprep.subr.bf16.mxu1 %v8253_v44 }
  0x7a   :  { %7532 = vmatmul.mubr.bf16.gmra.mrb[12].mxu0 %v8250_v42 }
  0x7b   :  { %7724 = vmatmul.mubr.bf16.gmra.mrb[12].mxu1 %v8252_v45  ;;  %7548 = vmatpush3.bf16.msra.mxu0 %v8251_v43 }
  0x7c   :  { %7740 = vmatpush3.bf16.msra.mxu1 %v8253_v44  ;;  %7549 = vmatprep.subr.bf16.mxu0 %v8254_v46 }
  0x7d   :  { %7741 = vmatprep.subr.bf16.mxu1 %v8255_v47  ;;  %7551 = vmatprep.mubr.bf16.mxu0 %v8256_v48 }
  0x7e   :  { %7743 = vmatprep.mubr.bf16.mxu1 %v8257_v49 }
  0x7f   :  { %7550 = vmatpush3.bf16.msra.mxu0 %v8254_v46 }
  0x80   :  { %7742 = vmatpush3.bf16.msra.mxu1 %v8255_v47  ;;  %7567 = vmatprep.subr.bf16.mxu0 %v8259_v50 }
  0x82   :  { %7552 = vmatmul.mubr.bf16.vlgmr.msra.gmra.mrb[0].mxu0 %v8258_v51 }
  0x83   :  { %7744 = vmatmul.mubr.bf16.vlgmr.msra.gmra.mrb[0].mxu1 %v8260_v52  ;;  %7568 = vmatpush3.bf16.msra.mxu0 %v8259_v50 }
  0x84   :  { %7569 = vmatprep.subr.bf16.mxu0 %v8261_v53  ;;  %7555 = vmatprep.mubr.bf16.mxu0 %v8262_v54 }
  0x85   :  { %7747 = vmatprep.mubr.bf16.mxu1 %v8263_v55 }
  0x87   :  { %7570 = vmatpush3.bf16.msra.mxu0 %v8261_v53 }
  0x88   :  { %7571 = vmatprep.subr.bf16.mxu0 %v8265_v56 }
  0x8a   :  { %7556 = vmatmul.mubr.bf16.gmra.mrb[4].mxu0 %v8264_v57 }
  0x8b   :  { %7748 = vmatmul.mubr.bf16.gmra.mrb[4].mxu1 %v8266_v58  ;;  %7572 = vmatpush3.bf16.msra.mxu0 %v8265_v56  ;;  %v9455_v58 = vld [vmem:[%s10777_s2] ss:$0 sm:$0xff] }
  0x8c   :  { %7573 = vmatprep.subr.bf16.mxu0 %v8267_v59  ;;  %7559 = vmatprep.mubr.bf16.mxu0 %v8268_v60 }
  0x8d   :  { %7751 = vmatprep.mubr.bf16.mxu1 %v8269_v61 }
  0x8f   :  { %7574 = vmatpush3.bf16.msra.mxu0 %v8267_v59 }
  0x90   :  { %7575 = vmatprep.subr.bf16.mxu0 %v8271_v62 }
  0x92   :  { %7560 = vmatmul.mubr.bf16.gmra.mrb[8].mxu0 %v8270_v63 }
  0x93   :  { %7752 = vmatmul.mubr.bf16.gmra.mrb[8].mxu1 %v8272_v0  ;;  %7576 = vmatpush3.bf16.msra.mxu0 %v8271_v62 }
  0x94   :  { %7577 = vmatprep.subr.bf16.mxu0 %v8273_v1  ;;  %7563 = vmatprep.mubr.bf16.mxu0 %v8274_v2 }
  0x95   :  { %7755 = vmatprep.mubr.bf16.mxu1 %v8275_v3 }
  0x97   :  { %7578 = vmatpush3.bf16.msra.mxu0 %v8273_v1 }
  0x98   :  { %7579 = vmatprep.subr.bf16.mxu0 %v8277_v4 }
  0x9a   :  { %7564 = vmatmul.mubr.bf16.gmra.mrb[12].mxu0 %v8276_v5 }
  0x9b   :  { %7756 = vmatmul.mubr.bf16.gmra.mrb[12].mxu1 %v8278_v6  ;;  %7580 = vmatpush3.bf16.msra.mxu0 %v8277_v4 }
  0x9c   :  { %7581 = vmatprep.subr.bf16.mxu0 %v8279_v7  ;;  %7583 = vmatprep.mubr.bf16.mxu0 %v8280_v8 }
  0x9f   :  { %7582 = vmatpush3.bf16.msra.mxu0 %v8279_v7 }
  0xa0   :  { %7599 = vmatprep.subr.bf16.mxu0 %v8282_v9 }
  0xa2   :  { %7584 = vmatmul.mubr.bf16.vlgmr.msra.gmra.mrb[0].mxu0 %v8281_v10 }
  0xa3   :  { %7600 = vmatpush3.bf16.msra.mxu0 %v8282_v9  ;;  %7587 = vmatprep.mubr.bf16.mxu0 %v8284_v11 }
  0xa4   :  { %7601 = vmatprep.subr.bf16.mxu0 %v8283_v12 }
  0xa7   :  { %7602 = vmatpush3.bf16.msra.mxu0 %v8283_v12 }
  0xa8   :  { %7603 = vmatprep.subr.bf16.mxu0 %v8286_v13 }
  0xaa   :  { %7588 = vmatmul.mubr.bf16.gmra.mrb[4].mxu0 %v8285_v14 }
  0xab   :  { %7604 = vmatpush3.bf16.msra.mxu0 %v8286_v13  ;;  %7591 = vmatprep.mubr.bf16.mxu0 %v8288_v15 }
  0xac   :  { %7605 = vmatprep.subr.bf16.mxu0 %v8287_v16 }
  0xaf   :  { %7606 = vmatpush3.bf16.msra.mxu0 %v8287_v16 }
  0xb0   :  { %7607 = vmatprep.subr.bf16.mxu0 %v8290_v17 }
  0xb2   :  { %7592 = vmatmul.mubr.bf16.gmra.mrb[8].mxu0 %v8289_v18 }
  0xb3   :  { %7608 = vmatpush3.bf16.msra.mxu0 %v8290_v17  ;;  %7595 = vmatprep.mubr.bf16.mxu0 %v8292_v19 }
  0xb4   :  { %7609 = vmatprep.subr.bf16.mxu0 %v8291_v20 }
  0xb7   :  { %7610 = vmatpush3.bf16.msra.mxu0 %v8291_v20 }
  0xb8   :  { %7611 = vmatprep.subr.bf16.mxu0 %v8294_v21 }
  0xba   :  { %7596 = vmatmul.mubr.bf16.gmra.mrb[12].mxu0 %v8293_v22 }
  0xbb   :  { %7612 = vmatpush3.bf16.msra.mxu0 %v8294_v21  ;;  %7615 = vmatprep.mubr.bf16.mxu0 %v8296_v23 }
  0xbc   :  { %7613 = vmatprep.subr.bf16.mxu0 %v8295_v24 }
  0xbf   :  { %7614 = vmatpush3.bf16.msra.mxu0 %v8295_v24 }
  0xc0   :  { %7759 = vmatprep.subr.bf16.mxu0 %v8304_v32 }
  0xc2   :  { %7616 = vmatmul.mubr.bf16.vlgmr.msra.gmra.mrb[16].mxu0 %v8297_v25 }
  0xc3   :  { %7619 = vmatprep.mubr.bf16.mxu0 %v8298_v26  ;;  %7760 = vmatpush3.bf16.msra.mxu0 %v8304_v32 }
  0xc4   :  { %7761 = vmatprep.subr.bf16.mxu0 %v8305_v33 }
  0xc7   :  { %7762 = vmatpush3.bf16.msra.mxu0 %v8305_v33 }
  0xc8   :  { %7763 = vmatprep.subr.bf16.mxu0 %v8306_v34 }
  0xca   :  { %7620 = vmatmul.mubr.bf16.gmra.mrb[20].mxu0 %v8299_v27 }
  0xcb   :  { %7623 = vmatprep.mubr.bf16.mxu0 %v8300_v28  ;;  %7764 = vmatpush3.bf16.msra.mxu0 %v8306_v34 }
  0xcc   :  { %7765 = vmatprep.subr.bf16.mxu0 %v8307_v35 }
  0xcf   :  { %7766 = vmatpush3.bf16.msra.mxu0 %v8307_v35 }
  0xd0   :  { %7767 = vmatprep.subr.bf16.mxu0 %v8308_v36 }
  0xd2   :  { %7624 = vmatmul.mubr.bf16.gmra.mrb[24].mxu0 %v8301_v29 }
  0xd3   :  { %7627 = vmatprep.mubr.bf16.mxu0 %v8302_v30  ;;  %7768 = vmatpush3.bf16.msra.mxu0 %v8308_v36 }
  0xd4   :  { %7769 = vmatprep.subr.bf16.mxu0 %v8309_v37 }
  0xd7   :  { %7770 = vmatpush3.bf16.msra.mxu0 %v8309_v37 }
  0xd8   :  { %7771 = vmatprep.subr.bf16.mxu0 %v8310_v38 }
  0xda   :  { %7628 = vmatmul.mubr.bf16.gmra.mrb[28].mxu0 %v8303_v31 }
  0xdb   :  { %7772 = vmatpush3.bf16.msra.mxu0 %v8310_v38  ;;  %7775 = vmatprep.mubr.bf16.mxu0 %v8848_v41 }
  0xdc   :  { %7773 = vmatprep.subr.bf16.mxu0 %v8311_v39 }
  0xdf   :  { %7774 = vmatpush3.bf16.msra.mxu0 %v8311_v39 }
  0xe0   :  { %7791 = vmatprep.subr.bf16.mxu0 %v9416_v40 }
 0x156   :  { %v9420_v42 = vpop.f32.mrb[0].mxu1 }
 0x157   :  { %v9422_v43 = vpop.f32.mrb[1].mxu1 }
 0x158   :  { %v9424_v44 = vpop.f32.mrb[2].mxu1 }
 0x159   :  { %v9426_v45 = vpop.f32.mrb[3].mxu1 }
 0x15e   :  { %v9428_v46 = vpop.f32.mrb[4].mxu1 }
 0x15f   :  { %v9430_v47 = vpop.f32.mrb[5].mxu1 }
 0x160   :  { %v9432_v48 = vpop.f32.mrb[6].mxu1 }
 0x161   :  { %v9434_v49 = vpop.f32.mrb[7].mxu1 }
 0x166   :  { %v9436_v50 = vpop.f32.mrb[8].mxu1 }
 0x167   :  { %v9438_v51 = vpop.f32.mrb[9].mxu1 }
 0x168   :  { %v9440_v52 = vpop.f32.mrb[10].mxu1 }
 0x169   :  { %v9442_v53 = vpop.f32.mrb[11].mxu1 }
 0x16e   :  { %v9444_v54 = vpop.f32.mrb[12].mxu1 }
 0x16f   :  { %v9446_v55 = vpop.f32.mrb[13].mxu1 }
 0x170   :  { %v9448_v56 = vpop.f32.mrb[14].mxu1 }
 0x171   :  { %v9450_v57 = vpop.f32.mrb[15].mxu1 }
 0x175   :  { %v7585_v59 = vpop.f32.mrb[0].mxu0 }
 0x176   :  { %v1236_v60 = vadd.f32 %v7585_v59, %v9455_v58  ;;  %v1148_v61 = vpop.f32.mrb[1].mxu0 }
 0x177   :  { %v1234_v62 = vadd.f32 %v9455_v58, %v1148_v61  ;;  %v7586_v63 = vpop.f32.mrb[2].mxu0 }
 0x178   :  { %v1237_v0 = vadd.f32 %v7586_v63, %v9455_v58  ;;  %v1151_v1 = vpop.f32.mrb[3].mxu0  ;;  %v1252_v3 = vmax.f32 %v1236_v60, 0.0 }
 0x179   :  { %v1235_v2 = vadd.f32 %v9455_v58, %v1151_v1  ;;  %v1250_v5 = vmax.f32 %v1234_v62, 0.0 }
 0x17a   :  { %v1253_v4 = vmax.f32 %v1237_v0, 0.0 }
 0x17b   :  { %v1251_v6 = vmax.f32 %v1235_v2, 0.0 }
 0x17c   :  { %v9461_v7 = vpack.c.bf16 %v1253_v4, %v1252_v3 }
 0x17d   :  { %v9463_v8 = vpack.c.bf16 %v1251_v6, %v1250_v5  ;;  %v7589_v9 = vpop.f32.mrb[4].mxu0 }
 0x17e   :  { %v1240_v10 = vadd.f32 %v7589_v9, %v9455_v58  ;;  %v1164_v11 = vpop.f32.mrb[5].mxu0 }
 0x17f   :  { %v1238_v12 = vadd.f32 %v9455_v58, %v1164_v11  ;;  %v7590_v13 = vpop.f32.mrb[6].mxu0 }
 0x180   :  { %v1241_v14 = vadd.f32 %v7590_v13, %v9455_v58  ;;  %v1167_v15 = vpop.f32.mrb[7].mxu0  ;;  %v1256_v17 = vmax.f32 %v1240_v10, 0.0 }
 0x181   :  { %v1239_v16 = vadd.f32 %v9455_v58, %v1167_v15  ;;  %v1254_v19 = vmax.f32 %v1238_v12, 0.0 }
 0x182   :  { %v1257_v18 = vmax.f32 %v1241_v14, 0.0 }
 0x183   :  { %v1255_v20 = vmax.f32 %v1239_v16, 0.0 }
 0x184   :  { %v9469_v21 = vpack.c.bf16 %v1257_v18, %v1256_v17 }
 0x185   :  { %v9471_v22 = vpack.c.bf16 %v1255_v20, %v1254_v19  ;;  %v7593_v23 = vpop.f32.mrb[8].mxu0 }
 0x186   :  { %v1244_v24 = vadd.f32 %v7593_v23, %v9455_v58  ;;  %v1180_v25 = vpop.f32.mrb[9].mxu0 }
 0x187   :  { %v1242_v26 = vadd.f32 %v9455_v58, %v1180_v25  ;;  %v7594_v27 = vpop.f32.mrb[10].mxu0 }
 0x188   :  { %v1245_v28 = vadd.f32 %v7594_v27, %v9455_v58  ;;  %v1183_v29 = vpop.f32.mrb[11].mxu0  ;;  %v1260_v31 = vmax.f32 %v1244_v24, 0.0 }
 0x189   :  { %v1243_v30 = vadd.f32 %v9455_v58, %v1183_v29  ;;  %v1258_v33 = vmax.f32 %v1242_v26, 0.0 }
 0x18a   :  { %v1261_v32 = vmax.f32 %v1245_v28, 0.0 }
 0x18b   :  { %v1259_v34 = vmax.f32 %v1243_v30, 0.0 }
 0x18c   :  { %v9477_v35 = vpack.c.bf16 %v1261_v32, %v1260_v31 }
 0x18d   :  { %v9479_v36 = vpack.c.bf16 %v1259_v34, %v1258_v33  ;;  %v7597_v37 = vpop.f32.mrb[12].mxu0 }
 0x18e   :  { %v1248_v38 = vadd.f32 %v7597_v37, %v9455_v58  ;;  %v1196_v39 = vpop.f32.mrb[13].mxu0 }
 0x18f   :  { %v1246_v59 = vadd.f32 %v9455_v58, %v1196_v39  ;;  %v7598_v60 = vpop.f32.mrb[14].mxu0 }
 0x190   :  { %v1249_v61 = vadd.f32 %v7598_v60, %v9455_v58  ;;  %v1199_v62 = vpop.f32.mrb[15].mxu0  ;;  %v1264_v0 = vmax.f32 %v1248_v38, 0.0 }
 0x191   :  { %v1247_v63 = vadd.f32 %v9455_v58, %v1199_v62  ;;  %v1262_v2 = vmax.f32 %v1246_v59, 0.0 }
 0x192   :  { %v1265_v1 = vmax.f32 %v1249_v61, 0.0 }
 0x193   :  { %v1263_v3 = vmax.f32 %v1247_v63, 0.0 }
 0x194   :  { %v9485_v4 = vpack.c.bf16 %v1265_v1, %v1264_v0  ;;  %v8315_v1 = vld [vmem:[%s10776_s3 + $0x18] sm:$0xff]  }
 0x195   :  { %v9487_v5 = vpack.c.bf16 %v1263_v3, %v1262_v2  ;;  %v7617_v6 = vpop.f32.mrb[16].mxu0 }
 0x196   :  { %v7919_v9 = vadd.f32 %v9420_v42, %v7617_v6  ;;  %v1477_v10 = vpop.f32.mrb[17].mxu0 }
 0x197   :  { %v7920_v11 = vadd.f32 %v9422_v43, %v1477_v10  ;;  %v7618_v12 = vpop.f32.mrb[18].mxu0 }
 0x198   :  { %v2467_v13 = vadd.f32 %v7919_v9, %v9455_v58  ;;  %v7921_v14 = vadd.f32 %v9424_v44, %v7618_v12  ;;  %v1480_v15 = vpop.f32.mrb[19].mxu0 }
 0x199   :  { %v2465_v16 = vadd.f32 %v7920_v11, %v9455_v58  ;;  %v7922_v17 = vadd.f32 %v9426_v45, %v1480_v15  ;;  %v8313_v45 = vld [vmem:[%s10776_s3 + $0x8] sm:$0xff]   ;;  %v8316_v11 = vld [vmem:[%s10776_s3 + $0x20] sm:$0xff]  }
 0x19a   :  { %v2468_v18 = vadd.f32 %v7921_v14, %v9455_v58  ;;  %v2483_v20 = vmax.f32 %v2467_v13, 0.0 }
 0x19b   :  { %v2466_v19 = vadd.f32 %v7922_v17, %v9455_v58  ;;  %v2481_v42 = vmax.f32 %v2465_v16, 0.0 }
 0x19c   :  { %v2484_v23 = vmax.f32 %v2468_v18, 0.0 }
 0x19d   :  { %v2482_v24 = vmax.f32 %v2466_v19, 0.0  ;;  %v7621_v25 = vpop.f32.mrb[20].mxu0 }
 0x19e   :  { %v7923_v43 = vadd.f32 %v9428_v46, %v7621_v25  ;;  %v1493_v26 = vpop.f32.mrb[21].mxu0  ;;  %v9498_v27 = vpack.c.bf16 %v2484_v23, %v2483_v20  ;;  %v8317_v23 = vld [vmem:[%s10776_s3 + $0x28] sm:$0xff]  }
 0x19f   :  { %v9500_v44 = vpack.c.bf16 %v2482_v24, %v2481_v42  ;;  %v7924_v28 = vadd.f32 %v9430_v47, %v1493_v26  ;;  %v7622_v29 = vpop.f32.mrb[22].mxu0 }
 0x1a0   :  { %v2471_v30 = vadd.f32 %v7923_v43, %v9455_v58  ;;  %v7925_v31 = vadd.f32 %v9432_v48, %v7622_v29  ;;  %v1496_v32 = vpop.f32.mrb[23].mxu0  ;;  %v8314_v48 = vld [vmem:[%s10776_s3 + $0x10] sm:$0xff]  }
 0x1a1   :  { %v2469_v33 = vadd.f32 %v7924_v28, %v9455_v58  ;;  %v7926_v46 = vadd.f32 %v9434_v49, %v1496_v32  ;;  %7776 = vmatmul.mubr.bf16.vlgmr.msra.gmra.mrb[32].mxu0 %v9500_v44  ;;  %v8318_v28 = vld [vmem:[%s10776_s3 + $0x30] sm:$0xff]   ;;  %v8319_v32 = vld [vmem:[%s10776_s3 + $0x38] sm:$0xff]  }
 0x1a2   :  { %v2472_v34 = vadd.f32 %v7925_v31, %v9455_v58  ;;  %7779 = vmatprep.mubr.bf16.mxu0 %v9498_v27  ;;  %7792 = vmatpush3.bf16.msra.mxu0 %v9416_v40  ;;  %v2487_v37 = vmax.f32 %v2471_v30, 0.0 }
 0x1a3   :  { %v2470_v47 = vadd.f32 %v7926_v46, %v9455_v58  ;;  %7793 = vmatprep.subr.bf16.mxu0 %v8313_v45  ;;  %v2485_v39 = vmax.f32 %v2469_v33, 0.0  ;;  %v8344_v33 = vld [vmem:[%s10778_s5 + $0x208] ss:$16 sps:$4 sm:$0xff]   ;;  %v8346_v46 = vld [vmem:[%s10778_s5 + $0x20c] ss:$16 sps:$4 sm:$0xff]  }
 0x1a4   :  { %v2488_v38 = vmax.f32 %v2472_v34, 0.0  ;;  %3966 = vmatprep.subr.bf16.mxu1 %v8346_v46  ;;  %v8352_v34 = vld [vmem:[%s10778_s5 + $0x22c] ss:$16 sps:$4 sm:$0xff]   ;;  %v8395_v46 = vld [vmem:[%s10778_s5 + $0x300] ss:$16 sps:$4 sm:$0xff]  }
 0x1a5   :  { %v2486_v59 = vmax.f32 %v2470_v47, 0.0  ;;  %v7625_v49 = vpop.f32.mrb[24].mxu0  ;;  %v8321_v47 = vld [vmem:[%s10776_s3 + $0x88] sm:$0xff]   ;;  %3967 = vmatpush1.bf16.msra.mxu1 %v8344_v33  ;;  %v8397_v33 = vld [vmem:[%s10778_s5 + $0x304] ss:$16 sps:$4 sm:$0xff]  }
 0x1a6   :  { %v7927_v60 = vadd.f32 %v9436_v50, %v7625_v49  ;;  %v1509_v61 = vpop.f32.mrb[25].mxu0  ;;  %7794 = vmatpush3.bf16.msra.mxu0 %v8313_v45  ;;  %v9519_v62 = vpack.c.bf16 %v2488_v38, %v2487_v37  ;;  %3968 = vmatprep.subr.bf16.mxu1 %v8352_v34  ;;  %v8358_v37 = vld [vmem:[%s10778_s5 + $0x24c] ss:$16 sps:$4 sm:$0xff]   ;;  %v8322_v38 = vld [vmem:[%s10776_s3 + $0x90] sm:$0xff]  }
 0x1a7   :  { %v7928_v40 = vadd.f32 %v9438_v51, %v1509_v61  ;;  %v7626_v63 = vpop.f32.mrb[26].mxu0  ;;  %v9522_v0 = vpack.c.bf16 %v2486_v59, %v2485_v39  ;;  %7795 = vmatprep.subr.bf16.mxu0 %v8314_v48  ;;  %v8356_v39 = vld [vmem:[%s10778_s5 + $0x248] ss:$16 sps:$4 sm:$0xff]   ;;  %v8364_v59 = vld [vmem:[%s10778_s5 + $0x26c] ss:$16 sps:$4 sm:$0xff]  }
 0x1a8   :  { %v2475_v2 = vadd.f32 %v7927_v60, %v9455_v58  ;;  %v7929_v3 = vadd.f32 %v9440_v52, %v7626_v63  ;;  %v1512_v6 = vpop.f32.mrb[27].mxu0  ;;  %v8323_v49 = vld [vmem:[%s10776_s3 + $0x98] sm:$0xff]   ;;  %v8401_v34 = vld [vmem:[%s10778_s5 + $0x320] ss:$16 sps:$4 sm:$0xff]  }
 0x1a9   :  { %v2473_v50 = vadd.f32 %v7928_v40, %v9455_v58  ;;  %v7930_v9 = vadd.f32 %v9442_v53, %v1512_v6  ;;  %7780 = vmatmul.mubr.bf16.gmra.mrb[36].mxu0 %v9522_v0  ;;  %v8362_v60 = vld [vmem:[%s10778_s5 + $0x268] ss:$16 sps:$4 sm:$0xff]   ;;  %v8370_v61 = vld [vmem:[%s10778_s5 + $0x28c] ss:$16 sps:$4 sm:$0xff]   ;;  %v8324_v40 = vld [vmem:[%s10776_s3 + $0xa0] sm:$0xff]  }
 0x1aa   :  { %v2476_v51 = vadd.f32 %v7929_v3, %v9455_v58  ;;  %7783 = vmatprep.mubr.bf16.mxu0 %v9519_v62  ;;  %7796 = vmatpush3.bf16.msra.mxu0 %v8314_v48  ;;  %v2491_v52 = vmax.f32 %v2475_v2, 0.0  ;;  %v8350_v48 = vld [vmem:[%s10778_s5 + $0x228] ss:$16 sps:$4 sm:$0xff]   ;;  %v8382_v6 = vld [vmem:[%s10778_s5 + $0x2cc] ss:$16 sps:$4 sm:$0xff]  }
 0x1ab   :  { %v2474_v10 = vadd.f32 %v7930_v9, %v9455_v58  ;;  %7797 = vmatprep.subr.bf16.mxu0 %v8315_v1  ;;  %v2489_v13 = vmax.f32 %v2473_v50, 0.0  ;;  %3969 = vmatpush1.bf16.msra.mxu1 %v8350_v48  ;;  %v8368_v63 = vld [vmem:[%s10778_s5 + $0x288] ss:$16 sps:$4 sm:$0xff]   ;;  %v8326_v50 = vld [vmem:[%s10776_s3 + $0xb0] sm:$0xff]  }
 0x1ac   :  { %v2492_v12 = vmax.f32 %v2476_v51, 0.0  ;;  %3970 = vmatprep.subr.bf16.mxu1 %v8358_v37  ;;  %v8325_v2 = vld [vmem:[%s10776_s3 + $0xa8] sm:$0xff]   ;;  %v8407_v48 = vld [vmem:[%s10778_s5 + $0x340] ss:$16 sps:$4 sm:$0xff]   ;;  %v8415_v37 = vld [vmem:[%s10778_s5 + $0x364] ss:$16 sps:$4 sm:$0xff]  }
 0x1ad   :  { %v2490_v14 = vmax.f32 %v2474_v10, 0.0  ;;  %v7629_v15 = vpop.f32.mrb[28].mxu0  ;;  %v8374_v3 = vld [vmem:[%s10778_s5 + $0x2a8] ss:$16 sps:$4 sm:$0xff]   ;;  %v8388_v51 = vld [vmem:[%s10778_s5 + $0x2ec] ss:$16 sps:$4 sm:$0xff]  }
 0x1ae   :  { %v7931_v53 = vadd.f32 %v9444_v54, %v7629_v15  ;;  %v1525_v16 = vpop.f32.mrb[29].mxu0  ;;  %7798 = vmatpush3.bf16.msra.mxu0 %v8315_v1  ;;  %v9539_v17 = vpack.c.bf16 %v2492_v12, %v2491_v52  ;;  %v8376_v1 = vld [vmem:[%s10778_s5 + $0x2ac] ss:$16 sps:$4 sm:$0xff]   ;;  %v8380_v9 = vld [vmem:[%s10778_s5 + $0x2c8] ss:$16 sps:$4 sm:$0xff]   ;;  %v8328_v12 = vld [vmem:[%s10776_s3 + $0xc0] sm:$0xff]  }
 0x1af   :  { %v7932_v18 = vadd.f32 %v9446_v55, %v1525_v16  ;;  %v7630_v19 = vpop.f32.mrb[30].mxu0  ;;  %v9542_v20 = vpack.c.bf16 %v2490_v14, %v2489_v13  ;;  %7799 = vmatprep.subr.bf16.mxu0 %v8316_v11  ;;  %3971 = vmatpush1.bf16.msra.mxu1 %v8356_v39  ;;  %v8327_v10 = vld [vmem:[%s10776_s3 + $0xb8] sm:$0xff]   ;;  %v8329_v15 = vld [vmem:[%s10776_s3 + $0xc8] sm:$0xff]   ;;  %v8330_v16 = vld [vmem:[%s10776_s3 + $0xd0] sm:$0xff]  }
 0x1b0   :  { %v2479_v42 = vadd.f32 %v7931_v53, %v9455_v58  ;;  %v7933_v24 = vadd.f32 %v9448_v56, %v7630_v19  ;;  %v1528_v25 = vpop.f32.mrb[31].mxu0  ;;  %3972 = vmatprep.subr.bf16.mxu1 %v8364_v59  ;;  %v8394_v52 = vld [vmem:[%s10778_s5 + $0x30c] ss:$16 sps:$4 sm:$0xff]   ;;  %v8392_v13 = vld [vmem:[%s10778_s5 + $0x308] ss:$16 sps:$4 sm:$0xff]  }
 0x1b1   :  { %v2477_v54 = vadd.f32 %v7932_v18, %v9455_v58  ;;  %v7934_v43 = vadd.f32 %v9450_v57, %v1528_v25  ;;  %7784 = vmatmul.mubr.bf16.gmra.mrb[40].mxu0 %v9542_v20  ;;  %v8400_v14 = vld [vmem:[%s10778_s5 + $0x32c] ss:$16 sps:$4 sm:$0xff]   ;;  %v8398_v53 = vld [vmem:[%s10778_s5 + $0x328] ss:$16 sps:$4 sm:$0xff]  }
 0x1b2   :  { %v2480_v55 = vadd.f32 %v7933_v24, %v9455_v58  ;;  %7787 = vmatprep.mubr.bf16.mxu0 %v9539_v17  ;;  %7800 = vmatpush3.bf16.msra.mxu0 %v8316_v11  ;;  %v2495_v56 = vmax.f32 %v2479_v42, 0.0  ;;  %v8386_v11 = vld [vmem:[%s10778_s5 + $0x2e8] ss:$16 sps:$4 sm:$0xff]   ;;  %v8412_v19 = vld [vmem:[%s10778_s5 + $0x36c] ss:$16 sps:$4 sm:$0xff]   ;;  %v8332_v24 = vld [vmem:[%s10776_s3 + $0xe0] sm:$0xff]  }
 0x1b3   :  { %v2478_v26 = vadd.f32 %v7934_v43, %v9455_v58  ;;  %7801 = vmatprep.subr.bf16.mxu0 %v8317_v23  ;;  %v2493_v45 = vmax.f32 %v2477_v54, 0.0  ;;  %v8320_v58 = vld [vmem:[%s10776_s3 + $0x80] sm:$0xff]   ;;  %3973 = vmatpush1.bf16.msra.mxu1 %v8362_v60  ;;  %v8404_v18 = vld [vmem:[%s10778_s5 + $0x348] ss:$16 sps:$4 sm:$0xff]   ;;  %v8334_v54 = vld [vmem:[%s10776_s3 + $0xf0] sm:$0xff]  }
 0x1b4   :  { %v2496_v29 = vmax.f32 %v2480_v55, 0.0  ;;  %3974 = vmatprep.subr.bf16.mxu1 %v8370_v61  ;;  %v8410_v42 = vld [vmem:[%s10778_s5 + $0x368] ss:$16 sps:$4 sm:$0xff]   ;;  %v8336_v55 = vld [vmem:[%s10776_s3 + $0x100] sm:$0xff]   ;;  %v8418_v39 = vld [vmem:[%s10778_s5 + $0x38c] ss:$16 sps:$4 sm:$0xff]  }
 0x1b5   :  { %v2494_v30 = vmax.f32 %v2478_v26, 0.0  ;;  %v8333_v25 = vld [vmem:[%s10776_s3 + $0xe8] sm:$0xff]   ;;  %v8335_v43 = vld [vmem:[%s10776_s3 + $0xf8] sm:$0xff]   ;;  %v8419_v60 = vld [vmem:[%s10778_s5 + $0x380] ss:$16 sps:$4 sm:$0xff]  }
 0x1b6   :  { %7802 = vmatpush3.bf16.msra.mxu0 %v8317_v23  ;;  %v9558_v57 = vpack.c.bf16 %v2496_v29, %v2495_v56  ;;  %v8331_v23 = vld [vmem:[%s10776_s3 + $0xd8] sm:$0xff]   ;;  %v8337_v26 = vld [vmem:[%s10776_s3 + $0x108] sm:$0xff]   ;;  %v8347_v56 = vld [vmem:[%s10778_s5 + $0x200] ss:$16 sps:$4 sm:$0xff]  }
 0x1b7   :  { %v9560_v31 = vpack.c.bf16 %v2494_v30, %v2493_v45  ;;  %7803 = vmatprep.subr.bf16.mxu0 %v8318_v28  ;;  %3975 = vmatpush1.bf16.msra.mxu1 %v8368_v63  ;;  %v8355_v29 = vld [vmem:[%s10778_s5 + $0x224] ss:$16 sps:$4 sm:$0xff]   ;;  %v8359_v30 = vld [vmem:[%s10778_s5 + $0x240] ss:$16 sps:$4 sm:$0xff]   ;;  %v8416_v59 = vld [vmem:[%s10778_s5 + $0x388] ss:$16 sps:$4 sm:$0xff]  }
 0x1b8   :  { %3976 = vmatprep.subr.bf16.mxu1 %v8376_v1  ;;  %v8361_v45 = vld [vmem:[%s10778_s5 + $0x244] ss:$16 sps:$4 sm:$0xff]   ;;  %v8424_v61 = vld [vmem:[%s10778_s5 + $0x3ac] ss:$16 sps:$4 sm:$0xff]   ;;  %v8425_v1 = vld [vmem:[%s10778_s5 + $0x3a0] ss:$16 sps:$4 sm:$0xff]  }
 0x1b9   :  { %7788 = vmatmul.mubr.bf16.gmra.mrb[44].mxu0 %v9560_v31  ;;  %v8427_v63 = vld [vmem:[%s10778_s5 + $0x3a4] ss:$16 sps:$4 sm:$0xff]  }
 0x1ba   :  { %7804 = vmatpush3.bf16.msra.mxu0 %v8318_v28  ;;  %7807 = vmatprep.mubr.bf16.mxu0 %v8848_v41  ;;  %v8338_v28 = vld [vmem:[%s10776_s3 + $0x110] sm:$0xff]  }
 0x1bb   :  { %7805 = vmatprep.subr.bf16.mxu0 %v8319_v32  ;;  %3977 = vmatpush1.bf16.msra.mxu1 %v8374_v3  ;;  %v8428_v3 = vld [vmem:[%s10778_s5 + $0x3c8] ss:$16 sps:$4 sm:$0xff]  }
 0x1bc   :  { %3978 = vmatprep.subr.bf16.mxu1 %v8382_v6  ;;  %v8433_v6 = vld [vmem:[%s10778_s5 + $0x3c4] ss:$16 sps:$4 sm:$0xff]  }
 0x1be   :  { %7806 = vmatpush3.bf16.msra.mxu0 %v8319_v32  ;;  %v8385_v32 = vld [vmem:[%s10778_s5 + $0x2c4] ss:$16 sps:$4 sm:$0xff]  }
 0x1bf   :  { %7823 = vmatprep.subr.bf16.mxu0 %v8320_v58  ;;  %3979 = vmatpush1.bf16.msra.mxu1 %v8380_v9  ;;  %v8436_v9 = vld [vmem:[%s10778_s5 + $0x3ec] ss:$16 sps:$4 sm:$0xff]  }
 0x1c0   :  { %3980 = vmatprep.subr.bf16.mxu1 %v8388_v51  ;;  %v8434_v51 = vld [vmem:[%s10778_s5 + $0x3e8] ss:$16 sps:$4 sm:$0xff]  }
 0x1c1   :  { %7808 = vmatmul.mubr.bf16.vlgmr.msra.gmra.mrb[32].mxu0 %v9463_v8 }
 0x1c2   :  { %7811 = vmatprep.mubr.bf16.mxu0 %v9461_v7  ;;  %7824 = vmatpush3.bf16.msra.mxu0 %v8320_v58  ;;  %v8383_v58 = vld [vmem:[%s10778_s5 + $0x2c0] ss:$16 sps:$4 sm:$0xff]  }
 0x1c3   :  { %7825 = vmatprep.subr.bf16.mxu0 %v8321_v47  ;;  %3981 = vmatpush1.bf16.msra.mxu1 %v8386_v11  ;;  %v8437_v11 = vld [vmem:[%s10778_s5 + $0x3e0] ss:$16 sps:$4 sm:$0xff]  }
 0x1c4   :  { %3982 = vmatprep.subr.bf16.mxu1 %v8394_v52  ;;  %v8442_v52 = vld [vmem:[%s10778_s5 + $0x4] ss:$16 sps:$4 sm:$0xff]  }
 0x1c6   :  { %7826 = vmatpush3.bf16.msra.mxu0 %v8321_v47  ;;  %v8409_v47 = vld [vmem:[%s10778_s5 + $0x344] ss:$16 sps:$4 sm:$0xff]  }
 0x1c7   :  { %7827 = vmatprep.subr.bf16.mxu0 %v8322_v38  ;;  %3983 = vmatpush1.bf16.msra.mxu1 %v8392_v13 }
 0x1c8   :  { %3984 = vmatprep.subr.bf16.mxu1 %v8400_v14 }
 0x1c9   :  { %7812 = vmatmul.mubr.bf16.gmra.mrb[36].mxu0 %v9471_v22 }
 0x1ca   :  { %7815 = vmatprep.mubr.bf16.mxu0 %v9469_v21  ;;  %7828 = vmatpush3.bf16.msra.mxu0 %v8322_v38  ;;  %v8413_v38 = vld [vmem:[%s10778_s5 + $0x360] ss:$16 sps:$4 sm:$0xff]  }
 0x1cb   :  { %7829 = vmatprep.subr.bf16.mxu0 %v8323_v49  ;;  %3985 = vmatpush1.bf16.msra.mxu1 %v8398_v53 }
 0x1ce   :  { %7830 = vmatpush3.bf16.msra.mxu0 %v8323_v49  ;;  %v8421_v49 = vld [vmem:[%s10778_s5 + $0x384] ss:$16 sps:$4 sm:$0xff]  }
 0x1cf   :  { %7831 = vmatprep.subr.bf16.mxu0 %v8324_v40 }
 0x1d1   :  { %7816 = vmatmul.mubr.bf16.gmra.mrb[40].mxu0 %v9479_v36 }
 0x1d2   :  { %7819 = vmatprep.mubr.bf16.mxu0 %v9477_v35  ;;  %7832 = vmatpush3.bf16.msra.mxu0 %v8324_v40  ;;  %v8422_v40 = vld [vmem:[%s10778_s5 + $0x3a8] ss:$16 sps:$4 sm:$0xff]  }
 0x1d3   :  { %7833 = vmatprep.subr.bf16.mxu0 %v8325_v2 }
 0x1d6   :  { %7834 = vmatpush3.bf16.msra.mxu0 %v8325_v2  ;;  %v8430_v2 = vld [vmem:[%s10778_s5 + $0x3cc] ss:$16 sps:$4 sm:$0xff]  }
 0x1d7   :  { %7835 = vmatprep.subr.bf16.mxu0 %v8326_v50 }
 0x1d9   :  { %7820 = vmatmul.mubr.bf16.gmra.mrb[44].mxu0 %v9487_v5 }
 0x1da   :  { %7836 = vmatpush3.bf16.msra.mxu0 %v8326_v50  ;;  %7839 = vmatprep.mubr.bf16.mxu0 %v9463_v8  ;;  %v8406_v8 = vld [vmem:[%s10778_s5 + $0x34c] ss:$16 sps:$4 sm:$0xff]   ;;  %v8431_v50 = vld [vmem:[%s10778_s5 + $0x3c0] ss:$16 sps:$4 sm:$0xff]  }
 0x1db   :  { %7837 = vmatprep.subr.bf16.mxu0 %v8327_v10  ;;  %3986 = vmatprep.subr.bf16.mxu1 %v8406_v8 }
 0x1dc   :  { %3987 = vmatpush1.bf16.msra.mxu1 %v8404_v18 }
 0x1dd   :  { %3988 = vmatprep.subr.bf16.mxu1 %v8412_v19 }
 0x1de   :  { %7838 = vmatpush3.bf16.msra.mxu0 %v8327_v10  ;;  %v8439_v10 = vld [vmem:[%s10778_s5 + $0x3e4] ss:$16 sps:$4 sm:$0xff]  }
 0x1df   :  { %7855 = vmatprep.subr.bf16.mxu0 %v8328_v12 }
 0x1e0   :  { %3989 = vmatpush1.bf16.msra.mxu1 %v8410_v42 }
 0x1e1   :  { %7840 = vmatmul.mubr.bf16.vlgmr.msra.gmra.mrb[32].mxu0 %v9461_v7  ;;  %3990 = vmatprep.subr.bf16.mxu1 %v8418_v39 }
 0x1e2   :  { %7843 = vmatprep.mubr.bf16.mxu0 %v9471_v22  ;;  %7856 = vmatpush3.bf16.msra.mxu0 %v8328_v12  ;;  %v9868_v12 = vld [vmem:[%s10779_s4] ss:$0 sm:$0xff] }
 0x1e3   :  { %7857 = vmatprep.subr.bf16.mxu0 %v8329_v15 }
 0x1e4   :  { %3991 = vmatpush1.bf16.msra.mxu1 %v8416_v59 }
 0x1e5   :  { %3992 = vmatprep.subr.bf16.mxu1 %v8424_v61 }
 0x1e6   :  { %7858 = vmatpush3.bf16.msra.mxu0 %v8329_v15 }
 0x1e7   :  { %7859 = vmatprep.subr.bf16.mxu0 %v8330_v16 }
 0x1e8   :  { %3993 = vmatpush1.bf16.msra.mxu1 %v8422_v40 }
 0x1e9   :  { %7844 = vmatmul.mubr.bf16.gmra.mrb[36].mxu0 %v9469_v21  ;;  %3994 = vmatprep.subr.bf16.mxu1 %v8430_v2 }
 0x1ea   :  { %7847 = vmatprep.mubr.bf16.mxu0 %v9479_v36  ;;  %7860 = vmatpush3.bf16.msra.mxu0 %v8330_v16 }
 0x1eb   :  { %7861 = vmatprep.subr.bf16.mxu0 %v8331_v23 }
 0x1ec   :  { %3995 = vmatpush1.bf16.msra.mxu1 %v8428_v3  ;;  %v8449_v3 = vld [vmem:[%s10778_s5 + $0x60] ss:$16 sps:$4 sm:$0xff]  }
 0x1ed   :  { %3996 = vmatprep.subr.bf16.mxu1 %v8436_v9 }
 0x1ee   :  { %7862 = vmatpush3.bf16.msra.mxu0 %v8331_v23 }
 0x1ef   :  { %7863 = vmatprep.subr.bf16.mxu0 %v8332_v24 }
 0x1f0   :  { %3997 = vmatpush1.bf16.msra.mxu1 %v8434_v51 }
 0x1f1   :  { %7848 = vmatmul.mubr.bf16.gmra.mrb[40].mxu0 %v9477_v35  ;;  %4329 = vmatprep.subr.bf16.mxu1 %v8442_v52 }
 0x1f2   :  { %7851 = vmatprep.mubr.bf16.mxu0 %v9487_v5  ;;  %7864 = vmatpush3.bf16.msra.mxu0 %v8332_v24 }
 0x1f3   :  { %7865 = vmatprep.subr.bf16.mxu0 %v8333_v25 }
 0x1f6   :  { %7866 = vmatpush3.bf16.msra.mxu0 %v8333_v25 }
 0x1f7   :  { %7867 = vmatprep.subr.bf16.mxu0 %v8334_v54 }
 0x1f9   :  { %7852 = vmatmul.mubr.bf16.gmra.mrb[44].mxu0 %v9485_v4 }
 0x1fa   :  { %7868 = vmatpush3.bf16.msra.mxu0 %v8334_v54  ;;  %7871 = vmatprep.mubr.bf16.mxu0 %v9500_v44  ;;  %v8339_v44 = vld [vmem:[%s10776_s3 + $0x118] sm:$0xff]  }
 0x1fb   :  { %7869 = vmatprep.subr.bf16.mxu0 %v8335_v43 }
 0x1fe   :  { %7870 = vmatpush3.bf16.msra.mxu0 %v8335_v43 }
 0x1ff   :  { %7887 = vmatprep.subr.bf16.mxu0 %v8336_v55 }
 0x201   :  { %7872 = vmatmul.mubr.bf16.vlgmr.msra.gmra.mrb[32].mxu0 %v9498_v27  ;;  %v8340_v27 = vld [vmem:[%s10776_s3 + $0x120] sm:$0xff]  }
 0x202   :  { %7875 = vmatprep.mubr.bf16.mxu0 %v9522_v0  ;;  %7888 = vmatpush3.bf16.msra.mxu0 %v8336_v55  ;;  %v8341_v0 = vld [vmem:[%s10776_s3 + $0x128] sm:$0xff]  }
 0x203   :  { %7889 = vmatprep.subr.bf16.mxu0 %v8337_v26 }
 0x206   :  { %7890 = vmatpush3.bf16.msra.mxu0 %v8337_v26 }
 0x207   :  { %7891 = vmatprep.subr.bf16.mxu0 %v8338_v28 }
 0x209   :  { %7876 = vmatmul.mubr.bf16.gmra.mrb[36].mxu0 %v9519_v62  ;;  %v8342_v62 = vld [vmem:[%s10776_s3 + $0x130] sm:$0xff]  }
 0x20a   :  { %7879 = vmatprep.mubr.bf16.mxu0 %v9542_v20  ;;  %7892 = vmatpush3.bf16.msra.mxu0 %v8338_v28  ;;  %v8343_v20 = vld [vmem:[%s10776_s3 + $0x138] sm:$0xff]  }
 0x20b   :  { %7893 = vmatprep.subr.bf16.mxu0 %v8339_v44 }
 0x20e   :  { %7894 = vmatpush3.bf16.msra.mxu0 %v8339_v44 }
 0x20f   :  { %7895 = vmatprep.subr.bf16.mxu0 %v8340_v27 }
 0x211   :  { %7880 = vmatmul.mubr.bf16.gmra.mrb[40].mxu0 %v9539_v17  ;;  %v8349_v17 = vld [vmem:[%s10778_s5 + $0x204] ss:$16 sps:$4 sm:$0xff]  }
 0x212   :  { %7883 = vmatprep.mubr.bf16.mxu0 %v9560_v31  ;;  %7896 = vmatpush3.bf16.msra.mxu0 %v8340_v27  ;;  %v8371_v31 = vld [vmem:[%s10778_s5 + $0x280] ss:$16 sps:$4 sm:$0xff]  }
 0x213   :  { %7897 = vmatprep.subr.bf16.mxu0 %v8341_v0 }
 0x216   :  { %7898 = vmatpush3.bf16.msra.mxu0 %v8341_v0 }
 0x217   :  { %7899 = vmatprep.subr.bf16.mxu0 %v8342_v62 }
 0x219   :  { %7884 = vmatmul.mubr.bf16.gmra.mrb[44].mxu0 %v9558_v57  ;;  %v8373_v57 = vld [vmem:[%s10778_s5 + $0x284] ss:$16 sps:$4 sm:$0xff]  }
 0x21a   :  { %7900 = vmatpush3.bf16.msra.mxu0 %v8342_v62  ;;  %7903 = vmatprep.mubr.bf16.mxu0 %v9461_v7  ;;  %v8353_v7 = vld [vmem:[%s10778_s5 + $0x220] ss:$16 sps:$4 sm:$0xff]  }
 0x21b   :  { %7901 = vmatprep.subr.bf16.mxu0 %v8343_v20 }
 0x21e   :  { %7902 = vmatpush3.bf16.msra.mxu0 %v8343_v20 }
 0x21f   :  { %3923 = vmatprep.subr.bf16.mxu0 %v8349_v17 }
 0x221   :  { %7904 = vmatmul.mubr.bf16.vlgmr.msra.gmra.mrb[32].mxu0 %v9471_v22  ;;  %v8365_v22 = vld [vmem:[%s10778_s5 + $0x260] ss:$16 sps:$4 sm:$0xff]  }
 0x222   :  { %7907 = vmatprep.mubr.bf16.mxu0 %v9469_v21  ;;  %3924 = vmatpush1.bf16.msra.mxu0 %v8347_v56  ;;  %v8367_v21 = vld [vmem:[%s10778_s5 + $0x264] ss:$16 sps:$4 sm:$0xff]  }
 0x223   :  { %3925 = vmatprep.subr.bf16.mxu0 %v8355_v29 }
 0x226   :  { %3926 = vmatpush1.bf16.msra.mxu0 %v8353_v7 }
 0x227   :  { %3927 = vmatprep.subr.bf16.mxu0 %v8361_v45 }
 0x229   :  { %7908 = vmatmul.mubr.bf16.gmra.mrb[36].mxu0 %v9479_v36  ;;  %v8377_v36 = vld [vmem:[%s10778_s5 + $0x2a0] ss:$16 sps:$4 sm:$0xff]  }
 0x22a   :  { %7911 = vmatprep.mubr.bf16.mxu0 %v9477_v35  ;;  %3928 = vmatpush1.bf16.msra.mxu0 %v8359_v30  ;;  %v8379_v35 = vld [vmem:[%s10778_s5 + $0x2a4] ss:$16 sps:$4 sm:$0xff]   ;;  %v8440_v30 = vld [vmem:[%s10778_s5] ss:$16 sps:$4 sm:$0xff]  }
 0x22b   :  { %3929 = vmatprep.subr.bf16.mxu0 %v8367_v21 }
 0x22e   :  { %3930 = vmatpush1.bf16.msra.mxu0 %v8365_v22 }
 0x22f   :  { %3931 = vmatprep.subr.bf16.mxu0 %v8373_v57  ;;  %v8445_v57 = vld [vmem:[%s10778_s5 + $0x24] ss:$16 sps:$4 sm:$0xff]  }
 0x231   :  { %7912 = vmatmul.mubr.bf16.gmra.mrb[40].mxu0 %v9487_v5  ;;  %v8389_v5 = vld [vmem:[%s10778_s5 + $0x2e0] ss:$16 sps:$4 sm:$0xff]  }
 0x232   :  { %7915 = vmatprep.mubr.bf16.mxu0 %v9485_v4  ;;  %3932 = vmatpush1.bf16.msra.mxu0 %v8371_v31  ;;  %v8391_v4 = vld [vmem:[%s10778_s5 + $0x2e4] ss:$16 sps:$4 sm:$0xff]  }
 0x233   :  { %3933 = vmatprep.subr.bf16.mxu0 %v8379_v35 }
 0x236   :  { %3934 = vmatpush1.bf16.msra.mxu0 %v8377_v36 }
 0x237   :  { %3935 = vmatprep.subr.bf16.mxu0 %v8385_v32 }
 0x239   :  { %7916 = vmatmul.mubr.bf16.gmra.mrb[44].mxu0 %v8848_v41  ;;  %v8403_v41 = vld [vmem:[%s10778_s5 + $0x324] ss:$16 sps:$4 sm:$0xff]  }
 0x23a   :  { %3936 = vmatpush1.bf16.msra.mxu0 %v8383_v58 }
 0x23b   :  { %3937 = vmatprep.subr.bf16.mxu0 %v8391_v4 }
 0x23e   :  { %3938 = vmatpush1.bf16.msra.mxu0 %v8389_v5  ;;  %v8443_v5 = vld [vmem:[%s10778_s5 + $0x20] ss:$16 sps:$4 sm:$0xff]  }
 0x23f   :  { %3939 = vmatprep.subr.bf16.mxu0 %v8397_v33 }
 0x242   :  { %3940 = vmatpush1.bf16.msra.mxu0 %v8395_v46  ;;  %v8448_v46 = vld [vmem:[%s10778_s5 + $0x44] ss:$16 sps:$4 sm:$0xff]  }
 0x243   :  { %3941 = vmatprep.subr.bf16.mxu0 %v8403_v41 }
 0x246   :  { %3942 = vmatpush1.bf16.msra.mxu0 %v8401_v34 }
 0x247   :  { %3943 = vmatprep.subr.bf16.mxu0 %v8409_v47 }
 0x24a   :  { %3944 = vmatpush1.bf16.msra.mxu0 %v8407_v48 }
 0x24b   :  { %3945 = vmatprep.subr.bf16.mxu0 %v8415_v37 }
 0x24e   :  { %3946 = vmatpush1.bf16.msra.mxu0 %v8413_v38  ;;  %v8446_v38 = vld [vmem:[%s10778_s5 + $0x40] ss:$16 sps:$4 sm:$0xff]  }
 0x24f   :  { %3947 = vmatprep.subr.bf16.mxu0 %v8421_v49  ;;  %v8451_v49 = vld [vmem:[%s10778_s5 + $0x64] ss:$16 sps:$4 sm:$0xff]  }
 0x252   :  { %3948 = vmatpush1.bf16.msra.mxu0 %v8419_v60 }
 0x253   :  { %3949 = vmatprep.subr.bf16.mxu0 %v8427_v63 }
 0x256   :  { %3950 = vmatpush1.bf16.msra.mxu0 %v8425_v1 }
 0x257   :  { %3951 = vmatprep.subr.bf16.mxu0 %v8433_v6 }
 0x25a   :  { %3952 = vmatpush1.bf16.msra.mxu0 %v8431_v50  ;;  %v8454_v50 = vld [vmem:[%s10778_s5 + $0x84] ss:$16 sps:$4 sm:$0xff]  }
 0x25b   :  { %3953 = vmatprep.subr.bf16.mxu0 %v8439_v10 }
 0x25e   :  { %3954 = vmatpush1.bf16.msra.mxu0 %v8437_v11 }
 0x2f4   :  { %v7905_v13 = vpop.f32.mrb[32].mxu0 }
 0x2f5   :  { %v3421_v14 = vadd.f32 %v7905_v13, %v9868_v12  ;;  %v3333_v15 = vpop.f32.mrb[33].mxu0  ;;  %v8452_v13 = vld [vmem:[%s10778_s5 + $0x80] ss:$16 sps:$4 sm:$0xff]  }
 0x2f6   :  { %v3419_v53 = vadd.f32 %v9868_v12, %v3333_v15  ;;  %v7906_v8 = vpop.f32.mrb[34].mxu0  ;;  %v8455_v15 = vld [vmem:[%s10778_s5 + $0xa0] ss:$16 sps:$4 sm:$0xff]  }
 0x2f7   :  { %v3422_v16 = vadd.f32 %v7906_v8, %v9868_v12  ;;  %v3336_v18 = vpop.f32.mrb[35].mxu0  ;;  %v3437_v23 = vmax.f32 %v3421_v14, 0.0  ;;  %v8458_v8 = vld [vmem:[%s10778_s5 + $0xc0] ss:$16 sps:$4 sm:$0xff]  }
 0x2f8   :  { %v3420_v19 = vadd.f32 %v9868_v12, %v3336_v18  ;;  %v3435_v24 = vmax.f32 %v3419_v53, 0.0  ;;  %v8460_v53 = vld [vmem:[%s10778_s5 + $0xc4] ss:$16 sps:$4 sm:$0xff]   ;;  %v8461_v18 = vld [vmem:[%s10778_s5 + $0xe0] ss:$16 sps:$4 sm:$0xff]  }
 0x2f9   :  { %v3438_v42 = vmax.f32 %v3422_v16, 0.0  ;;  %v8463_v16 = vld [vmem:[%s10778_s5 + $0xe4] ss:$16 sps:$4 sm:$0xff]  }
 0x2fa   :  { %v3436_v25 = vmax.f32 %v3420_v19, 0.0  ;;  %v8466_v19 = vld [vmem:[%s10778_s5 + $0x104] ss:$16 sps:$4 sm:$0xff]  }
 0x2fb   :  { %v9874_v54 = vpack.c.bf16 %v3438_v42, %v3437_v23  ;;  %v8464_v23 = vld [vmem:[%s10778_s5 + $0x100] ss:$16 sps:$4 sm:$0xff]   ;;  %v8469_v42 = vld [vmem:[%s10778_s5 + $0x124] ss:$16 sps:$4 sm:$0xff]  }
 0x2fc   :  { %v9876_v43 = vpack.c.bf16 %v3436_v25, %v3435_v24  ;;  %v7909_v55 = vpop.f32.mrb[36].mxu0  ;;  %v8467_v24 = vld [vmem:[%s10778_s5 + $0x120] ss:$16 sps:$4 sm:$0xff]   ;;  %v8472_v25 = vld [vmem:[%s10778_s5 + $0x144] ss:$16 sps:$4 sm:$0xff]  }
 0x2fd   :  { %v3425_v26 = vadd.f32 %v7909_v55, %v9868_v12  ;;  %v3349_v28 = vpop.f32.mrb[37].mxu0  ;;  %v8470_v55 = vld [vmem:[%s10778_s5 + $0x140] ss:$16 sps:$4 sm:$0xff]  }
 0x2fe   :  { %v3423_v44 = vadd.f32 %v9868_v12, %v3349_v28  ;;  %v7910_v27 = vpop.f32.mrb[38].mxu0  ;;  %v8473_v28 = vld [vmem:[%s10778_s5 + $0x160] ss:$16 sps:$4 sm:$0xff]  }
 0x2ff   :  { %v3426_v0 = vadd.f32 %v7910_v27, %v9868_v12  ;;  %v3352_v62 = vpop.f32.mrb[39].mxu0  ;;  %v3441_v17 = vmax.f32 %v3425_v26, 0.0  ;;  %v8475_v26 = vld [vmem:[%s10778_s5 + $0x164] ss:$16 sps:$4 sm:$0xff]   ;;  %v8476_v27 = vld [vmem:[%s10778_s5 + $0x180] ss:$16 sps:$4 sm:$0xff]  }
 0x300   :  { %v3424_v20 = vadd.f32 %v9868_v12, %v3352_v62  ;;  %v3439_v29 = vmax.f32 %v3423_v44, 0.0  ;;  %v8478_v44 = vld [vmem:[%s10778_s5 + $0x184] ss:$16 sps:$4 sm:$0xff]   ;;  %v8479_v62 = vld [vmem:[%s10778_s5 + $0x1a0] ss:$16 sps:$4 sm:$0xff]  }
 0x301   :  { %v3442_v56 = vmax.f32 %v3426_v0, 0.0  ;;  %v8481_v0 = vld [vmem:[%s10778_s5 + $0x1a4] ss:$16 sps:$4 sm:$0xff]  }
 0x302   :  { %v3440_v7 = vmax.f32 %v3424_v20, 0.0  ;;  %v8484_v20 = vld [vmem:[%s10778_s5 + $0x1c4] ss:$16 sps:$4 sm:$0xff]  }
 0x303   :  { %v3458_v45 = vpack.c.bf16 %v3442_v56, %v3441_v17  ;;  %v8482_v17 = vld [vmem:[%s10778_s5 + $0x1c0] ss:$16 sps:$4 sm:$0xff]   ;;  %v8487_v56 = vld [vmem:[%s10778_s5 + $0x1e4] ss:$16 sps:$4 sm:$0xff]  }
 0x304   :  { %v3455_v21 = vpack.c.bf16 %v3440_v7, %v3439_v29  ;;  %v7913_v22 = vpop.f32.mrb[40].mxu0  ;;  %v8485_v29 = vld [vmem:[%s10778_s5 + $0x1e0] ss:$16 sps:$4 sm:$0xff]   ;;  %v8490_v7 = vld [vmem:[%s10778_s5 + $0xc] ss:$16 sps:$4 sm:$0xff]  }
 0x305   :  { %v3429_v31 = vadd.f32 %v7913_v22, %v9868_v12  ;;  %v3365_v35 = vpop.f32.mrb[41].mxu0  ;;  %3955 = vmatprep.mubr.bf16.mxu0 %v3458_v45  ;;  %3998 = vmatprep.mubr.bf16.mxu1 %v3458_v45  ;;  %v8488_v45 = vld [vmem:[%s10778_s5 + $0x8] ss:$16 sps:$4 sm:$0xff]   ;;  %v8496_v22 = vld [vmem:[%s10778_s5 + $0x4c] ss:$16 sps:$4 sm:$0xff]  }
 0x306   :  { %v3427_v36 = vadd.f32 %v9868_v12, %v3365_v35  ;;  %v7914_v32 = vpop.f32.mrb[42].mxu0  ;;  %3956 = vmatmul.mubr.bf16.vlgmr.msra.gmra.mrb[48].mxu0 %v3455_v21  ;;  %3999 = vmatmul.mubr.bf16.vlgmr.msra.gmra.mrb[16].mxu1 %v3455_v21  ;;  %v8491_v21 = vld [vmem:[%s10778_s5 + $0x28] ss:$16 sps:$4 sm:$0xff]   ;;  %v8502_v35 = vld [vmem:[%s10778_s5 + $0x8c] ss:$16 sps:$4 sm:$0xff]  }
 0x307   :  { %v3430_v58 = vadd.f32 %v7914_v32, %v9868_v12  ;;  %4330 = vmatpush1.bf16.msra.mxu1 %v8440_v30  ;;  %v3368_v4 = vpop.f32.mrb[43].mxu0  ;;  %4361 = vmatprep.mubr.bf16.mxu1 %v9874_v54  ;;  %v3445_v41 = vmax.f32 %v3429_v31, 0.0  ;;  %v8493_v30 = vld [vmem:[%s10778_s5 + $0x2c] ss:$16 sps:$4 sm:$0xff]  }
 0x308   :  { %v3428_v33 = vadd.f32 %v9868_v12, %v3368_v4  ;;  %4331 = vmatprep.subr.bf16.mxu1 %v8445_v57  ;;  %v3443_v47 = vmax.f32 %v3427_v36, 0.0  ;;  %v8494_v57 = vld [vmem:[%s10778_s5 + $0x48] ss:$16 sps:$4 sm:$0xff]   ;;  %v8499_v31 = vld [vmem:[%s10778_s5 + $0x6c] ss:$16 sps:$4 sm:$0xff]  }
 0x309   :  { %v3446_v34 = vmax.f32 %v3430_v58, 0.0  ;;  %v8500_v36 = vld [vmem:[%s10778_s5 + $0x88] ss:$16 sps:$4 sm:$0xff]   ;;  %v8505_v32 = vld [vmem:[%s10778_s5 + $0xac] ss:$16 sps:$4 sm:$0xff]  }
 0x30a   :  { %v3444_v48 = vmax.f32 %v3428_v33, 0.0  ;;  %v8503_v58 = vld [vmem:[%s10778_s5 + $0xa8] ss:$16 sps:$4 sm:$0xff]   ;;  %v8508_v4 = vld [vmem:[%s10778_s5 + $0xcc] ss:$16 sps:$4 sm:$0xff]  }
 0x30b   :  { %v9899_v37 = vpack.c.bf16 %v3446_v34, %v3445_v41  ;;  %4332 = vmatpush1.bf16.msra.mxu1 %v8443_v5  ;;  %v8506_v5 = vld [vmem:[%s10778_s5 + $0xc8] ss:$16 sps:$4 sm:$0xff]   ;;  %v8511_v33 = vld [vmem:[%s10778_s5 + $0xec] ss:$16 sps:$4 sm:$0xff]  }
 0x30c   :  { %v9904_v39 = vpack.c.bf16 %v3444_v48, %v3443_v47  ;;  %v7917_v59 = vpop.f32.mrb[44].mxu0  ;;  %4333 = vmatprep.subr.bf16.mxu1 %v8448_v46  ;;  %v8509_v46 = vld [vmem:[%s10778_s5 + $0xe8] ss:$16 sps:$4 sm:$0xff]   ;;  %v8514_v41 = vld [vmem:[%s10778_s5 + $0x10c] ss:$16 sps:$4 sm:$0xff]  }
 0x30d   :  { %v3433_v60 = vadd.f32 %v7917_v59, %v9868_v12  ;;  %v3381_v61 = vpop.f32.mrb[45].mxu0  ;;  %v8512_v34 = vld [vmem:[%s10778_s5 + $0x108] ss:$16 sps:$4 sm:$0xff]   ;;  %v8517_v47 = vld [vmem:[%s10778_s5 + $0x12c] ss:$16 sps:$4 sm:$0xff]  }
 0x30e   :  { %v3431_v40 = vadd.f32 %v9868_v12, %v3381_v61  ;;  %v7918_v63 = vpop.f32.mrb[46].mxu0  ;;  %v8515_v48 = vld [vmem:[%s10778_s5 + $0x128] ss:$16 sps:$4 sm:$0xff]   ;;  %v8526_v61 = vld [vmem:[%s10778_s5 + $0x18c] ss:$16 sps:$4 sm:$0xff]  }
 0x30f   :  { %v3434_v1 = vadd.f32 %v7918_v63, %v9868_v12  ;;  %4334 = vmatpush1.bf16.msra.mxu1 %v8446_v38  ;;  %v3384_v2 = vpop.f32.mrb[47].mxu0  ;;  %v3449_v9 = vmax.f32 %v3433_v60, 0.0  ;;  %v8520_v38 = vld [vmem:[%s10778_s5 + $0x14c] ss:$16 sps:$4 sm:$0xff]   ;;  %v8518_v59 = vld [vmem:[%s10778_s5 + $0x148] ss:$16 sps:$4 sm:$0xff]  }
 0x310   :  { %v3432_v6 = vadd.f32 %v9868_v12, %v3384_v2  ;;  %4335 = vmatprep.subr.bf16.mxu1 %v8451_v49  ;;  %v3447_v10 = vmax.f32 %v3431_v40, 0.0  ;;  %v8457_v12 = vld [vmem:[%s10778_s5 + $0xa4] ss:$16 sps:$4 sm:$0xff]   ;;  %v8523_v49 = vld [vmem:[%s10778_s5 + $0x16c] ss:$16 sps:$4 sm:$0xff]  }
 0x311   :  { %v3450_v51 = vmax.f32 %v3434_v1, 0.0  ;;  %v8521_v60 = vld [vmem:[%s10778_s5 + $0x168] ss:$16 sps:$4 sm:$0xff]   ;;  %v8529_v63 = vld [vmem:[%s10778_s5 + $0x1ac] ss:$16 sps:$4 sm:$0xff]  }
 0x312   :  { %v3448_v11 = vmax.f32 %v3432_v6, 0.0  ;;  %v8524_v40 = vld [vmem:[%s10778_s5 + $0x188] ss:$16 sps:$4 sm:$0xff]   ;;  %v8532_v2 = vld [vmem:[%s10778_s5 + $0x1cc] ss:$16 sps:$4 sm:$0xff]  }
 0x313   :  { %v9919_v52 = vpack.c.bf16 %v3450_v51, %v3449_v9  ;;  %4336 = vmatpush1.bf16.msra.mxu1 %v8449_v3  ;;  %v8527_v1 = vld [vmem:[%s10778_s5 + $0x1a8] ss:$16 sps:$4 sm:$0xff]   ;;  %v8535_v6 = vld [vmem:[%s10778_s5 + $0x1ec] ss:$16 sps:$4 sm:$0xff]   ;;  %v8538_v9 = vld [vmem:[%s10778_s5 + $0x404] ss:$16 sps:$4 sm:$0xff]  }
 0x314   :  { %v9924_v14 = vpack.c.bf16 %v3448_v11, %v3447_v10  ;;  %4337 = vmatprep.subr.bf16.mxu1 %v8454_v50  ;;  %v8530_v3 = vld [vmem:[%s10778_s5 + $0x1c8] ss:$16 sps:$4 sm:$0xff]   ;;  %v8536_v51 = vld [vmem:[%s10778_s5 + $0x400] ss:$16 sps:$4 sm:$0xff]   ;;  %v8541_v10 = vld [vmem:[%s10778_s5 + $0x424] ss:$16 sps:$4 sm:$0xff]  }
 0x315   :  { %v8533_v50 = vld [vmem:[%s10778_s5 + $0x1e8] ss:$16 sps:$4 sm:$0xff]   ;;  %v8539_v11 = vld [vmem:[%s10778_s5 + $0x420] ss:$16 sps:$4 sm:$0xff]  }
 0x317   :  { %4338 = vmatpush1.bf16.msra.mxu1 %v8452_v13  ;;  %v8544_v13 = vld [vmem:[%s10778_s5 + $0x444] ss:$16 sps:$4 sm:$0xff]  }
 0x318   :  { %4339 = vmatprep.subr.bf16.mxu1 %v8457_v12  ;;  %v8542_v12 = vld [vmem:[%s10778_s5 + $0x440] ss:$16 sps:$4 sm:$0xff]  }
 0x31b   :  { %4340 = vmatpush1.bf16.msra.mxu1 %v8455_v15  ;;  %v8545_v15 = vld [vmem:[%s10778_s5 + $0x460] ss:$16 sps:$4 sm:$0xff]  }
 0x31c   :  { %4341 = vmatprep.subr.bf16.mxu1 %v8460_v53  ;;  %v8550_v53 = vld [vmem:[%s10778_s5 + $0x484] ss:$16 sps:$4 sm:$0xff]  }
 0x31f   :  { %4342 = vmatpush1.bf16.msra.mxu1 %v8458_v8  ;;  %v8548_v8 = vld [vmem:[%s10778_s5 + $0x480] ss:$16 sps:$4 sm:$0xff]  }
 0x320   :  { %4343 = vmatprep.subr.bf16.mxu1 %v8463_v16  ;;  %v8553_v16 = vld [vmem:[%s10778_s5 + $0x4a4] ss:$16 sps:$4 sm:$0xff]  }
 0x323   :  { %4344 = vmatpush1.bf16.msra.mxu1 %v8461_v18  ;;  %v8551_v18 = vld [vmem:[%s10778_s5 + $0x4a0] ss:$16 sps:$4 sm:$0xff]  }
 0x324   :  { %4345 = vmatprep.subr.bf16.mxu1 %v8466_v19  ;;  %v8556_v19 = vld [vmem:[%s10778_s5 + $0x4c4] ss:$16 sps:$4 sm:$0xff]  }
 0x327   :  { %4346 = vmatpush1.bf16.msra.mxu1 %v8464_v23  ;;  %v8554_v23 = vld [vmem:[%s10778_s5 + $0x4c0] ss:$16 sps:$4 sm:$0xff]  }
 0x328   :  { %4347 = vmatprep.subr.bf16.mxu1 %v8469_v42  ;;  %v8559_v42 = vld [vmem:[%s10778_s5 + $0x4e4] ss:$16 sps:$4 sm:$0xff]  }
 0x32b   :  { %4348 = vmatpush1.bf16.msra.mxu1 %v8467_v24  ;;  %v8557_v24 = vld [vmem:[%s10778_s5 + $0x4e0] ss:$16 sps:$4 sm:$0xff]  }
 0x32c   :  { %4349 = vmatprep.subr.bf16.mxu1 %v8472_v25  ;;  %v8562_v25 = vld [vmem:[%s10778_s5 + $0x504] ss:$16 sps:$4 sm:$0xff]  }
 0x32f   :  { %4350 = vmatpush1.bf16.msra.mxu1 %v8470_v55  ;;  %v8560_v55 = vld [vmem:[%s10778_s5 + $0x500] ss:$16 sps:$4 sm:$0xff]  }
 0x330   :  { %4351 = vmatprep.subr.bf16.mxu1 %v8475_v26  ;;  %v8565_v26 = vld [vmem:[%s10778_s5 + $0x524] ss:$16 sps:$4 sm:$0xff]  }
 0x333   :  { %4352 = vmatpush1.bf16.msra.mxu1 %v8473_v28  ;;  %v8563_v28 = vld [vmem:[%s10778_s5 + $0x520] ss:$16 sps:$4 sm:$0xff]  }
 0x334   :  { %4353 = vmatprep.subr.bf16.mxu1 %v8478_v44  ;;  %v8568_v44 = vld [vmem:[%s10778_s5 + $0x544] ss:$16 sps:$4 sm:$0xff]  }
 0x337   :  { %4354 = vmatpush1.bf16.msra.mxu1 %v8476_v27  ;;  %v8566_v27 = vld [vmem:[%s10778_s5 + $0x540] ss:$16 sps:$4 sm:$0xff]  }
 0x338   :  { %4355 = vmatprep.subr.bf16.mxu1 %v8481_v0  ;;  %v8571_v0 = vld [vmem:[%s10778_s5 + $0x564] ss:$16 sps:$4 sm:$0xff]  }
 0x33b   :  { %4356 = vmatpush1.bf16.msra.mxu1 %v8479_v62  ;;  %v8569_v62 = vld [vmem:[%s10778_s5 + $0x560] ss:$16 sps:$4 sm:$0xff]  }
 0x33c   :  { %4357 = vmatprep.subr.bf16.mxu1 %v8484_v20  ;;  %v8574_v20 = vld [vmem:[%s10778_s5 + $0x584] ss:$16 sps:$4 sm:$0xff]  }
 0x33f   :  { %4358 = vmatpush1.bf16.msra.mxu1 %v8482_v17  ;;  %v8572_v17 = vld [vmem:[%s10778_s5 + $0x580] ss:$16 sps:$4 sm:$0xff]  }
 0x340   :  { %4359 = vmatprep.subr.bf16.mxu1 %v8487_v56  ;;  %v8577_v56 = vld [vmem:[%s10778_s5 + $0x5a4] ss:$16 sps:$4 sm:$0xff]  }
 0x343   :  { %4360 = vmatpush1.bf16.msra.mxu1 %v8485_v29  ;;  %v8575_v29 = vld [vmem:[%s10778_s5 + $0x5a0] ss:$16 sps:$4 sm:$0xff]  }
 0x344   :  { %4372 = vmatprep.subr.bf16.mxu1 %v8490_v7  ;;  %v8580_v7 = vld [vmem:[%s10778_s5 + $0x5c4] ss:$16 sps:$4 sm:$0xff]  }
 0x346   :  { %4362 = vmatmul.mubr.bf16.vlgmr.msra.gmra.mrb[20].mxu1 %v9876_v43 }
 0x347   :  { %4373 = vmatpush1.bf16.msra.mxu1 %v8488_v45  ;;  %4404 = vmatprep.mubr.bf16.mxu1 %v9874_v54  ;;  %v8497_v54 = vld [vmem:[%s10778_s5 + $0x68] ss:$16 sps:$4 sm:$0xff]   ;;  %v8578_v45 = vld [vmem:[%s10778_s5 + $0x5c0] ss:$16 sps:$4 sm:$0xff]  }
 0x348   :  { %4374 = vmatprep.subr.bf16.mxu1 %v8493_v30  ;;  %v8583_v30 = vld [vmem:[%s10778_s5 + $0x5e4] ss:$16 sps:$4 sm:$0xff]  }
 0x34b   :  { %4375 = vmatpush1.bf16.msra.mxu1 %v8491_v21  ;;  %v8581_v21 = vld [vmem:[%s10778_s5 + $0x5e0] ss:$16 sps:$4 sm:$0xff]  }
 0x34c   :  { %4376 = vmatprep.subr.bf16.mxu1 %v8496_v22  ;;  %v8586_v22 = vld [vmem:[%s10778_s5 + $0x40c] ss:$16 sps:$4 sm:$0xff]  }
 0x34f   :  { %4377 = vmatpush1.bf16.msra.mxu1 %v8494_v57  ;;  %v8584_v57 = vld [vmem:[%s10778_s5 + $0x408] ss:$16 sps:$4 sm:$0xff]  }
 0x350   :  { %4378 = vmatprep.subr.bf16.mxu1 %v8499_v31  ;;  %v8589_v31 = vld [vmem:[%s10778_s5 + $0x42c] ss:$16 sps:$4 sm:$0xff]  }
 0x353   :  { %4379 = vmatpush1.bf16.msra.mxu1 %v8497_v54  ;;  %v8587_v54 = vld [vmem:[%s10778_s5 + $0x428] ss:$16 sps:$4 sm:$0xff]  }
 0x354   :  { %4380 = vmatprep.subr.bf16.mxu1 %v8502_v35  ;;  %v8592_v35 = vld [vmem:[%s10778_s5 + $0x44c] ss:$16 sps:$4 sm:$0xff]  }
 0x357   :  { %4381 = vmatpush1.bf16.msra.mxu1 %v8500_v36  ;;  %v8590_v36 = vld [vmem:[%s10778_s5 + $0x448] ss:$16 sps:$4 sm:$0xff]  }
 0x358   :  { %4382 = vmatprep.subr.bf16.mxu1 %v8505_v32  ;;  %v8595_v32 = vld [vmem:[%s10778_s5 + $0x46c] ss:$16 sps:$4 sm:$0xff]  }
 0x35b   :  { %4383 = vmatpush1.bf16.msra.mxu1 %v8503_v58  ;;  %v8598_v58 = vld [vmem:[%s10778_s5 + $0x48c] ss:$16 sps:$4 sm:$0xff]  }
 0x35c   :  { %4384 = vmatprep.subr.bf16.mxu1 %v8508_v4  ;;  %v8596_v4 = vld [vmem:[%s10778_s5 + $0x488] ss:$16 sps:$4 sm:$0xff]  }
 0x35f   :  { %4385 = vmatpush1.bf16.msra.mxu1 %v8506_v5  ;;  %v8601_v5 = vld [vmem:[%s10778_s5 + $0x4ac] ss:$16 sps:$4 sm:$0xff]  }
 0x360   :  { %4386 = vmatprep.subr.bf16.mxu1 %v8511_v33  ;;  %v8599_v33 = vld [vmem:[%s10778_s5 + $0x4a8] ss:$16 sps:$4 sm:$0xff]  }
 0x363   :  { %4387 = vmatpush1.bf16.msra.mxu1 %v8509_v46  ;;  %v8604_v46 = vld [vmem:[%s10778_s5 + $0x4cc] ss:$16 sps:$4 sm:$0xff]  }
 0x364   :  { %4388 = vmatprep.subr.bf16.mxu1 %v8514_v41 }
 0x367   :  { %4389 = vmatpush1.bf16.msra.mxu1 %v8512_v34 }
 0x368   :  { %4390 = vmatprep.subr.bf16.mxu1 %v8517_v47 }
 0x36b   :  { %4391 = vmatpush1.bf16.msra.mxu1 %v8515_v48  ;;  %v8602_v48 = vld [vmem:[%s10778_s5 + $0x4c8] ss:$16 sps:$4 sm:$0xff]  }
 0x36c   :  { %4392 = vmatprep.subr.bf16.mxu1 %v8520_v38 }
 0x36f   :  { %4393 = vmatpush1.bf16.msra.mxu1 %v8518_v59  ;;  %v8607_v59 = vld [vmem:[%s10778_s5 + $0x4ec] ss:$16 sps:$4 sm:$0xff]  }
 0x370   :  { %4394 = vmatprep.subr.bf16.mxu1 %v8523_v49  ;;  %v8605_v49 = vld [vmem:[%s10778_s5 + $0x4e8] ss:$16 sps:$4 sm:$0xff]  }
 0x373   :  { %4395 = vmatpush1.bf16.msra.mxu1 %v8521_v60  ;;  %v8610_v60 = vld [vmem:[%s10778_s5 + $0x50c] ss:$16 sps:$4 sm:$0xff]  }
 0x374   :  { %4396 = vmatprep.subr.bf16.mxu1 %v8526_v61  ;;  %v8608_v61 = vld [vmem:[%s10778_s5 + $0x508] ss:$16 sps:$4 sm:$0xff]  }
 0x377   :  { %4397 = vmatpush1.bf16.msra.mxu1 %v8524_v40  ;;  %v8613_v40 = vld [vmem:[%s10778_s5 + $0x52c] ss:$16 sps:$4 sm:$0xff]  }
 0x378   :  { %4398 = vmatprep.subr.bf16.mxu1 %v8529_v63  ;;  %v8611_v63 = vld [vmem:[%s10778_s5 + $0x528] ss:$16 sps:$4 sm:$0xff]  }
 0x37b   :  { %4399 = vmatpush1.bf16.msra.mxu1 %v8527_v1  ;;  %v8616_v1 = vld [vmem:[%s10778_s5 + $0x54c] ss:$16 sps:$4 sm:$0xff]  }
 0x37c   :  { %4400 = vmatprep.subr.bf16.mxu1 %v8532_v2  ;;  %v8614_v2 = vld [vmem:[%s10778_s5 + $0x548] ss:$16 sps:$4 sm:$0xff]  }
 0x37f   :  { %4401 = vmatpush1.bf16.msra.mxu1 %v8530_v3  ;;  %v8619_v3 = vld [vmem:[%s10778_s5 + $0x56c] ss:$16 sps:$4 sm:$0xff]  }
 0x380   :  { %4402 = vmatprep.subr.bf16.mxu1 %v8535_v6  ;;  %v8617_v6 = vld [vmem:[%s10778_s5 + $0x568] ss:$16 sps:$4 sm:$0xff]  }
 0x383   :  { %4403 = vmatpush1.bf16.msra.mxu1 %v8533_v50  ;;  %v8622_v50 = vld [vmem:[%s10778_s5 + $0x58c] ss:$16 sps:$4 sm:$0xff]  }
 0x384   :  { %4802 = vmatprep.subr.bf16.mxu1 %v8538_v9  ;;  %v8620_v9 = vld [vmem:[%s10778_s5 + $0x588] ss:$16 sps:$4 sm:$0xff]  }
 0x386   :  { %4405 = vmatmul.mubr.bf16.vlgmr.msra.gmra.mrb[16].mxu1 %v9876_v43  ;;  %v8547_v43 = vld [vmem:[%s10778_s5 + $0x464] ss:$16 sps:$4 sm:$0xff]  }
 0x387   :  { %4803 = vmatpush1.bf16.msra.mxu1 %v8536_v51  ;;  %4834 = vmatprep.mubr.bf16.mxu1 %v9899_v37  ;;  %v8625_v51 = vld [vmem:[%s10778_s5 + $0x5ac] ss:$16 sps:$4 sm:$0xff]  }
 0x388   :  { %4804 = vmatprep.subr.bf16.mxu1 %v8541_v10  ;;  %v8623_v10 = vld [vmem:[%s10778_s5 + $0x5a8] ss:$16 sps:$4 sm:$0xff]  }
 0x38b   :  { %4805 = vmatpush1.bf16.msra.mxu1 %v8539_v11  ;;  %v8628_v11 = vld [vmem:[%s10778_s5 + $0x5cc] ss:$16 sps:$4 sm:$0xff]  }
 0x38c   :  { %4806 = vmatprep.subr.bf16.mxu1 %v8544_v13  ;;  %v8626_v13 = vld [vmem:[%s10778_s5 + $0x5c8] ss:$16 sps:$4 sm:$0xff]  }
 0x38f   :  { %4807 = vmatpush1.bf16.msra.mxu1 %v8542_v12  ;;  %v8631_v12 = vld [vmem:[%s10778_s5 + $0x5ec] ss:$16 sps:$4 sm:$0xff]  }
 0x390   :  { %4808 = vmatprep.subr.bf16.mxu1 %v8547_v43  ;;  %v8629_v43 = vld [vmem:[%s10778_s5 + $0x5e8] ss:$16 sps:$4 sm:$0xff]  }
 0x393   :  { %4809 = vmatpush1.bf16.msra.mxu1 %v8545_v15  ;;  %v8634_v15 = vld [vmem:[%s10778_s5 + $0x604] ss:$16 sps:$4 sm:$0xff]  }
 0x394   :  { %4810 = vmatprep.subr.bf16.mxu1 %v8550_v53  ;;  %v8632_v53 = vld [vmem:[%s10778_s5 + $0x600] ss:$16 sps:$4 sm:$0xff]  }
 0x397   :  { %4811 = vmatpush1.bf16.msra.mxu1 %v8548_v8  ;;  %v8637_v8 = vld [vmem:[%s10778_s5 + $0x624] ss:$16 sps:$4 sm:$0xff]  }
 0x398   :  { %4812 = vmatprep.subr.bf16.mxu1 %v8553_v16  ;;  %v8635_v16 = vld [vmem:[%s10778_s5 + $0x620] ss:$16 sps:$4 sm:$0xff]  }
 0x39b   :  { %4813 = vmatpush1.bf16.msra.mxu1 %v8551_v18  ;;  %v8640_v18 = vld [vmem:[%s10778_s5 + $0x644] ss:$16 sps:$4 sm:$0xff]  }
 0x39c   :  { %4814 = vmatprep.subr.bf16.mxu1 %v8556_v19  ;;  %v8728_v19 = vld [vmem:[%s10780_s7] ss:$8 sps:$4 sm:$0xff]  }
 0x39f   :  { %4815 = vmatpush1.bf16.msra.mxu1 %v8554_v23  ;;  %v8733_v23 = vld [vmem:[%s10780_s7 + $0x14] ss:$8 sps:$4 sm:$0xff]  }
 0x3a0   :  { %4816 = vmatprep.subr.bf16.mxu1 %v8559_v42  ;;  %v8638_v42 = vld [vmem:[%s10778_s5 + $0x640] ss:$16 sps:$4 sm:$0xff]  }
 0x3a3   :  { %4817 = vmatpush1.bf16.msra.mxu1 %v8557_v24  ;;  %v8643_v24 = vld [vmem:[%s10778_s5 + $0x664] ss:$16 sps:$4 sm:$0xff]  }
 0x3a4   :  { %4818 = vmatprep.subr.bf16.mxu1 %v8562_v25  ;;  %v8731_v25 = vld [vmem:[%s10780_s7 + $0x10] ss:$8 sps:$4 sm:$0xff]  }
 0x3a7   :  { %4819 = vmatpush1.bf16.msra.mxu1 %v8560_v55  ;;  %v8736_v55 = vld [vmem:[%s10780_s7 + $0x24] ss:$8 sps:$4 sm:$0xff]  }
 0x3a8   :  { %4820 = vmatprep.subr.bf16.mxu1 %v8565_v26  ;;  %v8641_v26 = vld [vmem:[%s10778_s5 + $0x660] ss:$16 sps:$4 sm:$0xff]  }
 0x3ab   :  { %4821 = vmatpush1.bf16.msra.mxu1 %v8563_v28  ;;  %v8646_v28 = vld [vmem:[%s10778_s5 + $0x684] ss:$16 sps:$4 sm:$0xff]  }
 0x3ac   :  { %4822 = vmatprep.subr.bf16.mxu1 %v8568_v44  ;;  %v8734_v44 = vld [vmem:[%s10780_s7 + $0x20] ss:$8 sps:$4 sm:$0xff]  }
 0x3af   :  { %4823 = vmatpush1.bf16.msra.mxu1 %v8566_v27  ;;  %v8739_v27 = vld [vmem:[%s10780_s7 + $0x34] ss:$8 sps:$4 sm:$0xff]  }
 0x3b0   :  { %4824 = vmatprep.subr.bf16.mxu1 %v8571_v0  ;;  %v8644_v0 = vld [vmem:[%s10778_s5 + $0x680] ss:$16 sps:$4 sm:$0xff]  }
 0x3b3   :  { %4825 = vmatpush1.bf16.msra.mxu1 %v8569_v62  ;;  %v8649_v62 = vld [vmem:[%s10778_s5 + $0x6a4] ss:$16 sps:$4 sm:$0xff]  }
 0x3b4   :  { %4826 = vmatprep.subr.bf16.mxu1 %v8574_v20  ;;  %v8737_v20 = vld [vmem:[%s10780_s7 + $0x30] ss:$8 sps:$4 sm:$0xff]  }
 0x3b7   :  { %4827 = vmatpush1.bf16.msra.mxu1 %v8572_v17  ;;  %v8742_v17 = vld [vmem:[%s10780_s7 + $0x44] ss:$8 sps:$4 sm:$0xff]  }
 0x3b8   :  { %4828 = vmatprep.subr.bf16.mxu1 %v8577_v56  ;;  %v8647_v56 = vld [vmem:[%s10778_s5 + $0x6a0] ss:$16 sps:$4 sm:$0xff]  }
 0x3bb   :  { %4829 = vmatpush1.bf16.msra.mxu1 %v8575_v29  ;;  %v8652_v29 = vld [vmem:[%s10778_s5 + $0x6c4] ss:$16 sps:$4 sm:$0xff]  }
 0x3bc   :  { %4830 = vmatprep.subr.bf16.mxu1 %v8580_v7  ;;  %v8740_v7 = vld [vmem:[%s10780_s7 + $0x40] ss:$8 sps:$4 sm:$0xff]  }
 0x3bf   :  { %4831 = vmatpush1.bf16.msra.mxu1 %v8578_v45  ;;  %v8745_v45 = vld [vmem:[%s10780_s7 + $0x54] ss:$8 sps:$4 sm:$0xff]  }
 0x3c0   :  { %4832 = vmatprep.subr.bf16.mxu1 %v8583_v30  ;;  %v8650_v30 = vld [vmem:[%s10778_s5 + $0x6c0] ss:$16 sps:$4 sm:$0xff]  }
 0x3c3   :  { %4833 = vmatpush1.bf16.msra.mxu1 %v8581_v21  ;;  %v8743_v21 = vld [vmem:[%s10780_s7 + $0x50] ss:$8 sps:$4 sm:$0xff]  }
 0x3c4   :  { %4845 = vmatprep.subr.bf16.mxu1 %v8586_v22  ;;  %v8655_v22 = vld [vmem:[%s10778_s5 + $0x6e4] ss:$16 sps:$4 sm:$0xff]  }
 0x3c6   :  { %4835 = vmatmul.mubr.bf16.vlgmr.msra.gmra.mrb[20].mxu1 %v9904_v39 }
 0x3c7   :  { %4846 = vmatpush1.bf16.msra.mxu1 %v8584_v57  ;;  %4877 = vmatprep.mubr.bf16.mxu1 %v9899_v37  ;;  %v8593_v37 = vld [vmem:[%s10778_s5 + $0x468] ss:$16 sps:$4 sm:$0xff]   ;;  %v8748_v57 = vld [vmem:[%s10780_s7 + $0x64] ss:$8 sps:$4 sm:$0xff]  }
 0x3c8   :  { %4847 = vmatprep.subr.bf16.mxu1 %v8589_v31  ;;  %v8653_v31 = vld [vmem:[%s10778_s5 + $0x6e0] ss:$16 sps:$4 sm:$0xff]  }
 0x3cb   :  { %4848 = vmatpush1.bf16.msra.mxu1 %v8587_v54  ;;  %v8746_v54 = vld [vmem:[%s10780_s7 + $0x60] ss:$8 sps:$4 sm:$0xff]  }
 0x3cc   :  { %4849 = vmatprep.subr.bf16.mxu1 %v8592_v35  ;;  %v8658_v35 = vld [vmem:[%s10778_s5 + $0x704] ss:$16 sps:$4 sm:$0xff]  }
 0x3cf   :  { %4850 = vmatpush1.bf16.msra.mxu1 %v8590_v36  ;;  %v8751_v36 = vld [vmem:[%s10780_s7 + $0x74] ss:$8 sps:$4 sm:$0xff]  }
 0x3d0   :  { %4851 = vmatprep.subr.bf16.mxu1 %v8595_v32  ;;  %v8656_v32 = vld [vmem:[%s10778_s5 + $0x700] ss:$16 sps:$4 sm:$0xff]  }
 0x3d3   :  { %4852 = vmatpush1.bf16.msra.mxu1 %v8593_v37  ;;  %v8749_v37 = vld [vmem:[%s10780_s7 + $0x70] ss:$8 sps:$4 sm:$0xff]  }
 0x3d4   :  { %4853 = vmatprep.subr.bf16.mxu1 %v8598_v58  ;;  %v8661_v58 = vld [vmem:[%s10778_s5 + $0x724] ss:$16 sps:$4 sm:$0xff]  }
 0x3d7   :  { %4854 = vmatpush1.bf16.msra.mxu1 %v8596_v4  ;;  %v8754_v4 = vld [vmem:[%s10780_s7 + $0x84] ss:$8 sps:$4 sm:$0xff]  }
 0x3d8   :  { %4855 = vmatprep.subr.bf16.mxu1 %v8601_v5  ;;  %v8659_v5 = vld [vmem:[%s10778_s5 + $0x720] ss:$16 sps:$4 sm:$0xff]  }
 0x3d9   :  { %v10229_v41 = vpop.f32.mrb[48].mxu0 }
 0x3da   :  { %v10231_v34 = vpop.f32.mrb[49].mxu0 }
 0x3db   :  { %4856 = vmatpush1.bf16.msra.mxu1 %v8599_v33  ;;  %v10233_v47 = vpop.f32.mrb[50].mxu0  ;;  %v8752_v33 = vld [vmem:[%s10780_s7 + $0x80] ss:$8 sps:$4 sm:$0xff]  }
 0x3dc   :  { %v10238_v38 = vpop.f32.mrb[51].mxu0  ;;  %4857 = vmatprep.subr.bf16.mxu1 %v8604_v46  ;;  %v8664_v46 = vld [vmem:[%s10778_s5 + $0x744] ss:$16 sps:$4 sm:$0xff]  }
 0x3df   :  { %4858 = vmatpush1.bf16.msra.mxu1 %v8602_v48  ;;  %v8757_v48 = vld [vmem:[%s10780_s7 + $0x94] ss:$8 sps:$4 sm:$0xff]  }
 0x3e0   :  { %4859 = vmatprep.subr.bf16.mxu1 %v8607_v59  ;;  %v8662_v59 = vld [vmem:[%s10778_s5 + $0x740] ss:$16 sps:$4 sm:$0xff]  }
 0x3e3   :  { %4860 = vmatpush1.bf16.msra.mxu1 %v8605_v49  ;;  %v8755_v49 = vld [vmem:[%s10780_s7 + $0x90] ss:$8 sps:$4 sm:$0xff]  }
 0x3e4   :  { %4861 = vmatprep.subr.bf16.mxu1 %v8610_v60  ;;  %v8667_v60 = vld [vmem:[%s10778_s5 + $0x764] ss:$16 sps:$4 sm:$0xff]  }
 0x3e7   :  { %4862 = vmatpush1.bf16.msra.mxu1 %v8608_v61  ;;  %v8760_v61 = vld [vmem:[%s10780_s7 + $0xa4] ss:$8 sps:$4 sm:$0xff]  }
 0x3e8   :  { %4863 = vmatprep.subr.bf16.mxu1 %v8613_v40  ;;  %v8665_v40 = vld [vmem:[%s10778_s5 + $0x760] ss:$16 sps:$4 sm:$0xff]  }
 0x3eb   :  { %4864 = vmatpush1.bf16.msra.mxu1 %v8611_v63  ;;  %v8758_v63 = vld [vmem:[%s10780_s7 + $0xa0] ss:$8 sps:$4 sm:$0xff]  }
 0x3ec   :  { %4865 = vmatprep.subr.bf16.mxu1 %v8616_v1  ;;  %v8670_v1 = vld [vmem:[%s10778_s5 + $0x784] ss:$16 sps:$4 sm:$0xff]  }
 0x3ef   :  { %4866 = vmatpush1.bf16.msra.mxu1 %v8614_v2  ;;  %v8763_v2 = vld [vmem:[%s10780_s7 + $0xb4] ss:$8 sps:$4 sm:$0xff]  }
 0x3f0   :  { %4867 = vmatprep.subr.bf16.mxu1 %v8619_v3  ;;  %v8668_v3 = vld [vmem:[%s10778_s5 + $0x780] ss:$16 sps:$4 sm:$0xff]  }
 0x3f3   :  { %4868 = vmatpush1.bf16.msra.mxu1 %v8617_v6  ;;  %v8761_v6 = vld [vmem:[%s10780_s7 + $0xb0] ss:$8 sps:$4 sm:$0xff]  }
 0x3f4   :  { %4869 = vmatprep.subr.bf16.mxu1 %v8622_v50  ;;  %v8673_v50 = vld [vmem:[%s10778_s5 + $0x7a4] ss:$16 sps:$4 sm:$0xff]  }
 0x3f7   :  { %4870 = vmatpush1.bf16.msra.mxu1 %v8620_v9  ;;  %v8766_v9 = vld [vmem:[%s10780_s7 + $0xc4] ss:$8 sps:$4 sm:$0xff]  }
 0x3f8   :  { %4871 = vmatprep.subr.bf16.mxu1 %v8625_v51  ;;  %v8671_v51 = vld [vmem:[%s10778_s5 + $0x7a0] ss:$16 sps:$4 sm:$0xff]  }
 0x3fb   :  { %4872 = vmatpush1.bf16.msra.mxu1 %v8623_v10  ;;  %v8764_v10 = vld [vmem:[%s10780_s7 + $0xc0] ss:$8 sps:$4 sm:$0xff]  }
 0x3fc   :  { %4873 = vmatprep.subr.bf16.mxu1 %v8628_v11  ;;  %v8676_v11 = vld [vmem:[%s10778_s5 + $0x7c4] ss:$16 sps:$4 sm:$0xff]  }
 0x3ff   :  { %4874 = vmatpush1.bf16.msra.mxu1 %v8626_v13  ;;  %v8674_v13 = vld [vmem:[%s10778_s5 + $0x7c0] ss:$16 sps:$4 sm:$0xff]  }
 0x400   :  { %4875 = vmatprep.subr.bf16.mxu1 %v8631_v12  ;;  %v8679_v12 = vld [vmem:[%s10778_s5 + $0x7e4] ss:$16 sps:$4 sm:$0xff]  }
 0x403   :  { %4876 = vmatpush1.bf16.msra.mxu1 %v8629_v43  ;;  %v8677_v43 = vld [vmem:[%s10778_s5 + $0x7e0] ss:$16 sps:$4 sm:$0xff]  }
 0x404   :  { %5283 = vmatprep.subr.bf16.mxu1 %v8634_v15  ;;  %v8682_v15 = vld [vmem:[%s10778_s5 + $0x60c] ss:$16 sps:$4 sm:$0xff]  }
 0x406   :  { %4878 = vmatmul.mubr.bf16.vlgmr.msra.gmra.mrb[16].mxu1 %v9904_v39  ;;  %v8730_v39 = vld [vmem:[%s10780_s7 + $0x4] ss:$8 sps:$4 sm:$0xff]  }
 0x407   :  { %5284 = vmatpush1.bf16.msra.mxu1 %v8632_v53  ;;  %5315 = vmatprep.mubr.bf16.mxu1 %v9919_v52  ;;  %v8680_v53 = vld [vmem:[%s10778_s5 + $0x608] ss:$16 sps:$4 sm:$0xff]  }
 0x408   :  { %5285 = vmatprep.subr.bf16.mxu1 %v8637_v8  ;;  %5815 = vmatprep.subr.bf16.mxu0 %v8730_v39  ;;  %v8685_v8 = vld [vmem:[%s10778_s5 + $0x62c] ss:$16 sps:$4 sm:$0xff]  }
 0x409   :  { %5816 = vmatpush1.bf16.msra.mxu0 %v8728_v19  ;;  %v8686_v19 = vld [vmem:[%s10778_s5 + $0x648] ss:$16 sps:$4 sm:$0xff]   ;;  %v8691_v39 = vld [vmem:[%s10778_s5 + $0x66c] ss:$16 sps:$4 sm:$0xff]  }
 0x40a   :  { %5817 = vmatprep.subr.bf16.mxu0 %v8733_v23  ;;  %v8694_v23 = vld [vmem:[%s10778_s5 + $0x68c] ss:$16 sps:$4 sm:$0xff]  }
 0x40b   :  { %5286 = vmatpush1.bf16.msra.mxu1 %v8635_v16  ;;  %v8683_v16 = vld [vmem:[%s10778_s5 + $0x628] ss:$16 sps:$4 sm:$0xff]  }
 0x40c   :  { %5287 = vmatprep.subr.bf16.mxu1 %v8640_v18  ;;  %v8688_v18 = vld [vmem:[%s10778_s5 + $0x64c] ss:$16 sps:$4 sm:$0xff]  }
 0x40d   :  { %5818 = vmatpush1.bf16.msra.mxu0 %v8731_v25  ;;  %v8695_v25 = vld [vmem:[%s10778_s5 + $0x6a8] ss:$16 sps:$4 sm:$0xff]  }
 0x40e   :  { %5819 = vmatprep.subr.bf16.mxu0 %v8736_v55  ;;  %v8700_v55 = vld [vmem:[%s10778_s5 + $0x6cc] ss:$16 sps:$4 sm:$0xff]  }
 0x40f   :  { %5288 = vmatpush1.bf16.msra.mxu1 %v8638_v42  ;;  %v8692_v42 = vld [vmem:[%s10778_s5 + $0x688] ss:$16 sps:$4 sm:$0xff]  }
 0x410   :  { %5289 = vmatprep.subr.bf16.mxu1 %v8643_v24  ;;  %v8697_v24 = vld [vmem:[%s10778_s5 + $0x6ac] ss:$16 sps:$4 sm:$0xff]  }
 0x411   :  { %5820 = vmatpush1.bf16.msra.mxu0 %v8734_v44  ;;  %v8701_v44 = vld [vmem:[%s10778_s5 + $0x6e8] ss:$16 sps:$4 sm:$0xff]  }
 0x412   :  { %5821 = vmatprep.subr.bf16.mxu0 %v8739_v27  ;;  %v8706_v27 = vld [vmem:[%s10778_s5 + $0x70c] ss:$16 sps:$4 sm:$0xff]  }
 0x413   :  { %5290 = vmatpush1.bf16.msra.mxu1 %v8641_v26  ;;  %v8698_v26 = vld [vmem:[%s10778_s5 + $0x6c8] ss:$16 sps:$4 sm:$0xff]  }
 0x414   :  { %5291 = vmatprep.subr.bf16.mxu1 %v8646_v28  ;;  %v8703_v28 = vld [vmem:[%s10778_s5 + $0x6ec] ss:$16 sps:$4 sm:$0xff]  }
 0x415   :  { %5822 = vmatpush1.bf16.msra.mxu0 %v8737_v20  ;;  %v8707_v20 = vld [vmem:[%s10778_s5 + $0x728] ss:$16 sps:$4 sm:$0xff]  }
 0x416   :  { %5823 = vmatprep.subr.bf16.mxu0 %v8742_v17  ;;  %v8712_v17 = vld [vmem:[%s10778_s5 + $0x74c] ss:$16 sps:$4 sm:$0xff]  }
 0x417   :  { %5292 = vmatpush1.bf16.msra.mxu1 %v8644_v0  ;;  %v8704_v0 = vld [vmem:[%s10778_s5 + $0x708] ss:$16 sps:$4 sm:$0xff]  }
 0x418   :  { %5293 = vmatprep.subr.bf16.mxu1 %v8649_v62  ;;  %v8709_v62 = vld [vmem:[%s10778_s5 + $0x72c] ss:$16 sps:$4 sm:$0xff]  }
 0x419   :  { %5824 = vmatpush1.bf16.msra.mxu0 %v8740_v7  ;;  %v8713_v7 = vld [vmem:[%s10778_s5 + $0x768] ss:$16 sps:$4 sm:$0xff]  }
 0x41a   :  { %5825 = vmatprep.subr.bf16.mxu0 %v8745_v45  ;;  %v8718_v45 = vld [vmem:[%s10778_s5 + $0x78c] ss:$16 sps:$4 sm:$0xff]  }
 0x41b   :  { %5294 = vmatpush1.bf16.msra.mxu1 %v8647_v56  ;;  %v8710_v56 = vld [vmem:[%s10778_s5 + $0x748] ss:$16 sps:$4 sm:$0xff]  }
 0x41c   :  { %5295 = vmatprep.subr.bf16.mxu1 %v8652_v29  ;;  %v8715_v29 = vld [vmem:[%s10778_s5 + $0x76c] ss:$16 sps:$4 sm:$0xff]  }
 0x41d   :  { %5826 = vmatpush1.bf16.msra.mxu0 %v8743_v21  ;;  %v8721_v21 = vld [vmem:[%s10778_s5 + $0x7ac] ss:$16 sps:$4 sm:$0xff]  }
 0x41e   :  { %5827 = vmatprep.subr.bf16.mxu0 %v8748_v57  ;;  %v8724_v57 = vld [vmem:[%s10778_s5 + $0x7cc] ss:$16 sps:$4 sm:$0xff]  }
 0x41f   :  { %5296 = vmatpush1.bf16.msra.mxu1 %v8650_v30  ;;  %v8716_v30 = vld [vmem:[%s10778_s5 + $0x788] ss:$16 sps:$4 sm:$0xff]  }
 0x420   :  { %5297 = vmatprep.subr.bf16.mxu1 %v8655_v22  ;;  %v8719_v22 = vld [vmem:[%s10778_s5 + $0x7a8] ss:$16 sps:$4 sm:$0xff]  }
 0x421   :  { %5828 = vmatpush1.bf16.msra.mxu0 %v8746_v54  ;;  %v8727_v54 = vld [vmem:[%s10778_s5 + $0x7ec] ss:$16 sps:$4 sm:$0xff]  }
 0x422   :  { %5829 = vmatprep.subr.bf16.mxu0 %v8751_v36  ;;  %v8769_v36 = vld [vmem:[%s10780_s7 + $0xd4] ss:$8 sps:$4 sm:$0xff]  }
 0x423   :  { %5298 = vmatpush1.bf16.msra.mxu1 %v8653_v31  ;;  %v8722_v31 = vld [vmem:[%s10778_s5 + $0x7c8] ss:$16 sps:$4 sm:$0xff]  }
 0x424   :  { %5299 = vmatprep.subr.bf16.mxu1 %v8658_v35  ;;  %v8725_v35 = vld [vmem:[%s10778_s5 + $0x7e8] ss:$16 sps:$4 sm:$0xff]  }
 0x425   :  { %5830 = vmatpush1.bf16.msra.mxu0 %v8749_v37  ;;  %v8772_v37 = vld [vmem:[%s10780_s7 + $0xe4] ss:$8 sps:$4 sm:$0xff]  }
 0x426   :  { %5831 = vmatprep.subr.bf16.mxu0 %v8754_v4  ;;  %v8773_v4 = vld [vmem:[%s10780_s7 + $0xf0] ss:$8 sps:$4 sm:$0xff]  }
 0x427   :  { %5300 = vmatpush1.bf16.msra.mxu1 %v8656_v32  ;;  %v8767_v32 = vld [vmem:[%s10780_s7 + $0xd0] ss:$8 sps:$4 sm:$0xff]  }
 0x428   :  { %5301 = vmatprep.subr.bf16.mxu1 %v8661_v58  ;;  %v8770_v58 = vld [vmem:[%s10780_s7 + $0xe0] ss:$8 sps:$4 sm:$0xff]  }
 0x429   :  { %5832 = vmatpush1.bf16.msra.mxu0 %v8752_v33  ;;  %v5379_v33 = vlaneseq }
 0x42a   :  { %5833 = vmatprep.subr.bf16.mxu0 %v8757_v48 }
 0x42b   :  { %5302 = vmatpush1.bf16.msra.mxu1 %v8659_v5  ;;  %v8778_v5 = vld [vmem:[%s10780_s7 + $0x104] ss:$8 sps:$4 sm:$0xff]  }
 0x42c   :  { %5303 = vmatprep.subr.bf16.mxu1 %v8664_v46  ;;  %v10590_v46 = vshrl.u32 %v5379_v33, 7 }
 0x42d   :  { %5834 = vmatpush1.bf16.msra.mxu0 %v8755_v49 }
 0x42e   :  { %5835 = vmatprep.subr.bf16.mxu0 %v8760_v61  ;;  %v5389_v48 = vsub.s32 2, %v10590_v46  ;;  %v5385_v61 = vsub.s32 1, %v10590_v46 }
 0x42f   :  { %5304 = vmatpush1.bf16.msra.mxu1 %v8662_v59  ;;  %v10596_v59 = vld [vmem:[%s10781_s6] sm:$0xf] }
 0x430   :  { %5305 = vmatprep.subr.bf16.mxu1 %v8667_v60  ;;  %v10599_v49 = vrot.slane %v10596_v59, %v5389_v48  ;;  %v5381_v60 = vsub.s32 0, %v10590_v46  ;;  %v8823_v48 = vld [vmem:[%s10780_s7 + $0x1f4] ss:$8 sps:$4 sm:$0xff]  }
 0x431   :  { %5836 = vmatpush1.bf16.msra.mxu0 %v8758_v63 }
 0x432   :  { %5837 = vmatprep.subr.bf16.mxu0 %v8763_v2 }
 0x433   :  { %5306 = vmatpush1.bf16.msra.mxu1 %v8665_v40  ;;  %v5382_v40 = vrot.slane %v10596_v59, %v5381_v60 }
 0x434   :  { %5307 = vmatprep.subr.bf16.mxu1 %v8670_v1  ;;  %v5386_v1 = vrot.slane %v10596_v59, %v5385_v61 }
 0x435   :  { %5838 = vmatpush1.bf16.msra.mxu0 %v8761_v6 }
 0x436   :  { %5839 = vmatprep.subr.bf16.mxu0 %v8766_v9 }
 0x437   :  { %5308 = vmatpush1.bf16.msra.mxu1 %v8668_v3 }
 0x438   :  { %5309 = vmatprep.subr.bf16.mxu1 %v8673_v50 }
 0x439   :  { %5840 = vmatpush1.bf16.msra.mxu0 %v8764_v10 }
 0x43a   :  { %5841 = vmatprep.subr.bf16.mxu0 %v8769_v36 }
 0x43b   :  { %5310 = vmatpush1.bf16.msra.mxu1 %v8671_v51 }
 0x43c   :  { %5311 = vmatprep.subr.bf16.mxu1 %v8676_v11 }
 0x43d   :  { %5842 = vmatpush1.bf16.msra.mxu0 %v8767_v32 }
 0x43e   :  { %5843 = vmatprep.subr.bf16.mxu0 %v8772_v37 }
 0x43f   :  { %5312 = vmatpush1.bf16.msra.mxu1 %v8674_v13 }
 0x440   :  { %5313 = vmatprep.subr.bf16.mxu1 %v8679_v12 }
 0x441   :  { %5844 = vmatpush1.bf16.msra.mxu0 %v8770_v58 }
 0x443   :  { %5314 = vmatpush1.bf16.msra.mxu1 %v8677_v43 }
 0x444   :  { %5326 = vmatprep.subr.bf16.mxu1 %v8682_v15 }
 0x446   :  { %5316 = vmatmul.mubr.bf16.vlgmr.msra.gmra.mrb[20].mxu1 %v9924_v14 }
 0x447   :  { %5327 = vmatpush1.bf16.msra.mxu1 %v8680_v53  ;;  %5358 = vmatprep.mubr.bf16.mxu1 %v9919_v52  ;;  %v8689_v52 = vld [vmem:[%s10778_s5 + $0x668] ss:$16 sps:$4 sm:$0xff]  }
 0x448   :  { %5328 = vmatprep.subr.bf16.mxu1 %v8685_v8 }
 0x44b   :  { %5329 = vmatpush1.bf16.msra.mxu1 %v8683_v16 }
 0x44c   :  { %5330 = vmatprep.subr.bf16.mxu1 %v8688_v18 }
 0x44f   :  { %5331 = vmatpush1.bf16.msra.mxu1 %v8686_v19 }
 0x450   :  { %5332 = vmatprep.subr.bf16.mxu1 %v8691_v39  ;;  %v8782_v39 = vld [vmem:[%s10780_s7 + $0x120] ss:$8 sps:$4 sm:$0xff]  }
 0x453   :  { %5333 = vmatpush1.bf16.msra.mxu1 %v8689_v52  ;;  %v8787_v52 = vld [vmem:[%s10780_s7 + $0x134] ss:$8 sps:$4 sm:$0xff]  }
 0x454   :  { %5334 = vmatprep.subr.bf16.mxu1 %v8694_v23  ;;  %v8785_v23 = vld [vmem:[%s10780_s7 + $0x130] ss:$8 sps:$4 sm:$0xff]  }
 0x457   :  { %5335 = vmatpush1.bf16.msra.mxu1 %v8692_v42  ;;  %v8790_v42 = vld [vmem:[%s10780_s7 + $0x144] ss:$8 sps:$4 sm:$0xff]  }
 0x458   :  { %5336 = vmatprep.subr.bf16.mxu1 %v8697_v24  ;;  %v8788_v24 = vld [vmem:[%s10780_s7 + $0x140] ss:$8 sps:$4 sm:$0xff]  }
 0x45b   :  { %5337 = vmatpush1.bf16.msra.mxu1 %v8695_v25  ;;  %v8793_v25 = vld [vmem:[%s10780_s7 + $0x154] ss:$8 sps:$4 sm:$0xff]  }
 0x45c   :  { %5338 = vmatprep.subr.bf16.mxu1 %v8700_v55  ;;  %v8791_v55 = vld [vmem:[%s10780_s7 + $0x150] ss:$8 sps:$4 sm:$0xff]  }
 0x45f   :  { %5339 = vmatpush1.bf16.msra.mxu1 %v8698_v26  ;;  %v8796_v26 = vld [vmem:[%s10780_s7 + $0x164] ss:$8 sps:$4 sm:$0xff]  }
 0x460   :  { %5340 = vmatprep.subr.bf16.mxu1 %v8703_v28  ;;  %v8794_v28 = vld [vmem:[%s10780_s7 + $0x160] ss:$8 sps:$4 sm:$0xff]  }
 0x463   :  { %5341 = vmatpush1.bf16.msra.mxu1 %v8701_v44  ;;  %v8799_v44 = vld [vmem:[%s10780_s7 + $0x174] ss:$8 sps:$4 sm:$0xff]  }
 0x464   :  { %5342 = vmatprep.subr.bf16.mxu1 %v8706_v27  ;;  %v8797_v27 = vld [vmem:[%s10780_s7 + $0x170] ss:$8 sps:$4 sm:$0xff]  }
 0x467   :  { %5343 = vmatpush1.bf16.msra.mxu1 %v8704_v0  ;;  %v8802_v0 = vld [vmem:[%s10780_s7 + $0x184] ss:$8 sps:$4 sm:$0xff]  }
 0x468   :  { %5344 = vmatprep.subr.bf16.mxu1 %v8709_v62  ;;  %v8800_v62 = vld [vmem:[%s10780_s7 + $0x180] ss:$8 sps:$4 sm:$0xff]  }
 0x46b   :  { %5345 = vmatpush1.bf16.msra.mxu1 %v8707_v20  ;;  %v8805_v20 = vld [vmem:[%s10780_s7 + $0x194] ss:$8 sps:$4 sm:$0xff]  }
 0x46c   :  { %5346 = vmatprep.subr.bf16.mxu1 %v8712_v17  ;;  %v8803_v17 = vld [vmem:[%s10780_s7 + $0x190] ss:$8 sps:$4 sm:$0xff]  }
 0x46f   :  { %5347 = vmatpush1.bf16.msra.mxu1 %v8710_v56  ;;  %v8808_v56 = vld [vmem:[%s10780_s7 + $0x1a4] ss:$8 sps:$4 sm:$0xff]  }
 0x470   :  { %5348 = vmatprep.subr.bf16.mxu1 %v8715_v29  ;;  %v8806_v29 = vld [vmem:[%s10780_s7 + $0x1a0] ss:$8 sps:$4 sm:$0xff]  }
 0x473   :  { %5349 = vmatpush1.bf16.msra.mxu1 %v8713_v7  ;;  %v8811_v7 = vld [vmem:[%s10780_s7 + $0x1b4] ss:$8 sps:$4 sm:$0xff]  }
 0x474   :  { %5350 = vmatprep.subr.bf16.mxu1 %v8718_v45  ;;  %v8809_v45 = vld [vmem:[%s10780_s7 + $0x1b0] ss:$8 sps:$4 sm:$0xff]  }
 0x477   :  { %5351 = vmatpush1.bf16.msra.mxu1 %v8716_v30  ;;  %v8814_v30 = vld [vmem:[%s10780_s7 + $0x1c4] ss:$8 sps:$4 sm:$0xff]  }
 0x478   :  { %5352 = vmatprep.subr.bf16.mxu1 %v8721_v21  ;;  %v8812_v21 = vld [vmem:[%s10780_s7 + $0x1c0] ss:$8 sps:$4 sm:$0xff]  }
 0x47b   :  { %5353 = vmatpush1.bf16.msra.mxu1 %v8719_v22  ;;  %v5393_v22 = vsub.s32 3, %v10590_v46  ;;  %v7160_v46 = vld [vmem:[%s10784_s10] ss:$0 sm:$0xff] }
 0x47c   :  { %5354 = vmatprep.subr.bf16.mxu1 %v8724_v57  ;;  %v8817_v57 = vld [vmem:[%s10780_s7 + $0x1d4] ss:$8 sps:$4 sm:$0xff]  }
 0x47f   :  { %5355 = vmatpush1.bf16.msra.mxu1 %v8722_v31  ;;  %v8815_v31 = vld [vmem:[%s10780_s7 + $0x1d0] ss:$8 sps:$4 sm:$0xff]  }
 0x480   :  { %5356 = vmatprep.subr.bf16.mxu1 %v8727_v54  ;;  %v5394_v54 = vrot.slane %v10596_v59, %v5393_v22 }
 0x483   :  { %5357 = vmatpush1.bf16.msra.mxu1 %v8725_v35  ;;  %v8820_v35 = vld [vmem:[%s10780_s7 + $0x1e4] ss:$8 sps:$4 sm:$0xff]  }
 0x486   :  { %5359 = vmatmul.mubr.bf16.vlgmr.msra.gmra.mrb[16].mxu1 %v9924_v14  ;;  %v8775_v14 = vld [vmem:[%s10780_s7 + $0xf4] ss:$8 sps:$4 sm:$0xff]  }
 0x487   :  { %5845 = vmatprep.subr.bf16.mxu0 %v8775_v14 }
 0x488   :  { %5846 = vmatpush1.bf16.msra.mxu0 %v8773_v4  ;;  %v8818_v4 = vld [vmem:[%s10780_s7 + $0x1e0] ss:$8 sps:$4 sm:$0xff]  }
 0x489   :  { %5858 = vmatprep.subr.bf16.mxu0 %v8778_v5 }
 0x519   :  { %v5317_v63 = vpop.f32.mrb[20].mxu1 }
 0x51a   :  { %v7935_v2 = vadd.f32 %v5317_v63, %v10229_v41  ;;  %v5319_v3 = vpop.f32.mrb[21].mxu1  ;;  %v8776_v41 = vld [vmem:[%s10780_s7 + $0x100] ss:$8 sps:$4 sm:$0xff]  }
 0x51b   :  { %v7936_v6 = vadd.f32 %v5319_v3, %v10231_v34  ;;  %v5321_v50 = vpop.f32.mrb[22].mxu1  ;;  %v8781_v34 = vld [vmem:[%s10780_s7 + $0x114] ss:$8 sps:$4 sm:$0xff]   ;;  %v8821_v3 = vld [vmem:[%s10780_s7 + $0x1f0] ss:$8 sps:$4 sm:$0xff]  }
 0x51c   :  { %v5399_v9 = vadd.f32 %v7935_v2, %v5382_v40  ;;  %v7937_v51 = vadd.f32 %v5321_v50, %v10233_v47  ;;  %v5323_v10 = vpop.f32.mrb[23].mxu1  ;;  %v8779_v47 = vld [vmem:[%s10780_s7 + $0x110] ss:$8 sps:$4 sm:$0xff]  }
 0x51d   :  { %v5400_v11 = vadd.f32 %v7936_v6, %v5386_v1  ;;  %v7938_v13 = vadd.f32 %v5323_v10, %v10238_v38  ;;  %v8784_v38 = vld [vmem:[%s10780_s7 + $0x124] ss:$8 sps:$4 sm:$0xff]  }
 0x51e   :  { %v5403_v12 = vadd.f32 %v7937_v51, %v5382_v40  ;;  %v5407_v15 = vmax.f32 %v5399_v9, 0.0  ;;  %v8825_v9 = vld [vmem:[%s10782_s9] sm:$0xff]   ;;  %v8826_v51 = vld [vmem:[%s10782_s9 + $0x48] sm:$0xff]  }
 0x51f   :  { %v5404_v43 = vadd.f32 %v7938_v13, %v5386_v1  ;;  %v5408_v8 = vmax.f32 %v5400_v11, 0.0  ;;  %v8827_v10 = vld [vmem:[%s10782_s9 + $0x8] sm:$0xff]   ;;  %v8828_v11 = vld [vmem:[%s10782_s9 + $0x50] sm:$0xff]  }
 0x520   :  { %v5411_v53 = vmax.f32 %v5403_v12, 0.0  ;;  %v8829_v13 = vld [vmem:[%s10782_s9 + $0x10] sm:$0xff]   ;;  %v8830_v12 = vld [vmem:[%s10782_s9 + $0x58] sm:$0xff]  }
 0x521   :  { %v5412_v16 = vmax.f32 %v5404_v43, 0.0  ;;  %v8831_v43 = vld [vmem:[%s10782_s9 + $0x18] sm:$0xff]  }
 0x522   :  { %v5415_v18 = vpack.c.bf16 %v5411_v53, %v5407_v15  ;;  %v8832_v15 = vld [vmem:[%s10782_s9 + $0x60] sm:$0xff]  }
 0x523   :  { %v5416_v19 = vpack.c.bf16 %v5412_v16, %v5408_v8  ;;  %v8833_v53 = vld [vmem:[%s10782_s9 + $0x20] sm:$0xff]   ;;  %v8834_v8 = vld [vmem:[%s10782_s9 + $0x68] sm:$0xff]  }
 0x524   :  { %v8835_v16 = vld [vmem:[%s10782_s9 + $0x28] sm:$0xff]  }
 0x525   :  { %5847 = vmatprep.mubr.bf16.mxu0 %v5416_v19  ;;  %v8837_v19 = vld [vmem:[%s10782_s9 + $0x30] sm:$0xff]  }
 0x526   :  { %5848 = vmatmul.mubr.bf16.vlgmr.msra.gmra.mrb[52].mxu0 %v5415_v18  ;;  %v8836_v18 = vld [vmem:[%s10782_s9 + $0x70] sm:$0xff]  }
 0x527   :  { %5859 = vmatpush1.bf16.msra.mxu0 %v8776_v41  ;;  %v8838_v41 = vld [vmem:[%s10782_s9 + $0x78] sm:$0xff]  }
 0x528   :  { %5860 = vmatprep.subr.bf16.mxu0 %v8781_v34  ;;  %v8839_v34 = vld [vmem:[%s10782_s9 + $0x38] sm:$0xff]  }
 0x52b   :  { %5861 = vmatpush1.bf16.msra.mxu0 %v8779_v47  ;;  %v5483_v47 = vld [vmem:[%s10783_s8] sm:$0x3] }
 0x52c   :  { %5862 = vmatprep.subr.bf16.mxu0 %v8784_v38  ;;  %v5488_v38 = vrot.slane %v5483_v47, %v5381_v60 }
 0x52f   :  { %5863 = vmatpush1.bf16.msra.mxu0 %v8782_v39  ;;  %v5492_v39 = vrot.slane %v5483_v47, %v5385_v61 }
 0x530   :  { %5864 = vmatprep.subr.bf16.mxu0 %v8787_v52 }
 0x533   :  { %5865 = vmatpush1.bf16.msra.mxu0 %v8785_v23 }
 0x534   :  { %5866 = vmatprep.subr.bf16.mxu0 %v8790_v42 }
 0x537   :  { %5867 = vmatpush1.bf16.msra.mxu0 %v8788_v24 }
 0x538   :  { %5868 = vmatprep.subr.bf16.mxu0 %v8793_v25 }
 0x53b   :  { %5869 = vmatpush1.bf16.msra.mxu0 %v8791_v55 }
 0x53c   :  { %5870 = vmatprep.subr.bf16.mxu0 %v8796_v26 }
 0x53f   :  { %5871 = vmatpush1.bf16.msra.mxu0 %v8794_v28 }
 0x540   :  { %5872 = vmatprep.subr.bf16.mxu0 %v8799_v44 }
 0x543   :  { %5873 = vmatpush1.bf16.msra.mxu0 %v8797_v27 }
 0x544   :  { %5874 = vmatprep.subr.bf16.mxu0 %v8802_v0 }
 0x547   :  { %5875 = vmatpush1.bf16.msra.mxu0 %v8800_v62 }
 0x548   :  { %5876 = vmatprep.subr.bf16.mxu0 %v8805_v20 }
 0x54b   :  { %5877 = vmatpush1.bf16.msra.mxu0 %v8803_v17 }
 0x54c   :  { %5878 = vmatprep.subr.bf16.mxu0 %v8808_v56 }
 0x54f   :  { %5879 = vmatpush1.bf16.msra.mxu0 %v8806_v29 }
 0x550   :  { %5880 = vmatprep.subr.bf16.mxu0 %v8811_v7 }
 0x553   :  { %5881 = vmatpush1.bf16.msra.mxu0 %v8809_v45 }
 0x554   :  { %5882 = vmatprep.subr.bf16.mxu0 %v8814_v30 }
 0x557   :  { %5883 = vmatpush1.bf16.msra.mxu0 %v8812_v21 }
 0x558   :  { %5884 = vmatprep.subr.bf16.mxu0 %v8817_v57 }
 0x559   :  { %v5360_v36 = vpop.f32.mrb[16].mxu1 }
 0x55a   :  { %v5401_v32 = vadd.f32 %v10599_v49, %v5360_v36  ;;  %v5362_v37 = vpop.f32.mrb[17].mxu1 }
 0x55b   :  { %v5402_v58 = vadd.f32 %v5394_v54, %v5362_v37  ;;  %5885 = vmatpush1.bf16.msra.mxu0 %v8815_v31  ;;  %v5364_v14 = vpop.f32.mrb[18].mxu1 }
 0x55c   :  { %v5405_v5 = vadd.f32 %v10599_v49, %v5364_v14  ;;  %v5366_v33 = vpop.f32.mrb[19].mxu1  ;;  %5886 = vmatprep.subr.bf16.mxu0 %v8820_v35  ;;  %v5409_v40 = vmax.f32 %v5401_v32, 0.0  ;;  %v8824_v49 = vld [vmem:[%s10782_s9 + $0x40] sm:$0xff]  }
 0x55d   :  { %v5406_v59 = vadd.f32 %v5394_v54, %v5366_v33  ;;  %v5410_v1 = vmax.f32 %v5402_v58, 0.0 }
 0x55e   :  { %v5413_v63 = vmax.f32 %v5405_v5, 0.0 }
 0x55f   :  { %v5414_v2 = vmax.f32 %v5406_v59, 0.0  ;;  %5887 = vmatpush1.bf16.msra.mxu0 %v8818_v4 }
 0x560   :  { %v5417_v6 = vpack.c.bf16 %v5413_v63, %v5409_v40  ;;  %5888 = vmatprep.subr.bf16.mxu0 %v8823_v48 }
 0x561   :  { %v5418_v50 = vpack.c.bf16 %v5414_v2, %v5410_v1 }
 0x563   :  { %5889 = vmatpush1.bf16.msra.mxu0 %v8821_v3  ;;  %5890 = vmatprep.mubr.bf16.mxu0 %v5418_v50 }
 0x564   :  { %7417 = vmatprep.subr.bf16.mxu0 %v8824_v49 }
 0x566   :  { %5891 = vmatmul.mubr.bf16.vlgmr.msra.gmra.mrb[52].mxu0 %v5417_v6 }
 0x567   :  { %7418 = vmatpush3.bf16.msra.mxu0 %v8825_v9 }
 0x568   :  { %7419 = vmatprep.subr.bf16.mxu0 %v8826_v51 }
 0x56b   :  { %7420 = vmatpush3.bf16.msra.mxu0 %v8827_v10 }
 0x56c   :  { %7421 = vmatprep.subr.bf16.mxu0 %v8828_v11 }
 0x56f   :  { %7422 = vmatpush3.bf16.msra.mxu0 %v8829_v13 }
 0x570   :  { %7423 = vmatprep.subr.bf16.mxu0 %v8830_v12 }
 0x573   :  { %7424 = vmatpush3.bf16.msra.mxu0 %v8831_v43 }
 0x574   :  { %7425 = vmatprep.subr.bf16.mxu0 %v8832_v15 }
 0x577   :  { %7426 = vmatpush3.bf16.msra.mxu0 %v8833_v53 }
 0x578   :  { %7427 = vmatprep.subr.bf16.mxu0 %v8834_v8 }
 0x57b   :  { %7428 = vmatpush3.bf16.msra.mxu0 %v8835_v16 }
 0x57c   :  { %7429 = vmatprep.subr.bf16.mxu0 %v8836_v18 }
 0x57f   :  { %7430 = vmatpush3.bf16.msra.mxu0 %v8837_v19 }
 0x580   :  { %7431 = vmatprep.subr.bf16.mxu0 %v8838_v41 }
 0x583   :  { %7432 = vmatpush3.bf16.msra.mxu0 %v8839_v34 }
 0x639   :  { %v5892_v52 = vpop.f32.mrb[52].mxu0 }
 0x63a   :  { %v7939_v23 = vadd.f32 %v5892_v52, %v5488_v38  ;;  %v5894_v42 = vpop.f32.mrb[53].mxu0 }
 0x63b   :  { %v7940_v24 = vadd.f32 %v5894_v42, %v5492_v39  ;;  %v5896_v25 = vpop.f32.mrb[54].mxu0 }
 0x63c   :  { %v7941_v55 = vadd.f32 %v5896_v25, %v5488_v38  ;;  %v5898_v26 = vpop.f32.mrb[55].mxu0  ;;  %v5901_v44 = vmax.f32 %v7939_v23, 0.0 }
 0x63d   :  { %v7942_v28 = vadd.f32 %v5898_v26, %v5492_v39  ;;  %v5902_v0 = vmax.f32 %v7940_v24, 0.0 }
 0x63e   :  { %v5903_v27 = vmax.f32 %v7941_v55, 0.0 }
 0x63f   :  { %v5904_v62 = vmax.f32 %v7942_v28, 0.0 }
 0x640   :  { %v5905_v20 = vpack.c.bf16 %v5903_v27, %v5901_v44 }
 0x641   :  { %v5906_v17 = vpack.c.bf16 %v5904_v62, %v5902_v0 }
 0x643   :  { %6074 = vmatprep.mubr.bf16.mxu0 %v5906_v17 }
 0x644   :  { %6075 = vmatmul.mubr.bf16.vlgmr.msra.gmra.mrb[56].mxu0 %v5905_v20 }
 0x717   :  { %v7433_v60 = vpop.f32.mrb[56].mxu0 }
 0x718   :  { %v7434_v56 = vpop.f32.mrb[57].mxu0 }
 0x719   :  { %v7435_v61 = vadd.f32 %v7434_v56, %v7433_v60  ;;  %v7436_v29 = vpop.f32.mrb[58].mxu0 }
 0x71a   :  { %v7437_v7 = vpop.f32.mrb[59].mxu0 }
 0x71b   :  { %v7438_v45 = vadd.f32 %v7437_v7, %v7436_v29  ;;  %v6077_v30 = vadd.f32 %v7435_v61, %v7160_v46 }
 0x71d   :  { %6083 = vmax.xlane.f32.xlu0 %v6077_v30  ;;  %v6080_v21 = vadd.f32 %v7438_v45, %v7160_v46 }
 0x721   :  { %6085 = vmax.xlane.f32.xlu0 %v6080_v21 }
 0x7aa   :  { %v6084_v22 = vpop.xlane.xlu0 %6083 }
 0x7ab   :  { %v6087_v57 = vsub.f32 %v6077_v30, %v6084_v22 }
 0x7ad   :  { %v6089_v31 = vmul.f32 1.442695, %v6087_v57 }
 0x7ae   :  { %v6086_v54 = vpop.xlane.xlu0 %6085 }
 0x7af   :  { %v6088_v35 = vsub.f32 %v6080_v21, %v6086_v54  ;;  %8840 = vpow2.f32 %v6089_v31 }
 0x7b1   :  { %v6091_v36 = vmul.f32 1.442695, %v6088_v35 }
 0x7b3   :  { %8842 = vpow2.f32 %v6091_v36 }
 0x7b9   :  { %v8841_v32 = vpop.eup %8840 }
 0x7ba   :  { %6093 = vadd.xlane.f32.xlu1 %v8841_v32 }
 0x7bd   :  { %v8843_v37 = vpop.eup %8842 }
 0x7be   :  { %6095 = vadd.xlane.f32.xlu1 %v8843_v37 }
 0x847   :  { %v6094_v58 = vpop.xlane.xlu1 %6093 }
 0x848   :  { %8844 = vlog2.f32 %v6094_v58 }
 0x84b   :  { %v6096_v14 = vpop.xlane.xlu1 %6095 }
 0x84c   :  { %8846 = vlog2.f32 %v6096_v14 }
 0x852   :  { %v8845_v4 = vpop.eup %8844 }
 0x853   :  { %v6098_v5 = vmul.f32 0.6931472, %v8845_v4 }
 0x855   :  { %v6101_v33 = vsub.f32 %v6087_v57, %v6098_v5 }
 0x856   :  { %v8847_v48 = vpop.eup %8846 }
 0x857   :  { %6103 = vst [vmem:[%s10785_s11] sm:$0xff] %v6101_v33  ;;  %v6100_v59 = vmul.f32 0.6931472, %v8847_v48 }
 0x859   :  { %v6102_v40 = vsub.f32 %v6088_v35, %v6100_v59 }
 0x85b   :  { %6104 = vst [vmem:[%s10785_s11 + $0x8] sm:$0xff] %v6102_v40 }

</bundles_post_ra>
